<compile_context>
chip_gen: v7x
topology: tpu7x:2x2x1
jax: 0.10.0
libtpu: 0.0.40
codegen_flags: <defaults>
</compile_context>

<pallas_src>
import functools
import math

import jax
import jax.numpy as jnp
from jax.experimental import pallas as pl
from jax.experimental.pallas import tpu as pltpu


# ---------------------------------------------------------------------------
# Helpers
# ---------------------------------------------------------------------------
def _layernorm(x, gamma, beta, eps=1e-6):
    # AddNorm in the reference uses eps=1e-06.
    mu = jnp.mean(x, axis=-1, keepdims=True)
    var = jnp.mean((x - mu) ** 2, axis=-1, keepdims=True)
    return (x - mu) * jax.lax.rsqrt(var + eps) * gamma + beta


def _plan_tiling(S, B, D, d_ff, L, H, *, max_rows=512):
    """Pick the seq block TS, whether stacked weights stay VMEM-resident, and
    an explicit scoped-VMEM limit.  Budget counts double-buffered bf16
    weights, the f32 activation scratch, matmul/softmax intermediates and the
    pooled output block against the real per-generation VMEM capacity."""
    phys = 64 << 20                              # conservative default (v7x)
    try:
        phys = int(pltpu.get_tpu_info().vmem_capacity_bytes)
    except Exception:
        pass
    budget = int(phys * 0.75)

    # per-layer: bf16 matmul weights + f32 vector params
    w_layer = 2 * (3 * D * D + D * D + 2 * D * d_ff) + 4 * (3 * D + 6 * D + d_ff)
    w_resident = L * w_layer

    def act_bytes(ts):
        rows = ts * B
        per_row = 4 * (D + 3 * D + 3 * D + d_ff)   # f32: x2, qkv, attn/y/ffn, h1
        per_row += 2 * (D + 3 * D + d_ff)          # bf16 casts: x, qkv, h1
        scores = 2 * ts * H * B * B * 4            # scores + probs (f32)
        return ts * B * D * 4 + rows * per_row + scores + 2 * B * D * 4

    def fits(ts, resident):
        w = 2 * (w_resident if resident else w_layer)   # assume double-buffered
        return w + act_bytes(ts) <= budget

    divisors = [t for t in range(1, S + 1) if S % t == 0]
    res_cand = [t for t in divisors if t * B <= max(max_rows, B) and fits(t, True)]
    str_cand = [t for t in divisors if t * B <= max(max_rows, B) and fits(t, False)]
    target_rows = min(128, S * B)
    if res_cand and max(res_cand) * B >= target_rows:
        ts, resident = max(res_cand), True
    elif str_cand:
        ts, resident = max(str_cand), False
    elif res_cand:
        ts, resident = max(res_cand), True
    else:                                           # best effort
        ts, resident = 1, False

    # Prefer >= 2 seq blocks (keeps both v7x TensorCores busy) as long as the
    # matmul M dim stays >= 128 rows.
    if S // ts < 2:
        alt = [t for t in divisors if t < ts and t * B >= 128 and fits(t, resident)]
        if alt:
            ts = max(alt)

    vmem_limit = int(min(phys, budget + (8 << 20)))
    return ts, resident, vmem_limit


# ---------------------------------------------------------------------------
# Pallas kernels
# ---------------------------------------------------------------------------
def fused_layers_kernel(x_hbm, wqkv_ref, wo_ref, w1_ref, w2_ref,
                        bqkv_ref, vecs_ref, bf1_ref,
                        out_ref, act_ref, *,
                        num_heads, resident, compute_dtype):
    """grid = (S/TS, L).  Activation lives in the VMEM scratch `act_ref`
    across the layer axis; weights are resident (indexed by layer) or streamed
    per layer; only the per-block pooled partial sum is written to HBM."""
    s = pl.program_id(0)
    layer = pl.program_id(1)
    num_layers = pl.num_programs(1)

    TS, B, D = act_ref.shape
    rows = TS * B
    H = num_heads
    hd = D // H
    cd = compute_dtype

    # Load the embedded activations for this seq block once (layer 0).
    @pl.when(layer == 0)
    def _():
        start = pl.multiple_of(s * TS, TS)
        pltpu.sync_copy(x_hbm.at[pl.ds(start, TS)], act_ref)

    li = layer if resident else 0                  # layer index into weight stack

    x3 = act_ref[...]                              # (TS, B, D) f32
    x2 = x3.reshape(rows, D)
    xc = x2.astype(cd)                             # single cast for QKV matmul

    bqkv = bqkv_ref[li]                            # (1, 3D) f32 (scale folded in)
    vecs = vecs_ref[li]                            # (6, D)  f32
    bo, g1, be1 = vecs[0:1], vecs[1:2], vecs[2:3]
    bf2, g2, be2 = vecs[3:4], vecs[4:5], vecs[5:6]
    bf1 = bf1_ref[li]                              # (1, d_ff) f32

    # Fused QKV projection: one (rows, D) x (D, 3D) MXU matmul.
    qkv = jnp.dot(xc, wqkv_ref[li], preferred_element_type=jnp.float32) + bqkv
    qkvc = qkv.astype(cd)                          # single cast for all heads
    q, k, v = qkvc[:, :D], qkvc[:, D:2 * D], qkvc[:, 2 * D:]

    # Batched multi-head attention over the B axis (dim-1 of the (S,B,D)
    # tensor, exactly as the reference does after transpose(0,1)).
    def to_heads(t):                               # (rows, D) -> (TS*H, B, hd)
        return t.reshape(TS, B, H, hd).transpose(0, 2, 1, 3).reshape(TS * H, B, hd)

    qh, kh, vh = to_heads(q), to_heads(k), to_heads(v)
    sc = jnp.einsum('nbd,ncd->nbc', qh, kh, preferred_element_type=jnp.float32)
    m = jnp.max(sc, axis=-1, keepdims=True)
    e = jnp.exp(sc - m)
    p = e * pl.reciprocal(jnp.sum(e, axis=-1, keepdims=True), approx=True)
    oh = jnp.einsum('nbc,ncd->nbd', p.astype(cd), vh,
                    preferred_element_type=jnp.float32)
    attn = oh.reshape(TS, H, B, hd).transpose(0, 2, 1, 3).reshape(rows, D)

    attn_out = jnp.dot(attn.astype(cd), wo_ref[li],
                       preferred_element_type=jnp.float32) + bo
    y = _layernorm(x2 + attn_out, g1, be1)

    h1 = jnp.maximum(jnp.dot(y.astype(cd), w1_ref[li],
                             preferred_element_type=jnp.float32) + bf1, 0.0)
    ffn = jnp.dot(h1.astype(cd), w2_ref[li],
                  preferred_element_type=jnp.float32) + bf2
    z = _layernorm(y + ffn, g2, be2)

    z3 = z.reshape(TS, B, D)
    act_ref[...] = z3

    # Only the pooled partial sum leaves VMEM (no (S,B,D) HBM round-trip).
    @pl.when(layer == num_layers - 1)
    def _():
        out_ref[...] = jnp.sum(z3, axis=0, keepdims=True)


def pool_fc_kernel(p_ref, w_ref, b_ref, o_ref, *, inv_s, compute_dtype):
    """Combine the per-block pooled partial sums and apply the classifier
    into a lane-dense (B, Cp) slab (single block, no grid loop)."""
    pooled = jnp.sum(p_ref[...], axis=0) * inv_s               # (B, D) f32
    o_ref[...] = (jnp.dot(pooled.astype(compute_dtype), w_ref[...],
                          preferred_element_type=jnp.float32) + b_ref[...])


# ---------------------------------------------------------------------------
# Wrappers
# ---------------------------------------------------------------------------
_WEIGHT_KEYS = ('wqkv', 'wo', 'w1', 'w2', 'bqkv', 'vecs', 'bf1')


def pack_layer_params(layers, num_heads, compute_dtype):
    """Stack per-layer params along a leading layer axis; pre-transpose matmul
    weights to (in, out); fuse Wq/Wk/Wv into one (D,3D) weight; fold
    1/sqrt(hd) into Wq/bq; pack the 10 tiny vector params into 3 tensors."""
    D = layers[0]['wq'].shape[0]
    scale = 1.0 / math.sqrt(D // num_heads)

    def stk(fn):
        return jnp.stack([fn(p) for p in layers])

    wqkv = stk(lambda p: jnp.concatenate(
        [p['wq'].T * scale, p['wk'].T, p['wv'].T], axis=1)).astype(compute_dtype)
    wo = stk(lambda p: p['wo'].T).astype(compute_dtype)
    w1 = stk(lambda p: p['w1'].T).astype(compute_dtype)
    w2 = stk(lambda p: p['w2'].T).astype(compute_dtype)
    bqkv = stk(lambda p: jnp.concatenate(
        [p['bq'] * scale, p['bk'], p['bv']], axis=1))            # (L, 1, 3D) f32
    vecs = stk(lambda p: jnp.concatenate(
        [p['bo'], p['g1'], p['be1'], p['bf2'], p['g2'], p['be2']], axis=0))  # (L,6,D)
    bf1 = stk(lambda p: p['bf1'])                                # (L, 1, d_ff)
    return dict(wqkv=wqkv, wo=wo, w1=w1, w2=w2, bqkv=bqkv, vecs=vecs, bf1=bf1)


def encoder_layers_pooled(x, packed, num_heads, compute_dtype):
    S, B, D = x.shape
    L = packed['wqkv'].shape[0]
    d_ff = packed['w1'].shape[2]
    TS, resident, vmem_limit = _plan_tiling(S, B, D, d_ff, L, num_heads)
    NB = S // TS

    weights = [packed[k] for k in _WEIGHT_KEYS]
    if resident:
        # Constant index map: each weight stack is DMA'd into VMEM once and
        # stays resident for the whole grid.
        w_specs = [pl.BlockSpec(w.shape, lambda s, l: (0, 0, 0)) for w in weights]
    else:
        # TODO(synk): for models too large for resident weights, a layer-outer
        # grid (weights fetched once per layer, activations round-tripped)
        # would have less HBM traffic than this per-(s,l) streaming fallback.
        w_specs = [pl.BlockSpec((1,) + w.shape[1:], lambda s, l: (l, 0, 0))
                   for w in weights]

    kernel = functools.partial(fused_layers_kernel, num_heads=num_heads,
                               resident=resident, compute_dtype=compute_dtype)
    return pl.pallas_call(
        kernel,
        out_shape=jax.ShapeDtypeStruct((NB, B, D), jnp.float32),
        grid_spec=pltpu.PrefetchScalarGridSpec(
            num_scalar_prefetch=0,
            grid=(NB, L),
            in_specs=[pl.BlockSpec(memory_space=pl.ANY)] + w_specs,
            out_specs=pl.BlockSpec((1, B, D), lambda s, l: (s, 0, 0)),
            scratch_shapes=[pltpu.VMEM((TS, B, D), jnp.float32)]),
        compiler_params=pltpu.CompilerParams(
            dimension_semantics=("parallel", "arbitrary"),
            vmem_limit_bytes=vmem_limit),
    )(x, *weights)


def classify(partials, wfc, bfc, S, compute_dtype):
    NB, B, D = partials.shape
    C = wfc.shape[0]
    Cp = ((C + 127) // 128) * 128                    # lane-dense output slab
    w_p = jnp.zeros((D, Cp), compute_dtype).at[:, :C].set(wfc.T.astype(compute_dtype))
    b_p = jnp.zeros((1, Cp), jnp.float32).at[:, :C].set(bfc.reshape(1, C))

    kernel = functools.partial(pool_fc_kernel, inv_s=1.0 / S,
                               compute_dtype=compute_dtype)
    out = pl.pallas_call(
        kernel,
        out_shape=jax.ShapeDtypeStruct((B, Cp), jnp.float32),
        grid_spec=pltpu.PrefetchScalarGridSpec(
            num_scalar_prefetch=0,
            grid=(1,),
            in_specs=[pl.BlockSpec((NB, B, D), lambda i: (0, 0, 0)),
                      pl.BlockSpec((D, Cp), lambda i: (0, 0)),
                      pl.BlockSpec((1, Cp), lambda i: (0, 0))],
            out_specs=pl.BlockSpec((B, Cp), lambda i: (0, 0))),
    )(partials, w_p, b_p)
    return out[:, :C]


def positional_encoding(seq_len, d_model):
    position = jnp.arange(seq_len, dtype=jnp.float32)[:, None]
    div_term = jnp.exp(jnp.arange(0, d_model, 2, dtype=jnp.float32)
                       * (-math.log(10000.0) / d_model))
    pe = jnp.zeros((seq_len, d_model), jnp.float32)
    pe = pe.at[:, 0::2].set(jnp.sin(position * div_term))
    pe = pe.at[:, 1::2].set(jnp.cos(position * div_term))
    return pe


def transformer_encoder(src, emb, layers, fc_params, num_heads,
                        compute_dtype=jnp.bfloat16):
    """src: int32 (B, S) token ids.  Returns (B, num_classes) float32."""
    B, S = src.shape
    d_model = emb.shape[1]
    # TODO(synk): embedding gather + positional-encoding table are plain-JAX glue.
    x = emb[src]                                         # (B, S, D)
    x = x + positional_encoding(S, d_model)[None]        # add positional enc
    x = jnp.transpose(x, (1, 0, 2)).astype(jnp.float32)  # (S, B, D)

    packed = pack_layer_params(layers, num_heads, compute_dtype)
    partials = encoder_layers_pooled(x, packed, num_heads, compute_dtype)

    wfc, bfc = fc_params
    return classify(partials, wfc, bfc, S, compute_dtype)


# ---------------------------------------------------------------------------
# Deterministic parameter init (matching module __init__ shapes)
# ---------------------------------------------------------------------------
def _linear_init(key, out_f, in_f):
    kw, kb = jax.random.split(key)
    bound = 1.0 / math.sqrt(in_f)
    w = jax.random.uniform(kw, (out_f, in_f), jnp.float32, -bound, bound)
    b = jax.random.uniform(kb, (1, out_f), jnp.float32, -bound, bound)
    return w, b


def init_params(key, num_layers, d_model, num_heads, d_ff, vocab_size,
                num_classes):
    keys = jax.random.split(key, 2 + num_layers)
    emb = jax.random.normal(keys[0], (vocab_size, d_model), jnp.float32)

    layers = []
    for i in range(num_layers):
        lk = jax.random.split(keys[2 + i], 6)
        wq, bq = _linear_init(lk[0], d_model, d_model)
        wk, bk = _linear_init(lk[1], d_model, d_model)
        wv, bv = _linear_init(lk[2], d_model, d_model)
        wo, bo = _linear_init(lk[3], d_model, d_model)
        w1, bf1 = _linear_init(lk[4], d_ff, d_model)
        w2, bf2 = _linear_init(lk[5], d_model, d_ff)
        layers.append(dict(
            wq=wq, bq=bq, wk=wk, bk=bk, wv=wv, bv=bv, wo=wo, bo=bo,
            # LayerNorm affine params (PyTorch default init: ones / zeros)
            g1=jnp.ones((1, d_model), jnp.float32),
            be1=jnp.zeros((1, d_model), jnp.float32),
            w1=w1, bf1=bf1, w2=w2, bf2=bf2,
            g2=jnp.ones((1, d_model), jnp.float32),
            be2=jnp.zeros((1, d_model), jnp.float32)))

    wfc, bfc = _linear_init(keys[1], num_classes, d_model)
    return emb, layers, (wfc, bfc)


# ---------------------------------------------------------------------------
if __name__ == "__main__":
    # small config; D and d_ff kept as multiples of 128 for (8,128) alignment
    num_layers, d_model, num_heads, d_ff = 2, 128, 4, 256
    vocab_size, num_classes = 50, 10
    batch, seq = 2, 8

    key = jax.random.PRNGKey(0)
    k_param, k_src = jax.random.split(key)
    emb, layers, fc_params = init_params(
        k_param, num_layers, d_model, num_heads, d_ff, vocab_size, num_classes)

    src = jax.random.randint(k_src, (batch, seq), 0, vocab_size, dtype=jnp.int32)

    out = transformer_encoder(src, emb, layers, fc_params, num_heads,
                              compute_dtype=jnp.bfloat16)
    out = jax.block_until_ready(out)
    assert out.shape == (batch, num_classes)
    print("KERNEL_OK")
</pallas_src>

<mosaic_0001>
module attributes {stable_mosaic.version = 11 : i64} {
  func.func @fused_layers_kernel(%arg0: i32, %arg1: i32, %arg2: memref<8x2x128xf32, #tpu.memory_space<any>>, %arg3: memref<2x128x384xbf16, #tpu.memory_space<vmem>>, %arg4: memref<2x128x128xbf16, #tpu.memory_space<vmem>>, %arg5: memref<2x128x256xbf16, #tpu.memory_space<vmem>>, %arg6: memref<2x256x128xbf16, #tpu.memory_space<vmem>>, %arg7: memref<2x1x384xf32, #tpu.memory_space<vmem>>, %arg8: memref<2x6x128xf32, #tpu.memory_space<vmem>>, %arg9: memref<2x1x256xf32, #tpu.memory_space<vmem>>, %arg10: memref<1x2x128xf32, #tpu.memory_space<vmem>>, %arg11: memref<8x2x128xf32, #tpu.memory_space<vmem>>) attributes {dimension_semantics = [#tpu.dimension_semantics<parallel>, #tpu.dimension_semantics<arbitrary>], iteration_bounds = array<i64: 1, 2>, scalar_prefetch = 0 : i64, scratch_operands = 1 : i64, tpu.core_type = #tpu.core_type<tc>, window_params = [{}, {pipeline_mode = #tpu.pipeline_mode<synchronous>, transform_indices = @transform_1, window_bounds = array<i64: 2, 128, 384>}, {pipeline_mode = #tpu.pipeline_mode<synchronous>, transform_indices = @transform_2, window_bounds = array<i64: 2, 128, 128>}, {pipeline_mode = #tpu.pipeline_mode<synchronous>, transform_indices = @transform_3, window_bounds = array<i64: 2, 128, 256>}, {pipeline_mode = #tpu.pipeline_mode<synchronous>, transform_indices = @transform_4, window_bounds = array<i64: 2, 256, 128>}, {pipeline_mode = #tpu.pipeline_mode<synchronous>, transform_indices = @transform_5, window_bounds = array<i64: 2, 1, 384>}, {pipeline_mode = #tpu.pipeline_mode<synchronous>, transform_indices = @transform_6, window_bounds = array<i64: 2, 6, 128>}, {pipeline_mode = #tpu.pipeline_mode<synchronous>, transform_indices = @transform_7, window_bounds = array<i64: 2, 1, 256>}, {transform_indices = @transform_8, window_bounds = array<i64: 1, 2, 128>}]} {
    %c0_i32 = arith.constant 0 : i32
    %0 = arith.cmpi eq, %arg1, %c0_i32 : i32
    %1 = arith.extui %0 : i1 to i32
    %c0_i32_0 = arith.constant 0 : i32
    %2 = arith.cmpi ne, %1, %c0_i32_0 : i32
    scf.if %2 {
      %c8_i32 = arith.constant 8 : i32
      %130 = arith.muli %arg0, %c8_i32 : i32
      %131 = tpu.assume_multiple %130, 8 : i32
      "tpu.region"() ({
        %132 = tpu.sem_alloc : memref<!tpu.dma_semaphore, #tpu.memory_space<semaphore_mem>>
        %c0_i32_39 = arith.constant 0 : i32
        %c0_i32_40 = arith.constant 0 : i32
        %133 = tpu.memref_slice %arg2[%131, %c0_i32_39, %c0_i32_40] : memref<8x2x128xf32, #tpu.memory_space<any>> -> memref<8x2x128xf32, #tpu.memory_space<any>>
        tpu.enqueue_dma source(%133 : memref<8x2x128xf32, #tpu.memory_space<any>>) target(%arg11 : memref<8x2x128xf32, #tpu.memory_space<vmem>>) target_semaphore(%132 : memref<!tpu.dma_semaphore, #tpu.memory_space<semaphore_mem>>)
        %c0_i32_41 = arith.constant 0 : i32
        %c0_i32_42 = arith.constant 0 : i32
        %134 = tpu.memref_slice %arg2[%131, %c0_i32_41, %c0_i32_42] : memref<8x2x128xf32, #tpu.memory_space<any>> -> memref<8x2x128xf32, #tpu.memory_space<any>>
        tpu.wait_dma2 semaphore(%132 : memref<!tpu.dma_semaphore, #tpu.memory_space<semaphore_mem>>) src(%134 : memref<8x2x128xf32, #tpu.memory_space<any>>) dst(%arg11 : memref<8x2x128xf32, #tpu.memory_space<vmem>>)
        tpu.yield
      }) : () -> ()
    } else {
    }
    %c0 = arith.constant 0 : index
    %c0_1 = arith.constant 0 : index
    %c0_2 = arith.constant 0 : index
    %3 = vector.load %arg11[%c0, %c0_1, %c0_2] : memref<8x2x128xf32, #tpu.memory_space<vmem>>, vector<8x2x128xf32>
    %4 = vector.shape_cast %3 : vector<8x2x128xf32> to vector<16x128xf32>
    %5 = arith.truncf %4 : vector<16x128xf32> to vector<16x128xbf16>
    %6 = arith.index_cast %arg1 : i32 to index
    %c0_3 = arith.constant 0 : index
    %c0_4 = arith.constant 0 : index
    %7 = vector.load %arg7[%6, %c0_3, %c0_4] : memref<2x1x384xf32, #tpu.memory_space<vmem>>, vector<1x1x384xf32>
    %8 = vector.shape_cast %7 : vector<1x1x384xf32> to vector<1x384xf32>
    %9 = arith.index_cast %arg1 : i32 to index
    %c0_5 = arith.constant 0 : index
    %c0_6 = arith.constant 0 : index
    %10 = vector.load %arg8[%9, %c0_5, %c0_6] : memref<2x6x128xf32, #tpu.memory_space<vmem>>, vector<1x6x128xf32>
    %11 = vector.shape_cast %10 : vector<1x6x128xf32> to vector<6x128xf32>
    %12 = vector.extract_strided_slice %11 {offsets = [0, 0], sizes = [1, 128], strides = [1, 1]} : vector<6x128xf32> to vector<1x128xf32>
    %13 = vector.extract_strided_slice %11 {offsets = [1, 0], sizes = [1, 128], strides = [1, 1]} : vector<6x128xf32> to vector<1x128xf32>
    %14 = vector.extract_strided_slice %11 {offsets = [2, 0], sizes = [1, 128], strides = [1, 1]} : vector<6x128xf32> to vector<1x128xf32>
    %15 = vector.extract_strided_slice %11 {offsets = [3, 0], sizes = [1, 128], strides = [1, 1]} : vector<6x128xf32> to vector<1x128xf32>
    %16 = vector.extract_strided_slice %11 {offsets = [4, 0], sizes = [1, 128], strides = [1, 1]} : vector<6x128xf32> to vector<1x128xf32>
    %17 = vector.extract_strided_slice %11 {offsets = [5, 0], sizes = [1, 128], strides = [1, 1]} : vector<6x128xf32> to vector<1x128xf32>
    %18 = arith.index_cast %arg1 : i32 to index
    %c0_7 = arith.constant 0 : index
    %c0_8 = arith.constant 0 : index
    %19 = vector.load %arg9[%18, %c0_7, %c0_8] : memref<2x1x256xf32, #tpu.memory_space<vmem>>, vector<1x1x256xf32>
    %20 = vector.shape_cast %19 : vector<1x1x256xf32> to vector<1x256xf32>
    %21 = arith.index_cast %arg1 : i32 to index
    %c0_9 = arith.constant 0 : index
    %c0_10 = arith.constant 0 : index
    %22 = vector.load %arg3[%21, %c0_9, %c0_10] : memref<2x128x384xbf16, #tpu.memory_space<vmem>>, vector<1x128x384xbf16>
    %23 = vector.shape_cast %22 : vector<1x128x384xbf16> to vector<128x384xbf16>
    %cst = arith.constant dense<0.000000e+00> : vector<16x384xf32>
    %24 = tpu.matmul %5, %23, %cst {dimension_numbers = #tpu.dot_dimension_numbers<[1], [0], [0], [1], [0, 0, 1, 1], [], []>} : vector<16x128xbf16>, vector<128x384xbf16>, vector<16x384xf32> -> vector<16x384xf32>
    %25 = vector.broadcast %8 : vector<1x384xf32> to vector<16x384xf32>
    %26 = arith.addf %24, %25 : vector<16x384xf32>
    %27 = arith.truncf %26 : vector<16x384xf32> to vector<16x384xbf16>
    %28 = vector.extract_strided_slice %27 {offsets = [0, 0], sizes = [16, 128], strides = [1, 1]} : vector<16x384xbf16> to vector<16x128xbf16>
    %29 = vector.extract_strided_slice %27 {offsets = [0, 128], sizes = [16, 128], strides = [1, 1]} : vector<16x384xbf16> to vector<16x128xbf16>
    %30 = vector.extract_strided_slice %27 {offsets = [0, 256], sizes = [16, 128], strides = [1, 1]} : vector<16x384xbf16> to vector<16x128xbf16>
    %31 = vector.shape_cast %28 : vector<16x128xbf16> to vector<8x2x4x32xbf16>
    %32 = tpu.transpose %31, [0, 2, 1, 3] : vector<8x2x4x32xbf16> -> vector<8x4x2x32xbf16>
    %33 = vector.shape_cast %32 : vector<8x4x2x32xbf16> to vector<32x2x32xbf16>
    %34 = vector.shape_cast %29 : vector<16x128xbf16> to vector<8x2x4x32xbf16>
    %35 = tpu.transpose %34, [0, 2, 1, 3] : vector<8x2x4x32xbf16> -> vector<8x4x2x32xbf16>
    %36 = vector.shape_cast %35 : vector<8x4x2x32xbf16> to vector<32x2x32xbf16>
    %37 = vector.shape_cast %30 : vector<16x128xbf16> to vector<8x2x4x32xbf16>
    %38 = tpu.transpose %37, [0, 2, 1, 3] : vector<8x2x4x32xbf16> -> vector<8x4x2x32xbf16>
    %39 = vector.shape_cast %38 : vector<8x4x2x32xbf16> to vector<32x2x32xbf16>
    "tpu.trace_start"() <{level = 10 : i32, message = "nbd,ncd->nbc"}> : () -> ()
    %cst_11 = arith.constant dense<0.000000e+00> : vector<32x2x2xf32>
    %40 = tpu.matmul %33, %36, %cst_11 {dimension_numbers = #tpu.dot_dimension_numbers<[2], [2], [1], [1], [0, 0, 0, 1, 1, 1], [0], [0]>} : vector<32x2x32xbf16>, vector<32x2x32xbf16>, vector<32x2x2xf32> -> vector<32x2x2xf32>
    "tpu.trace_stop"() : () -> ()
    %cst_12 = arith.constant dense<0xFF800000> : vector<32x2xf32>
    %41 = vector.multi_reduction <maximumf>, %40, %cst_12 [2] : vector<32x2x2xf32> to vector<32x2xf32>
    %42 = vector.shape_cast %41 : vector<32x2xf32> to vector<32x2x1xf32>
    %43 = vector.broadcast %42 : vector<32x2x1xf32> to vector<32x2x2xf32>
    %44 = arith.subf %40, %43 : vector<32x2x2xf32>
    %45 = math.exp %44 : vector<32x2x2xf32>
    %cst_13 = arith.constant dense<0.000000e+00> : vector<32x2xf32>
    %46 = vector.multi_reduction <add>, %45, %cst_13 [2] : vector<32x2x2xf32> to vector<32x2xf32>
    %47 = vector.shape_cast %46 : vector<32x2xf32> to vector<32x2x1xf32>
    %48 = tpu.reciprocal %47 {approx = true} : vector<32x2x1xf32> -> vector<32x2x1xf32>
    %49 = vector.broadcast %48 : vector<32x2x1xf32> to vector<32x2x2xf32>
    %50 = arith.mulf %45, %49 : vector<32x2x2xf32>
    %51 = arith.truncf %50 : vector<32x2x2xf32> to vector<32x2x2xbf16>
    "tpu.trace_start"() <{level = 10 : i32, message = "nbc,ncd->nbd"}> : () -> ()
    %cst_14 = arith.constant dense<0.000000e+00> : vector<32x2x32xf32>
    %52 = tpu.matmul %51, %39, %cst_14 {dimension_numbers = #tpu.dot_dimension_numbers<[2], [1], [1], [2], [0, 0, 0, 1, 1, 2], [0], [0]>} : vector<32x2x2xbf16>, vector<32x2x32xbf16>, vector<32x2x32xf32> -> vector<32x2x32xf32>
    "tpu.trace_stop"() : () -> ()
    %53 = vector.shape_cast %52 : vector<32x2x32xf32> to vector<8x4x2x32xf32>
    %54 = tpu.transpose %53, [0, 2, 1, 3] : vector<8x4x2x32xf32> -> vector<8x2x4x32xf32>
    %55 = vector.shape_cast %54 : vector<8x2x4x32xf32> to vector<16x128xf32>
    %56 = arith.truncf %55 : vector<16x128xf32> to vector<16x128xbf16>
    %57 = arith.index_cast %arg1 : i32 to index
    %c0_15 = arith.constant 0 : index
    %c0_16 = arith.constant 0 : index
    %58 = vector.load %arg4[%57, %c0_15, %c0_16] : memref<2x128x128xbf16, #tpu.memory_space<vmem>>, vector<1x128x128xbf16>
    %59 = vector.shape_cast %58 : vector<1x128x128xbf16> to vector<128x128xbf16>
    %cst_17 = arith.constant dense<0.000000e+00> : vector<16x128xf32>
    %60 = tpu.matmul %56, %59, %cst_17 {dimension_numbers = #tpu.dot_dimension_numbers<[1], [0], [0], [1], [0, 0, 1, 1], [], []>} : vector<16x128xbf16>, vector<128x128xbf16>, vector<16x128xf32> -> vector<16x128xf32>
    %61 = vector.broadcast %12 : vector<1x128xf32> to vector<16x128xf32>
    %62 = arith.addf %60, %61 : vector<16x128xf32>
    %63 = arith.addf %4, %62 : vector<16x128xf32>
    %cst_18 = arith.constant dense<0.000000e+00> : vector<16xf32>
    %64 = vector.multi_reduction <add>, %63, %cst_18 [1] : vector<16x128xf32> to vector<16xf32>
    %65 = vector.shape_cast %64 : vector<16xf32> to vector<16x1xf32>
    %cst_19 = arith.constant 1.280000e+02 : f32
    %66 = vector.broadcast %cst_19 : f32 to vector<16x1xf32>
    %67 = arith.divf %65, %66 : vector<16x1xf32>
    %68 = vector.broadcast %67 : vector<16x1xf32> to vector<16x128xf32>
    %69 = arith.subf %63, %68 : vector<16x128xf32>
    %70 = arith.mulf %69, %69 : vector<16x128xf32>
    %cst_20 = arith.constant dense<0.000000e+00> : vector<16xf32>
    %71 = vector.multi_reduction <add>, %70, %cst_20 [1] : vector<16x128xf32> to vector<16xf32>
    %72 = vector.shape_cast %71 : vector<16xf32> to vector<16x1xf32>
    %cst_21 = arith.constant 1.280000e+02 : f32
    %73 = vector.broadcast %cst_21 : f32 to vector<16x1xf32>
    %74 = arith.divf %72, %73 : vector<16x1xf32>
    %75 = vector.broadcast %67 : vector<16x1xf32> to vector<16x128xf32>
    %76 = arith.subf %63, %75 : vector<16x128xf32>
    %cst_22 = arith.constant 9.99999997E-7 : f32
    %77 = vector.broadcast %cst_22 : f32 to vector<16x1xf32>
    %78 = arith.addf %74, %77 : vector<16x1xf32>
    %79 = math.rsqrt %78 : vector<16x1xf32>
    %80 = vector.broadcast %79 : vector<16x1xf32> to vector<16x128xf32>
    %81 = arith.mulf %76, %80 : vector<16x128xf32>
    %82 = vector.broadcast %13 : vector<1x128xf32> to vector<16x128xf32>
    %83 = arith.mulf %81, %82 : vector<16x128xf32>
    %84 = vector.broadcast %14 : vector<1x128xf32> to vector<16x128xf32>
    %85 = arith.addf %83, %84 : vector<16x128xf32>
    %86 = arith.truncf %85 : vector<16x128xf32> to vector<16x128xbf16>
    %87 = arith.index_cast %arg1 : i32 to index
    %c0_23 = arith.constant 0 : index
    %c0_24 = arith.constant 0 : index
    %88 = vector.load %arg5[%87, %c0_23, %c0_24] : memref<2x128x256xbf16, #tpu.memory_space<vmem>>, vector<1x128x256xbf16>
    %89 = vector.shape_cast %88 : vector<1x128x256xbf16> to vector<128x256xbf16>
    %cst_25 = arith.constant dense<0.000000e+00> : vector<16x256xf32>
    %90 = tpu.matmul %86, %89, %cst_25 {dimension_numbers = #tpu.dot_dimension_numbers<[1], [0], [0], [1], [0, 0, 1, 1], [], []>} : vector<16x128xbf16>, vector<128x256xbf16>, vector<16x256xf32> -> vector<16x256xf32>
    %91 = vector.broadcast %20 : vector<1x256xf32> to vector<16x256xf32>
    %92 = arith.addf %90, %91 : vector<16x256xf32>
    %cst_26 = arith.constant 0.000000e+00 : f32
    %93 = vector.broadcast %cst_26 : f32 to vector<16x256xf32>
    %94 = arith.maximumf %92, %93 : vector<16x256xf32>
    %95 = arith.truncf %94 : vector<16x256xf32> to vector<16x256xbf16>
    %96 = arith.index_cast %arg1 : i32 to index
    %c0_27 = arith.constant 0 : index
    %c0_28 = arith.constant 0 : index
    %97 = vector.load %arg6[%96, %c0_27, %c0_28] : memref<2x256x128xbf16, #tpu.memory_space<vmem>>, vector<1x256x128xbf16>
    %98 = vector.shape_cast %97 : vector<1x256x128xbf16> to vector<256x128xbf16>
    %cst_29 = arith.constant dense<0.000000e+00> : vector<16x128xf32>
    %99 = tpu.matmul %95, %98, %cst_29 {dimension_numbers = #tpu.dot_dimension_numbers<[1], [0], [0], [1], [0, 0, 1, 1], [], []>} : vector<16x256xbf16>, vector<256x128xbf16>, vector<16x128xf32> -> vector<16x128xf32>
    %100 = vector.broadcast %15 : vector<1x128xf32> to vector<16x128xf32>
    %101 = arith.addf %99, %100 : vector<16x128xf32>
    %102 = arith.addf %85, %101 : vector<16x128xf32>
    %cst_30 = arith.constant dense<0.000000e+00> : vector<16xf32>
    %103 = vector.multi_reduction <add>, %102, %cst_30 [1] : vector<16x128xf32> to vector<16xf32>
    %104 = vector.shape_cast %103 : vector<16xf32> to vector<16x1xf32>
    %cst_31 = arith.constant 1.280000e+02 : f32
    %105 = vector.broadcast %cst_31 : f32 to vector<16x1xf32>
    %106 = arith.divf %104, %105 : vector<16x1xf32>
    %107 = vector.broadcast %106 : vector<16x1xf32> to vector<16x128xf32>
    %108 = arith.subf %102, %107 : vector<16x128xf32>
    %109 = arith.mulf %108, %108 : vector<16x128xf32>
    %cst_32 = arith.constant dense<0.000000e+00> : vector<16xf32>
    %110 = vector.multi_reduction <add>, %109, %cst_32 [1] : vector<16x128xf32> to vector<16xf32>
    %111 = vector.shape_cast %110 : vector<16xf32> to vector<16x1xf32>
    %cst_33 = arith.constant 1.280000e+02 : f32
    %112 = vector.broadcast %cst_33 : f32 to vector<16x1xf32>
    %113 = arith.divf %111, %112 : vector<16x1xf32>
    %114 = vector.broadcast %106 : vector<16x1xf32> to vector<16x128xf32>
    %115 = arith.subf %102, %114 : vector<16x128xf32>
    %cst_34 = arith.constant 9.99999997E-7 : f32
    %116 = vector.broadcast %cst_34 : f32 to vector<16x1xf32>
    %117 = arith.addf %113, %116 : vector<16x1xf32>
    %118 = math.rsqrt %117 : vector<16x1xf32>
    %119 = vector.broadcast %118 : vector<16x1xf32> to vector<16x128xf32>
    %120 = arith.mulf %115, %119 : vector<16x128xf32>
    %121 = vector.broadcast %16 : vector<1x128xf32> to vector<16x128xf32>
    %122 = arith.mulf %120, %121 : vector<16x128xf32>
    %123 = vector.broadcast %17 : vector<1x128xf32> to vector<16x128xf32>
    %124 = arith.addf %122, %123 : vector<16x128xf32>
    %125 = vector.shape_cast %124 : vector<16x128xf32> to vector<8x2x128xf32>
    %c0_35 = arith.constant 0 : index
    %c0_36 = arith.constant 0 : index
    %c0_37 = arith.constant 0 : index
    %126 = vector.load %arg11[%c0_35, %c0_36, %c0_37] : memref<8x2x128xf32, #tpu.memory_space<vmem>>, vector<8x2x128xf32>
    tpu.vector_store %arg11[%c0_35, %c0_36, %c0_37], %125 {strides = array<i32>} : memref<8x2x128xf32, #tpu.memory_space<vmem>>, vector<8x2x128xf32>,
    %c1_i32 = arith.constant 1 : i32
    %127 = arith.cmpi eq, %arg1, %c1_i32 : i32
    %128 = arith.extui %127 : i1 to i32
    %c0_i32_38 = arith.constant 0 : i32
    %129 = arith.cmpi ne, %128, %c0_i32_38 : i32
    scf.if %129 {
      %cst_39 = arith.constant dense<0.000000e+00> : vector<2x128xf32>
      %130 = vector.multi_reduction <add>, %125, %cst_39 [0] : vector<8x2x128xf32> to vector<2x128xf32>
      %131 = vector.shape_cast %130 : vector<2x128xf32> to vector<1x2x128xf32>
      %c0_40 = arith.constant 0 : index
      %c0_41 = arith.constant 0 : index
      %c0_42 = arith.constant 0 : index
      %132 = vector.load %arg10[%c0_40, %c0_41, %c0_42] : memref<1x2x128xf32, #tpu.memory_space<vmem>>, vector<1x2x128xf32>
      tpu.vector_store %arg10[%c0_40, %c0_41, %c0_42], %131 {strides = array<i32>} : memref<1x2x128xf32, #tpu.memory_space<vmem>>, vector<1x2x128xf32>,
    } else {
    }
    return
  }
  func.func @transform_1(%arg0: i32, %arg1: i32) -> (i32, i32, i32) {
    %c0_i32 = arith.constant 0 : i32
    %c0_i32_0 = arith.constant 0 : i32
    %c0_i32_1 = arith.constant 0 : i32
    %c0_i32_2 = arith.constant 0 : i32
    return %c0_i32, %c0_i32_0, %c0_i32_1 : i32, i32, i32
  }
  func.func @transform_2(%arg0: i32, %arg1: i32) -> (i32, i32, i32) {
    %c0_i32 = arith.constant 0 : i32
    %c0_i32_0 = arith.constant 0 : i32
    %c0_i32_1 = arith.constant 0 : i32
    %c0_i32_2 = arith.constant 0 : i32
    return %c0_i32, %c0_i32_0, %c0_i32_1 : i32, i32, i32
  }
  func.func @transform_3(%arg0: i32, %arg1: i32) -> (i32, i32, i32) {
    %c0_i32 = arith.constant 0 : i32
    %c0_i32_0 = arith.constant 0 : i32
    %c0_i32_1 = arith.constant 0 : i32
    %c0_i32_2 = arith.constant 0 : i32
    return %c0_i32, %c0_i32_0, %c0_i32_1 : i32, i32, i32
  }
  func.func @transform_4(%arg0: i32, %arg1: i32) -> (i32, i32, i32) {
    %c0_i32 = arith.constant 0 : i32
    %c0_i32_0 = arith.constant 0 : i32
    %c0_i32_1 = arith.constant 0 : i32
    %c0_i32_2 = arith.constant 0 : i32
    return %c0_i32, %c0_i32_0, %c0_i32_1 : i32, i32, i32
  }
  func.func @transform_5(%arg0: i32, %arg1: i32) -> (i32, i32, i32) {
    %c0_i32 = arith.constant 0 : i32
    %c0_i32_0 = arith.constant 0 : i32
    %c0_i32_1 = arith.constant 0 : i32
    %c0_i32_2 = arith.constant 0 : i32
    return %c0_i32, %c0_i32_0, %c0_i32_1 : i32, i32, i32
  }
  func.func @transform_6(%arg0: i32, %arg1: i32) -> (i32, i32, i32) {
    %c0_i32 = arith.constant 0 : i32
    %c0_i32_0 = arith.constant 0 : i32
    %c0_i32_1 = arith.constant 0 : i32
    %c0_i32_2 = arith.constant 0 : i32
    return %c0_i32, %c0_i32_0, %c0_i32_1 : i32, i32, i32
  }
  func.func @transform_7(%arg0: i32, %arg1: i32) -> (i32, i32, i32) {
    %c0_i32 = arith.constant 0 : i32
    %c0_i32_0 = arith.constant 0 : i32
    %c0_i32_1 = arith.constant 0 : i32
    %c0_i32_2 = arith.constant 0 : i32
    return %c0_i32, %c0_i32_0, %c0_i32_1 : i32, i32, i32
  }
  func.func @transform_8(%arg0: i32, %arg1: i32) -> (i32, i32, i32) {
    %c0_i32 = arith.constant 0 : i32
    %c0_i32_0 = arith.constant 0 : i32
    %c0_i32_1 = arith.constant 0 : i32
    return %arg0, %c0_i32, %c0_i32_0 : i32, i32, i32
  }
}

</mosaic_0001>

<bundles_post_ra>
// kernel: tpu_custom_call.1
= control target key start
LH: loop header
LB: loop body
LE: loop exit
PB: predicated region body
PF: predicated region fallthrough
CT: control target
= control target key end

     0   :  { %13 = vsyncpa [#allocation4], 0  ;;  %s10081_s0 = inlined_call_operand.vmem [shape: f32[8,2,128], index: 0, kind: input, shape index: {}]   ;;  %s10082_s1 = inlined_call_operand.hbm [shape: bf16[2,128,384], index: 1, kind: input, shape index: {}]   ;;  %s10083_s2 = inlined_call_operand.hbm [shape: bf16[2,128,128], index: 2, kind: input, shape index: {}]   ;;  %s10084_s3 = inlined_call_operand.hbm [shape: bf16[2,128,256], index: 3, kind: input, shape index: {}]   ;;  %s10085_s4 = inlined_call_operand.hbm [shape: bf16[2,256,128], index: 4, kind: input, shape index: {}]   ;;  %s10086_s5 = inlined_call_operand.vmem [shape: f32[2,1,384], index: 5, kind: input, shape index: {}]   ;;  %s10087_s6 = inlined_call_operand.vmem [shape: f32[2,6,128], index: 6, kind: input, shape index: {}]   ;;  %s10088_s7 = inlined_call_operand.vmem [shape: f32[2,1,256], index: 7, kind: input, shape index: {}]   ;;  %s10089_s8 = inlined_call_operand.hbm [shape: f32[1,2,128], index: 8, kind: output, shape index: {}]  }
   0x1   :  { %14 = vsyncpa [#allocation7], 0 }
   0x2   :  { %15 = vsyncpa [#allocation10], 0 }
   0x3   :  { %16 = vsyncpa [#allocation5], 0  ;;  %s8273_s27 = smov 0   ;;  %s8275_s28 = smov 0  }
   0x4   :  { %s8277_s29 = smov 0  }
   0x5 LB: > { %s8205_s30 = smov [#allocation6]   ;;  %s10092_s10 = sadd.s32 4294967295, %s8203_s29   ;;  %s8203_s29 = sphi %s8277_s29, %s22_s29   ;;  %s8199_s28 = sphi %s8275_s28, %s10161_s28   ;;  %s8195_s27 = sphi %s8273_s27, %s10160_s27  }
   0x6   : > { %s237_s9 = sshll.u32 %s8205_s30, 4  ;;  %p6944_p0 = scmp.ge.s32.totalorder %s8203_s29, 1  ;;  %s8297_s9 = int_to_ptr.vmem [resolvable:$true] %s237_s9 }
   0x7   : > { %p212_p1 = scmp.lt.s32.totalorder %s8203_s29, 3  ;;  %p8293_p2 = scmp.eq.s32.totalorder %s10092_s10, 0 }
   0x8   : > { %s31_s14 = sadd.s32 1, %s8199_s28  ;;  %s8206_s16 = smov [#allocation3]  }
   0x9   : > { %s10118_s11 = scalar_select %p8293_p2, 1, 0 }
   0xa   : > { %p8299_p3 = pnand %p6944_p0, %p212_p1  ;;  %p8312_p6 = scmp.ge.s32.totalorder %s31_s14, 2 }
   0xb   : > { %s224_s17 = sshll.u32 %s8206_s16, 4  ;;  %s8025_s20 = scalar_lea.hbm %s10083_s2, 2048  ;;  %s225_s17 = int_to_ptr.vmem [resolvable:$true] %s224_s17 }
   0xc   : > { %s10119_s12 = scalar_select %p8299_p3, 1, 0 }
   0xd   : > { %p7716_p4 = pneg %p8299_p3  ;;  %p8026_p7 = scmp.ne.s32.totalorder %s10083_s2, %s8025_s20 }
   0xe   : > { %p8032_p11 = scmp.lt.u32.totalorder %s8025_s20, %s10083_s2 }
   0xf   : > { %p8307_p5 = pnand %p8293_p2, %p7716_p4 }
  0x11   : > { %p8324_p8 = pneg %p8307_p5 }
  0x13   : > { %p8028_p9 = pnand %p8324_p8, %p8026_p7 }
  0x15   : > { %p8029_p10 = pneg %p8028_p9 }
  0x17   : > { %p8034_p12 = pnand %p8032_p11, %p8029_p10 }
  0x19   : > { %8037 = shalt.err (!%p8034_p12)
}
  0x1a   : > { %s8038_s26 = scalar_lea.vmem %s8297_s9, 2048  ;;  %p8046_p4 = scmp.lt.s32.totalorder %s8297_s9, %s8297_s9 }
  0x1b   : > { %p8039_p13 = scmp.ne.s32.totalorder %s8297_s9, %s8038_s26  ;;  %p8047_p2 = scmp.lt.s32.totalorder %s8038_s26, %s8038_s26 }
  0x1d   : > { %p8041_p0 = pnand %p8039_p13, %p8324_p8  ;;  %p8048_p7 = por %p8047_p2, %p8046_p4 }
  0x1f   : > { %p8042_p1 = pneg %p8041_p0 }
  0x21   : > { %p8049_p9 = pnand %p8048_p7, %p8042_p1 }
  0x23   : > { %8052 = shalt.err (!%p8049_p9)
}
  0x24   : > { %s10094_s30 = smov 64   ;;  %s10095_s16 = smov 4  }
  0x25   : > { %7722 = dma.hbm_to_vmem [thread:$0]  (!%p8307_p5), %s10083_s2, 2048, %s8297_s9, [#allocation7], %s10094_s30, %s10094_s30, %s10095_s16  }
  0x26   : > { %s10163_s14 = smov (%p8312_p6, %s31_s14), 0  ;;  %s8053_s22 = scalar_lea.hbm %s10082_s1, 6144 }
  0x27   : > { %p8054_p2 = scmp.ne.s32.totalorder %s10082_s1, %s8053_s22  ;;  %p8060_p12 = scmp.lt.u32.totalorder %s8053_s22, %s10082_s1 }
  0x29   : > { %p8056_p10 = pnand %p8054_p2, %p8324_p8 }
  0x2b   : > { %p8057_p11 = pneg %p8056_p10 }
  0x2d   : > { %p8062_p13 = pnand %p8060_p12, %p8057_p11 }
  0x2f   : > { %8065 = shalt.err (!%p8062_p13)
}
  0x30   : > { %s8066_s9 = scalar_lea.vmem %s225_s17, 6144  ;;  %p8074_p4 = scmp.lt.s32.totalorder %s225_s17, %s225_s17 }
  0x31   : > { %p8067_p6 = scmp.ne.s32.totalorder %s225_s17, %s8066_s9  ;;  %p8075_p7 = scmp.lt.s32.totalorder %s8066_s9, %s8066_s9 }
  0x33   : > { %p8069_p0 = pnand %p8067_p6, %p8324_p8  ;;  %p8076_p9 = por %p8075_p7, %p8074_p4 }
  0x35   : > { %p8070_p1 = pneg %p8069_p0 }
  0x37   : > { %p8077_p3 = pnand %p8076_p9, %p8070_p1 }
  0x39   : > { %8080 = shalt.err (!%p8077_p3)
}
  0x3a   : > { %s8209_s15 = smov 192   ;;  %s8210_s18 = smov 12  }
  0x3b   : > { %7719 = dma.hbm_to_vmem [thread:$0]  (!%p8307_p5), %s10082_s1, 6144, %s225_s17, [#allocation4], %s8209_s15, %s8209_s15, %s8210_s18  }
  0x3c   : > { %s8211_s20 = smov [#allocation8]   ;;  %s8081_s25 = scalar_lea.hbm %s10084_s3, 4096 }
  0x3d   : > { %s250_s21 = sshll.u32 %s8211_s20, 4  ;;  %p8082_p3 = scmp.ne.s32.totalorder %s10084_s3, %s8081_s25  ;;  %s251_s21 = int_to_ptr.vmem [resolvable:$true] %s250_s21 }
  0x3e   : > { %p8088_p11 = scmp.lt.u32.totalorder %s8081_s25, %s10084_s3 }
  0x3f   : > { %p8084_p2 = pnand %p8082_p3, %p8324_p8 }
  0x41   : > { %p8085_p10 = pneg %p8084_p2 }
  0x43   : > { %p8090_p12 = pnand %p8088_p11, %p8085_p10 }
  0x45   : > { %8093 = shalt.err (!%p8090_p12)
}
  0x46   : > { %s8094_s17 = scalar_lea.vmem %s251_s21, 4096  ;;  %p8102_p1 = scmp.lt.s32.totalorder %s251_s21, %s251_s21 }
  0x47   : > { %p8095_p13 = scmp.ne.s32.totalorder %s251_s21, %s8094_s17  ;;  %p8103_p4 = scmp.lt.s32.totalorder %s8094_s17, %s8094_s17 }
  0x49   : > { %p8097_p6 = pnand %p8095_p13, %p8324_p8  ;;  %p8104_p7 = por %p8103_p4, %p8102_p1 }
  0x4b   : > { %p8098_p0 = pneg %p8097_p6 }
  0x4d   : > { %p8105_p9 = pnand %p8104_p7, %p8098_p0 }
  0x4f   : > { %8108 = shalt.err (!%p8105_p9)
}
  0x50   : > { %s8212_s15 = smov 128   ;;  %s8213_s18 = smov 8  }
  0x51   : > { %7725 = dma.hbm_to_vmem [thread:$0]  (!%p8307_p5), %s10084_s3, 4096, %s251_s21, [#allocation7], %s8212_s15, %s8212_s15, %s8213_s18  }
  0x52   : > { %s8214_s10 = smov [#allocation9]   ;;  %s8109_s24 = scalar_lea.hbm %s10085_s4, 4096 }
  0x53   : > { %s263_s19 = sshll.u32 %s8214_s10, 4  ;;  %p8110_p3 = scmp.ne.s32.totalorder %s10085_s4, %s8109_s24  ;;  %s264_s19 = int_to_ptr.vmem [resolvable:$true] %s263_s19 }
  0x54   : > { %p8116_p11 = scmp.lt.u32.totalorder %s8109_s24, %s10085_s4 }
  0x55   : > { %p8112_p2 = pnand %p8110_p3, %p8324_p8 }
  0x57   : > { %p8113_p10 = pneg %p8112_p2 }
  0x59   : > { %p8118_p12 = pnand %p8116_p11, %p8113_p10 }
  0x5b   : > { %8121 = shalt.err (!%p8118_p12)
}
  0x5c   : > { %s8122_s21 = scalar_lea.vmem %s264_s19, 4096  ;;  %p8130_p1 = scmp.lt.s32.totalorder %s264_s19, %s264_s19 }
  0x5d   : > { %p8123_p13 = scmp.ne.s32.totalorder %s264_s19, %s8122_s21  ;;  %p8131_p4 = scmp.lt.s32.totalorder %s8122_s21, %s8122_s21 }
  0x5f   : > { %p8125_p6 = pnand %p8123_p13, %p8324_p8  ;;  %p8132_p7 = por %p8131_p4, %p8130_p1 }
  0x61   : > { %p8126_p0 = pneg %p8125_p6 }
  0x63   : > { %p8133_p9 = pnand %p8132_p7, %p8126_p0 }
  0x65   : > { %8136 = shalt.err (!%p8133_p9)
}
  0x66   : > { %s10123_s15 = smov 4   ;;  %s10124_s18 = smov 64  }
  0x67   : > { %7728 = dma.hbm_to_vmem [thread:$0]  (!%p8307_p5), %s10085_s4, 4096, %s264_s19, [#allocation10], %s10124_s18, %s10124_s18, %s10123_s15  }
  0x68   : > { %p10125_p3 = scmp.ne.s32.totalorder %s10119_s12, 0 }
  0x6a   : > { %288 = sbr.rel (%p10125_p3) target bundleno = 3031 (0xbd7), region = 48 }
  0x71   : > { %p10126_p8 = scmp.ne.s32.totalorder %s10118_s11, 0 }
  0x73   : > { %8176 = dma.done.wait (%p10126_p8), [#allocation4], 6144  }
  0x74   : > { %8178 = vsyncadd (%p10126_p8), [#allocation4], 4294961152 }
  0x75   : > { %8180 = dma.done.wait (%p10126_p8), [#allocation7], 6144  }
  0x76   : > { %8182 = vsyncadd (%p10126_p8), [#allocation7], 4294961152 }
  0x77   : > { %8184 = dma.done.wait (%p10126_p8), [#allocation10], 4096  }
  0x78   : > { %8186 = vsyncadd (%p10126_p8), [#allocation10], 4294963200  ;;  %p6954_p5 = scmp.ne.s32.totalorder %s8195_s27, 0 }
  0x7a   : > { %326 = sbr.rel (%p6954_p5) target bundleno = 134 (0x86), region = 68 }
  0x81   : > { %v362_v0 = vld [vmem:[%s10081_s0] sm:$0xff]  ;;  %v364_v1 = vld [vmem:[%s10081_s0 + $0x8] sm:$0xff] }
  0x82   : > { %363 = vst [vmem:[#allocation2] sm:$0xff] %v362_v0  ;;  %365 = vst [vmem:[#allocation2 + $0x8] sm:$0xff] %v364_v1 }
  0x83   : > { %373 = vsyncadd [#allocation12], 256 }
  0x84   : > { %8187 = dma.done.wait [#allocation12], 256 }
  0x85   : > { %8188 = vsyncadd [#allocation12], 4294967040 }
  0x86 PF: > { %s7100_s11 = smul.u32 192, %s8195_s27  ;;  %v10114_v2 = vmov 0   ;;  %v10097_v6 = vmov 0.0   ;;  %vm8217_vm0 = vmmov 0   ;;  %v399_v9 = vlaneseq  ;;  %s8219_s26 = smov 32  }
  0x87   : > { %651 = vmatprep.mubr.bf16.mxu0 %v10114_v2  ;;  %7272 = vmatprep.subr.bf16.mxu1 %v10097_v6  ;;  %v8218_v13 = vmov 1983009808   ;;  %s431_s20 = smul.u32 3, %s8195_s27  ;;  %s8220_s9 = smov 96   ;;  %vm1849_vm1 = vcmask 261120   ;;  %vm3322_vm2 = vcmask 9216  }
  0x88   : > { %s8432_s19 = scalar_lea.vmem [#allocation3], %s7100_s11  ;;  %7288 = vmatprep.mubr.msk.bf16.mxu1 %vm8217_vm0, %v10097_v6  ;;  %v397_v14 = vunpack.c.l.s4 %v8218_v13  ;;  %v8445_v15 = vshrl.u32 %v399_v9, 7  ;;  %s8221_s17 = smov 64   ;;  %vm3711_vm3 = vcmask 1040384   ;;  %vm3707_vm4 = vcmask 15360  }
  0x89   : > { %v7801_v3 = vld [vmem:[%s8432_s19 + $0x4] ss:$12 sps:$4 sm:$0xff]   ;;  %v7803_v4 = vld [vmem:[%s8432_s19] ss:$12 sps:$4 sm:$0xff]   ;;  %v7804_v5 = vld [vmem:[%s8432_s19 + $0x1c] ss:$12 sps:$4 sm:$0xff]   ;;  %s432_s25 = scalar_lea.vmem %s10086_s5, %s431_s20 }
  0x8a   : > { %619 = vmatprep.subr.bf16.mxu0 %v7801_v3  ;;  %v7806_v7 = vld [vmem:[%s8432_s19 + $0x18] ss:$12 sps:$4 sm:$0xff]   ;;  %v7807_v8 = vld [vmem:[%s8432_s19 + $0x34] ss:$12 sps:$4 sm:$0xff]   ;;  %v7809_v10 = vld [vmem:[%s8432_s19 + $0x30] ss:$12 sps:$4 sm:$0xff]   ;;  %v398_v27 = vunpack.c.0.s8 %v397_v14 }
  0x8b   : > { %620 = vmatpush1.bf16.msra.mxu0 %v7803_v4  ;;  %v7810_v11 = vld [vmem:[%s8432_s19 + $0x4c] ss:$12 sps:$4 sm:$0xff]   ;;  %v7812_v12 = vld [vmem:[%s8432_s19 + $0x48] ss:$12 sps:$4 sm:$0xff]   ;;  %10127 = vst [vmem:[#allocation19_spill] sm:$0xff] %v8445_v15  ;;  %v8488_v53 = vsub.s32 0, %v8445_v15 }
  0x8c   : > { %621 = vmatprep.subr.bf16.mxu0 %v7804_v5  ;;  %v7825_v16 = vld [vmem:[%s8432_s19 + $0x8] ss:$12 sps:$4 sm:$0xff]   ;;  %v7813_v17 = vld [vmem:[%s8432_s19 + $0x64] ss:$12 sps:$4 sm:$0xff]   ;;  %v378_v18 = vld [vmem:[#allocation2] sm:$0x3]  ;;  %v8455_v33 = vsub.s32 %v398_v27, %v8445_v15 }
  0x8d   : > { %v379_v19 = vld [vmem:[#allocation2 + $0x2] sm:$0x3]  ;;  %v380_v20 = vld [vmem:[#allocation2 + $0x4] sm:$0x3]  ;;  %v381_v21 = vld [vmem:[#allocation2 + $0x6] sm:$0x3]  ;;  %7273 = vmatpush3.bf16.msra.mxu1 %v7825_v16 }
  0x8e   : > { %v382_v22 = vld [vmem:[#allocation2 + $0x8] sm:$0x3]  ;;  %v383_v23 = vld [vmem:[#allocation2 + $0xa] sm:$0x3]  ;;  %v384_v24 = vld [vmem:[#allocation2 + $0xc] sm:$0x3]  ;;  %7274 = vmatprep.subr.bf16.mxu1 %v10097_v6  ;;  %v394_v30 = vcombine.low %v378_v18, %v379_v19  ;;  %v395_v32 = vcombine.low %v380_v20, %v381_v21 }
  0x8f   : > { %622 = vmatpush1.bf16.msra.mxu0 %v7806_v7  ;;  %v7826_v25 = vld [vmem:[%s8432_s19 + $0x20] ss:$12 sps:$4 sm:$0xff]   ;;  %v7816_v29 = vld [vmem:[%s8432_s19 + $0x7c] ss:$12 sps:$4 sm:$0xff]   ;;  %v7827_v31 = vld [vmem:[%s8432_s19 + $0x38] ss:$12 sps:$4 sm:$0xff]   ;;  %v411_v34 = vcombine.low %v382_v22, %v383_v23 }
  0x90   : > { %623 = vmatprep.subr.bf16.mxu0 %v7807_v8  ;;  %v7815_v26 = vld [vmem:[%s8432_s19 + $0x60] ss:$12 sps:$4 sm:$0xff]   ;;  %10128 = vst [vmem:[#allocation20_spill] sm:$0xff] %v8455_v33  ;;  %v7818_v36 = vld [vmem:[%s8432_s19 + $0x78] ss:$12 sps:$4 sm:$0xff]   ;;  %v402_v39 = vrot.slane %v394_v30, %v8455_v33  ;;  %v409_v40 = vrot.slane %v395_v32, %v8455_v33  ;;  %10129 = vst [vmem:[#allocation21_spill] sm:$0xff] %v8488_v53 }
  0x91   : > { %v385_v28 = vld [vmem:[#allocation2 + $0xe] sm:$0x3]  ;;  %7275 = vmatpush3.bf16.msra.mxu1 %v7826_v25  ;;  %v7819_v37 = vld [vmem:[%s8432_s19 + $0x94] ss:$12 sps:$4 sm:$0xff]   ;;  %v7828_v38 = vld [vmem:[%s8432_s19 + $0x50] ss:$12 sps:$4 sm:$0xff]   ;;  %v419_v41 = vrot.slane %v411_v34, %v8455_v33 }
  0x92   : > { %v412_v35 = vcombine.low %v384_v24, %v385_v28  ;;  %7276 = vmatprep.subr.bf16.mxu1 %v10097_v6  ;;  %v7821_v43 = vld [vmem:[%s8432_s19 + $0x90] ss:$12 sps:$4 sm:$0xff]   ;;  %v7822_v44 = vld [vmem:[%s8432_s19 + $0xac] ss:$12 sps:$4 sm:$0xff]   ;;  %v7829_v45 = vld [vmem:[%s8432_s19 + $0x68] ss:$12 sps:$4 sm:$0xff]   ;;  %v410_v46 = vcombine.low %v402_v39, %v409_v40 }
  0x93   : > { %624 = vmatpush1.bf16.msra.mxu0 %v7809_v10  ;;  %v7824_v48 = vld [vmem:[%s8432_s19 + $0xa8] ss:$12 sps:$4 sm:$0xff]   ;;  %v7830_v49 = vld [vmem:[%s8432_s19 + $0x80] ss:$12 sps:$4 sm:$0xff]   ;;  %v7831_v51 = vld [vmem:[%s8432_s19 + $0x98] ss:$12 sps:$4 sm:$0xff]  }
  0x94   : > { %625 = vmatprep.subr.bf16.mxu0 %v7810_v11  ;;  %v426_v42 = vrot.slane %v412_v35, %v8455_v33  ;;  %v7832_v52 = vld [vmem:[%s8432_s19 + $0xb0] ss:$12 sps:$4 sm:$0xff]   ;;  %v433_v54 = vld [vmem:[%s432_s25] sm:$0x7]  ;;  %v8491_v55 = vsub.s32 1, %v8445_v15  ;;  %v10096_v5 = vsub.s32 2, %v8445_v15 }
  0x95   : > { %7277 = vmatpush3.bf16.msra.mxu1 %v7827_v31  ;;  %v479_v56 = vrot.slane %v433_v54, %v8488_v53  ;;  %v8222_v16 = vmov 1934713408   ;;  %s7101_s21 = sshll.u32 %s8195_s27, 6  ;;  %vm5543_vm5 = vcmask 523264   ;;  %vm5546_vm6 = vcmask 785408   ;;  %s6955_s18 = sshll.u32 %s8195_s27, 3 }
  0x96   : > { %7278 = vmatprep.subr.bf16.mxu1 %v10097_v6  ;;  %v427_v47 = vcombine.low %v419_v41, %v426_v42  ;;  %10130 = vst [vmem:[#allocation22_spill] sm:$0xff] %v8491_v55  ;;  %v483_v58 = vrot.slane %v433_v54, %v8491_v55  ;;  %v487_v9 = vrot.slane %v433_v54, %v10096_v5  ;;  %s9777_s15 = scalar_lea.vmem [#allocation6], %s7101_s21  ;;  %s435_s12 = scalar_lea.vmem %s10087_s6, %s6955_s18 }
  0x97   : > { %626 = vmatpush1.bf16.msra.mxu0 %v7812_v12  ;;  %s7102_s13 = sshll.u32 %s8195_s27, 7  ;;  %s6956_s11 = sshll.u32 %s8195_s27, 1 }
  0x98   : > { %627 = vmatprep.subr.bf16.mxu0 %v7813_v17  ;;  %v430_v50 = vpack.c.bf16 %v427_v47, %v410_v46  ;;  %v768_v17 = vunpack.c.l.s4 %v8222_v16  ;;  %s9902_s23 = scalar_lea.vmem [#allocation8], %s7102_s13  ;;  %s9912_s10 = scalar_lea.vmem [#allocation9], %s7102_s13 }
  0x99   : > { %7279 = vmatpush3.bf16.msra.mxu1 %v7828_v38  ;;  %s438_s22 = scalar_lea.vmem %s10088_s7, %s6956_s11  ;;  %p7095_p2 = scmp.ne.s32.totalorder %s8195_s27, 1 }
  0x9a   : > { %7280 = vmatprep.subr.bf16.mxu1 %v10097_v6  ;;  %v769_v22 = vunpack.c.0.s8 %v768_v17  ;;  %vm6814_vm7 = vcmask (!%p7095_p2), 1041408  }
  0x9b   : > { %628 = vmatpush1.bf16.msra.mxu0 %v7815_v26 }
  0x9c   : > { %629 = vmatprep.subr.bf16.mxu0 %v7816_v29  ;;  %v8517_v30 = vsub.s32 %v769_v22, %v8445_v15  ;;  %v10139_v15 = vmov 0.0  }
  0x9d   : > { %7281 = vmatpush3.bf16.msra.mxu1 %v7829_v45 }
  0x9e   : > { %7282 = vmatprep.subr.bf16.mxu1 %v10097_v6  ;;  %10131 = vst [vmem:[#allocation23_spill] sm:$0xff] %v8517_v30 }
  0x9f   : > { %630 = vmatpush1.bf16.msra.mxu0 %v7818_v36 }
  0xa0   : > { %631 = vmatprep.subr.bf16.mxu0 %v7819_v37 }
  0xa1   : > { %7283 = vmatpush3.bf16.msra.mxu1 %v7830_v49 }
  0xa2   : > { %7284 = vmatprep.subr.bf16.mxu1 %v10097_v6 }
  0xa3   : > { %632 = vmatpush1.bf16.msra.mxu0 %v7821_v43 }
  0xa4   : > { %633 = vmatprep.subr.bf16.mxu0 %v7822_v44 }
  0xa5   : > { %7285 = vmatpush3.bf16.msra.mxu1 %v7831_v51 }
  0xa6   : > { %7286 = vmatprep.subr.bf16.mxu1 %v10097_v6 }
  0xa7   : > { %634 = vmatpush1.bf16.msra.mxu0 %v7824_v48 }
  0xa8   : > { %7316 = vmatprep.subr.bf16.mxu0 %v10097_v6 }
  0xa9   : > { %7287 = vmatpush3.bf16.msra.mxu1 %v7832_v52 }
  0xaa   : > { %652 = vmatmul.mubr.bf16.vlgmr.msra.gmra.mrb[0].mxu0 %v430_v50  ;;  %7292 = vmatprep.subr.bf16.mxu1 %v10097_v6 }
  0xab   : > { %7318 = vmatprep.mubr.msk.bf16.mxu0 %vm8217_vm0, %v10097_v6 }
  0xac   : > { %7289 = vmatmul.mubr.bf16.vlgmr.msra.gmra.mrb[0].mxu1 %v430_v50 }
  0xad   : > { %7294 = vmatprep.mubr.msk.bf16.mxu1 %vm8217_vm0, %v10097_v6 }
 0x17d   : > { %v653_v57 = vpop.f32.mrb[0].mxu0 }
 0x17e   : > { %v655_v59 = vpop.f32.mrb[1].mxu0  ;;  %v654_v61 = vadd.f32 %v653_v57, %v479_v56 }
 0x17f   : > { %v657_v60 = vpop.f32.mrb[2].mxu0  ;;  %v656_v0 = vadd.f32 %v655_v59, %v483_v58  ;;  %v696_v7 = vpop.f32.mrb[0].mxu1 }
 0x180   : > { %v658_v62 = vadd.f32 %v657_v60, %v479_v56  ;;  %v659_v63 = vpop.f32.mrb[3].mxu0  ;;  %v7290_v8 = vpop.f32.mrb[1].mxu1  ;;  %v697_v12 = vadd.f32 %v696_v7, %v487_v9 }
 0x181   : > { %v660_v1 = vadd.f32 %v659_v63, %v483_v58  ;;  %v699_v10 = vpop.f32.mrb[2].mxu1 }
 0x182   : > { %v703_v3 = vpack.c.bf16 %v658_v62, %v654_v61  ;;  %v7291_v11 = vpop.f32.mrb[3].mxu1  ;;  %v700_v13 = vadd.f32 %v699_v10, %v487_v9 }
 0x183   : > { %v704_v4 = vpack.c.bf16 %v660_v1, %v656_v0 }
 0x184   : > { %v8504_v14 = vpack.c.bf16 %v700_v13, %v697_v12  ;;  %v717_v48 = vshrl.u32 %v703_v3, 16 }
 0x185   : > { %1096 = vrot.lane.b32.xlu1 %v704_v4, %s8219_s26  ;;  %1092 = vrot.lane.b32.xlu0 %v704_v4, %s8220_s9  ;;  %v1102_v23 = vshrl.u32 %v704_v4, 16 }
 0x189   : > { %1094 = vrot.lane.b32.xlu0 %v704_v4, %s8221_s17  ;;  %707 = vrot.lane.b32.xlu1 %v703_v3, %s8220_s9 }
 0x18d   : > { %709 = vrot.lane.b32.xlu0 %v703_v3, %s8221_s17  ;;  %711 = vrot.lane.b32.xlu1 %v703_v3, %s8219_s26 }
 0x191   : > { %1471 = vrot.lane.b32.xlu1 %v8504_v14, %s8220_s9 }
 0x1f7   : > { %v1093_v18 = vpop.permute.xlu0 %1092  ;;  %v1097_v19 = vpop.permute.xlu1 %1096 }
 0x1f8   : > { %v1103_v20 = vshrl.u32 %v1093_v18, 16  ;;  %v8508_v21 = vpack.i.b16 %v1093_v18, %v704_v4  ;;  %v1111_v26 = vshrl.u32 %v1097_v19, 16 }
 0x1fa   : > { %v8512_v27 = vpack.i.b16 %v1103_v20, %v1102_v23  ;;  %v1121_v29 = vrot.slane %v8508_v21, %v8455_v33 }
 0x1fb   : > { %v1095_v24 = vpop.permute.xlu0 %1094  ;;  %v708_v34 = vpop.permute.xlu1 %707 }
 0x1fc   : > { %v8510_v25 = vpack.i.b16 %v1097_v19, %v1095_v24  ;;  %v1110_v28 = vshrl.u32 %v1095_v24, 16  ;;  %v1183_v36 = vrot.slane %v8512_v27, %v8455_v33  ;;  %v718_v43 = vshrl.u32 %v708_v34, 16 }
 0x1fd   : > { %v8530_v45 = vpack.i.b16 %v708_v34, %v703_v3 }
 0x1fe   : > { %v1136_v31 = vrot.slane %v8510_v25, %v8455_v33  ;;  %v8521_v32 = vpack.i.b16 %v1111_v26, %v1110_v28  ;;  %v8537_v54 = vpack.i.b16 %v718_v43, %v717_v48 }
 0x1ff   : > { %v710_v40 = vpop.permute.xlu0 %709  ;;  %v712_v44 = vpop.permute.xlu1 %711  ;;  %v8547_v58 = vrot.slane %v8530_v45, %v8455_v33 }
 0x200   : > { %v1144_v35 = vcombine.low %v1121_v29, %v1136_v31  ;;  %v1198_v37 = vrot.slane %v8521_v32, %v8455_v33  ;;  %v725_v46 = vshrl.u32 %v710_v40, 16  ;;  %v8534_v50 = vpack.i.b16 %v712_v44, %v710_v40 }
 0x201   : > { %v726_v51 = vshrl.u32 %v712_v44, 16  ;;  %v804_v0 = vrot.slane %v8537_v54, %v8455_v33  ;;  %v1145_v18 = vcombine.high %v1121_v29, %v1136_v31 }
 0x202   : > { %v1152_v38 = vrot.slane %v1144_v35, %v8517_v30  ;;  %v1206_v39 = vcombine.low %v1183_v36, %v1198_v37  ;;  %v757_v60 = vrot.slane %v8534_v50, %v8455_v33  ;;  %v1207_v12 = vcombine.high %v1183_v36, %v1198_v37 }
 0x203   : > { %v8549_v59 = vpack.i.b16 %v726_v51, %v725_v46  ;;  %v1159_v34 = vrot.slane %v1145_v18, %v8517_v30 }
 0x204   : > { %v1214_v41 = vrot.slane %v1206_v39, %v8517_v30  ;;  %v1254_v42 = vcombine.high %v1152_v38, %v10114_v2  ;;  %v1244_v49 = vrot.slane %v1152_v38, %v8517_v30  ;;  %v765_v63 = vcombine.low %v8547_v58, %v757_v60 }
 0x205   : > { %v819_v1 = vrot.slane %v8549_v59, %v8455_v33  ;;  %v1221_v26 = vrot.slane %v1207_v12, %v8517_v30  ;;  %v766_v48 = vcombine.high %v8547_v58, %v757_v60  ;;  %v1288_v18 = vcombine.high %v1159_v34, %v10114_v2 }
 0x206   : > { %v1263_v47 = vcombine.high %v1214_v41, %v10114_v2  ;;  %v1252_v52 = vrot.slane %v1214_v41, %v8517_v30  ;;  %v8540_v56 = vrot.slane %v1254_v42, %v8517_v30  ;;  %v773_v7 = vrot.slane %v765_v63, %v8517_v30 }
 0x207   : > { %v827_v8 = vcombine.low %v804_v0, %v819_v1  ;;  %v1377_v17 = vshrl.u32 %v1244_v49, 16  ;;  %v8598_v39 = vrot.slane %v1221_v26, %v8517_v30  ;;  %v1245_v41 = vcombine.high %v1244_v49, %v10114_v2 }
 0x208   : > { %v8543_v57 = vrot.slane %v1263_v47, %v8517_v30  ;;  %v1376_v61 = vpack.i.b16 %v1252_v52, %v1244_v49  ;;  %v875_v10 = vcombine.high %v773_v7, %v10114_v2  ;;  %v1378_v11 = vshrl.u32 %v1252_v52, 16 }
 0x209   : > { %v835_v9 = vrot.slane %v827_v8, %v8517_v30  ;;  %v865_v20 = vrot.slane %v773_v7, %v8517_v30  ;;  %v8583_v28 = vcombine.high %v8540_v56, %v10114_v2  ;;  %v1253_v37 = vcombine.high %v1252_v52, %v10114_v2 }
 0x20a   : > { %v1388_v62 = vpack.i.b16 %v8543_v57, %v8540_v56  ;;  %v1854_v3 = vsel %vm1849_vm1, %v1376_v61, 0  ;;  %v8571_v19 = vcombine.high %v8543_v57, %v10114_v2  ;;  %v8575_v22 = vrot.slane %v875_v10, %v8517_v30 }
 0x20b   : > { %7293 = vmatpush3.bf16.xpose.msra.mxu1 %v1854_v3  ;;  %v873_v13 = vrot.slane %v835_v9, %v8517_v30  ;;  %v884_v16 = vcombine.high %v835_v9, %v10114_v2  ;;  %v1379_v24 = vpack.i.b16 %v1378_v11, %v1377_v17  ;;  %v8603_v42 = vrot.slane %v1159_v34, %v8517_v30 }
 0x20c   : > { %v2038_v4 = vsel %vm1849_vm1, %v1388_v62, 0  ;;  %7298 = vmatprep.subr.bf16.mxu1 %v10097_v6  ;;  %v1394_v35 = vpack.i.b16 %v8571_v19, %v8583_v28  ;;  %v828_v43 = vcombine.high %v804_v0, %v819_v1  ;;  %v998_v46 = vshrl.u32 %v865_v20, 16 }
 0x20d   : > { %7317 = vmatpush3.bf16.xpose.msra.mxu0 %v2038_v4  ;;  %v8578_v23 = vrot.slane %v884_v16, %v8517_v30  ;;  %v997_v29 = vpack.i.b16 %v873_v13, %v865_v20  ;;  %v1900_v36 = vsel %vm1849_vm1, %v1379_v24, 0  ;;  %v999_v40 = vshrl.u32 %v873_v13, 16 }
 0x20e   : > { %7328 = vmatprep.subr.bf16.mxu0 %v10097_v6  ;;  %v2130_v38 = vsel %vm1849_vm1, %v1394_v35, 0  ;;  %v1382_v47 = vpack.i.b16 %v1253_v37, %v1245_v41  ;;  %v8615_v49 = vcombine.high %v8575_v22, %v10114_v2  ;;  %v1400_v51 = vpack.i.b16 %v8598_v39, %v8603_v42 }
 0x20f   : > { %v1009_v31 = vpack.i.b16 %v8578_v23, %v8575_v22  ;;  %v8609_v44 = vcombine.high %v8578_v23, %v10114_v2  ;;  %v1000_v52 = vpack.i.b16 %v999_v40, %v998_v46  ;;  %v842_v61 = vrot.slane %v828_v43, %v8517_v30 }
 0x210   : > { %v1946_v63 = vsel %vm1849_vm1, %v1382_v47, 0  ;;  %v1384_v0 = vshrl.u32 %v1253_v37, 16  ;;  %v780_v58 = vrot.slane %v766_v48, %v8517_v30  ;;  %v2222_v60 = vsel %vm1849_vm1, %v1400_v51, 0 }
 0x211   : > { %v1015_v62 = vpack.i.b16 %v8609_v44, %v8615_v49  ;;  %v8629_v1 = vcombine.high %v8598_v39, %v10114_v2  ;;  %v874_v3 = vcombine.high %v873_v13, %v10114_v2  ;;  %v1383_v4 = vshrl.u32 %v1245_v41, 16 }
 0x212   : > { %7295 = vmatmul.mubr.msk.bf16.vlgmr.msra.gmra.mrb[4].mxu1 %vm1849_vm1, %v997_v29  ;;  %v8635_v7 = vrot.slane %v842_v61, %v8517_v30  ;;  %v8642_v8 = vcombine.high %v8603_v42, %v10114_v2  ;;  %v866_v9 = vcombine.high %v865_v20, %v10114_v2  ;;  %v1297_v11 = vcombine.high %v1221_v26, %v10114_v2 }
 0x213   : > { %7299 = vmatpush3.bf16.xpose.msra.mxu1 %v1900_v36  ;;  %7300 = vmatprep.mubr.msk.bf16.mxu1 %vm8217_vm0, %v10097_v6  ;;  %v1385_v10 = vpack.i.b16 %v1384_v0, %v1383_v4  ;;  %v8648_v12 = vrot.slane %v780_v58, %v8517_v30  ;;  %v8654_v17 = vpack.i.b16 %v10114_v2, %v10114_v2  ;;  %v1390_v26 = vshrl.u32 %v8543_v57, 16 }
 0x214   : > { %7319 = vmatmul.mubr.msk.bf16.vlgmr.msra.gmra.mrb[4].mxu0 %vm1849_vm1, %v1009_v31  ;;  %7304 = vmatprep.subr.bf16.mxu1 %v10097_v6  ;;  %v1406_v13 = vpack.i.b16 %v8629_v1, %v8642_v8  ;;  %v1003_v16 = vpack.i.b16 %v874_v3, %v866_v9  ;;  %v8667_v35 = vrot.slane %v1297_v11, %v8517_v30  ;;  %v1005_v36 = vshrl.u32 %v874_v3, 16 }
 0x215   : > { %7329 = vmatpush3.bf16.xpose.msra.mxu0 %v2130_v38  ;;  %7330 = vmatprep.mubr.msk.bf16.mxu0 %vm8217_vm0, %v10097_v6  ;;  %v1021_v20 = vpack.i.b16 %v8635_v7, %v8648_v12  ;;  %v1992_v24 = vsel %vm1849_vm1, %v1385_v10, 0  ;;  %v1191_v29 = vcombine.high %v8521_v32, %v8654_v17  ;;  %v1129_v34 = vcombine.high %v8510_v25, %v8654_v17 }
 0x216   : > { %7340 = vmatprep.subr.bf16.mxu0 %v10097_v6  ;;  %v2314_v31 = vsel %vm1849_vm1, %v1406_v13, 0  ;;  %v1389_v57 = vshrl.u32 %v8540_v56, 16  ;;  %v1176_v32 = vcombine.high %v8512_v27, %v8654_v17  ;;  %v8681_v37 = vcombine.high %v8635_v7, %v10114_v2 }
 0x217   : > { %v8684_v25 = vrot.slane %v1288_v18, %v8517_v30  ;;  %v1114_v38 = vcombine.high %v8508_v21, %v8654_v17  ;;  %v1004_v40 = vshrl.u32 %v866_v9, 16  ;;  %v8690_v27 = vrot.slane %v1191_v29, %v8455_v33 }
 0x218   : > { %v1391_v56 = vpack.i.b16 %v1390_v26, %v1389_v57  ;;  %v8694_v41 = vcombine.high %v8648_v12, %v10114_v2  ;;  %v8699_v46 = vrot.slane %v1129_v34, %v8455_v33  ;;  %v8702_v21 = vrot.slane %v1176_v32, %v8455_v33 }
 0x219   : > { %v1412_v43 = vpack.i.b16 %v8667_v35, %v8684_v25  ;;  %v1006_v47 = vpack.i.b16 %v1005_v36, %v1004_v40  ;;  %v918_v48 = vcombine.high %v842_v61, %v10114_v2  ;;  %v8720_v3 = vcombine.high %v8667_v35, %v10114_v2 }
 0x21a   : > { %7301 = vmatmul.mubr.msk.bf16.vlgmr.msra.gmra.mrb[8].mxu1 %vm1849_vm1, %v1000_v52  ;;  %v1027_v51 = vpack.i.b16 %v8681_v37, %v8694_v41  ;;  %v8708_v52 = vrot.slane %v1114_v38, %v8455_v33  ;;  %v1222_v0 = vcombine.low %v8702_v21, %v8690_v27  ;;  %v812_v9 = vcombine.high %v8549_v59, %v8654_v17 }
 0x21b   : > { %7305 = vmatpush3.bf16.xpose.msra.mxu1 %v1946_v63  ;;  %7306 = vmatprep.mubr.msk.bf16.mxu1 %vm8217_vm0, %v10097_v6  ;;  %v1396_v63 = vshrl.u32 %v8571_v19, 16  ;;  %v2406_v61 = vsel %vm1849_vm1, %v1412_v43, 0  ;;  %v1011_v19 = vshrl.u32 %v8578_v23, 16  ;;  %v8731_v10 = vrot.slane %v918_v48, %v8517_v30 }
 0x21c   : > { %7331 = vmatmul.mubr.msk.bf16.vlgmr.msra.gmra.mrb[8].mxu0 %vm1849_vm1, %v1015_v62  ;;  %7310 = vmatprep.subr.bf16.mxu1 %v10097_v6  ;;  %v2084_v62 = vsel %vm1849_vm1, %v1391_v56, 0  ;;  %v1160_v4 = vcombine.low %v8708_v52, %v8699_v46  ;;  %v8738_v11 = vcombine.high %v8684_v25, %v10114_v2  ;;  %v797_v23 = vcombine.high %v8537_v54, %v8654_v17 }
 0x21d   : > { %7341 = vmatpush3.bf16.xpose.msra.mxu0 %v2222_v60  ;;  %7342 = vmatprep.mubr.msk.bf16.mxu0 %vm8217_vm0, %v10097_v6  ;;  %v909_v60 = vcombine.high %v780_v58, %v10114_v2  ;;  %v1395_v58 = vshrl.u32 %v8583_v28, 16  ;;  %v1010_v28 = vshrl.u32 %v8575_v22, 16  ;;  %v1230_v59 = vrot.slane %v1222_v0, %v8517_v30 }
 0x21e   : > { %7352 = vmatprep.subr.bf16.mxu0 %v10097_v6  ;;  %v1168_v22 = vrot.slane %v1160_v4, %v8517_v30  ;;  %v8756_v26 = vrot.slane %v812_v9, %v8455_v33  ;;  %v8764_v34 = vrot.slane %v797_v23, %v8455_v33  ;;  %v1401_v38 = vshrl.u32 %v8603_v42, 16 }
 0x21f   : > { %v1397_v13 = vpack.i.b16 %v1396_v63, %v1395_v58  ;;  %v8748_v18 = vrot.slane %v909_v60, %v8517_v30  ;;  %v1012_v54 = vpack.i.b16 %v1011_v19, %v1010_v28  ;;  %v8772_v57 = vrot.slane %v1230_v59, %v8517_v30 }
 0x220   : > { %v843_v40 = vcombine.low %v8764_v34, %v8756_v26  ;;  %v8788_v56 = vcombine.high %v8731_v10, %v10114_v2  ;;  %v8791_v43 = vrot.slane %v1168_v22, %v8517_v30  ;;  %v1408_v60 = vshrl.u32 %v8629_v1, 16 }
 0x221   : > { %v1033_v29 = vpack.i.b16 %v8731_v10, %v8748_v18  ;;  %v8799_v48 = vcombine.high %v8748_v18, %v10114_v2  ;;  %v8814_v19 = vcombine.high %v8772_v57, %v10114_v2  ;;  %v1023_v58 = vshrl.u32 %v8635_v7, 16 }
 0x222   : > { %7307 = vmatmul.mubr.msk.bf16.vlgmr.msra.gmra.mrb[12].mxu1 %vm1849_vm1, %v1003_v16  ;;  %v750_v16 = vcombine.high %v8534_v50, %v8654_v17  ;;  %v2176_v50 = vsel %vm1849_vm1, %v1397_v13, 0  ;;  %v851_v63 = vrot.slane %v843_v40, %v8517_v30  ;;  %v1407_v9 = vshrl.u32 %v8642_v8, 16 }
 0x223   : > { %7311 = vmatpush3.bf16.xpose.msra.mxu1 %v1992_v24  ;;  %7312 = vmatprep.mubr.msk.bf16.mxu1 %vm8217_vm0, %v10097_v6  ;;  %v735_v24 = vcombine.high %v8530_v45, %v8654_v17  ;;  %v1039_v0 = vpack.i.b16 %v8788_v56, %v8799_v48  ;;  %v8828_v23 = vcombine.high %v8791_v43, %v10114_v2  ;;  %v1022_v28 = vshrl.u32 %v8648_v12, 16 }
 0x224   : > { %7343 = vmatmul.mubr.msk.bf16.vlgmr.msra.gmra.mrb[12].mxu0 %vm1849_vm1, %v1021_v20  ;;  %7322 = vmatprep.subr.bf16.mxu1 %v10097_v6  ;;  %v1418_v20 = vpack.i.b16 %v8720_v3, %v8738_v11  ;;  %v8767_v45 = vrot.slane %v750_v16, %v8455_v33  ;;  %v8821_v1 = vrot.slane %v851_v63, %v8517_v30 }
 0x225   : > { %7353 = vmatpush3.bf16.xpose.msra.mxu0 %v2314_v31  ;;  %7354 = vmatprep.mubr.msk.bf16.mxu0 %vm8217_vm0, %v10097_v6  ;;  %v1402_v31 = vshrl.u32 %v8598_v39, 16  ;;  %v8775_v32 = vrot.slane %v735_v24, %v8455_v33  ;;  %v1017_v39 = vshrl.u32 %v8609_v44, 16  ;;  %v1409_v13 = vpack.i.b16 %v1408_v60, %v1407_v9 }
 0x226   : > { %7364 = vmatprep.subr.bf16.mxu0 %v10097_v6  ;;  %v2498_v36 = vsel %vm1849_vm1, %v1418_v20, 0  ;;  %v1430_v8 = vpack.i.b16 %v8814_v19, %v8828_v23  ;;  %v1331_v16 = vcombine.high %v1230_v59, %v10114_v2  ;;  %v1024_v20 = vpack.i.b16 %v1023_v58, %v1022_v28 }
 0x227   : > { %v1403_v44 = vpack.i.b16 %v1402_v31, %v1401_v38  ;;  %v781_v42 = vcombine.low %v8775_v32, %v8767_v45  ;;  %v1322_v24 = vcombine.high %v1168_v22, %v10114_v2  ;;  %v2360_v12 = vsel %vm1849_vm1, %v1409_v13, 0 }
 0x228   : > { %v8847_v31 = vrot.slane %v1331_v16, %v8517_v30  ;;  %v1029_v59 = vshrl.u32 %v8681_v37, 16  ;;  %v1413_v22 = vshrl.u32 %v8684_v25, 16  ;;  %v1426_v28 = vshrl.u32 %v8772_v57, 16 }
 0x229   : > { %v1041_v16 = vshrl.u32 %v8788_v56, 16 }
 0x22a   : > { %7313 = vmatmul.mubr.msk.bf16.vlgmr.msra.gmra.mrb[16].mxu1 %vm1849_vm1, %v1006_v47  ;;  %v1016_v47 = vshrl.u32 %v8615_v49, 16  ;;  %v2268_v49 = vsel %vm1849_vm1, %v1403_v44, 0 }
 0x22b   : > { %7323 = vmatpush3.bf16.xpose.msra.mxu1 %v2084_v62  ;;  %7324 = vmatprep.mubr.msk.bf16.mxu1 %vm8217_vm0, %v10097_v6 }
 0x22c   : > { %7355 = vmatmul.mubr.msk.bf16.vlgmr.msra.gmra.mrb[16].mxu0 %vm1849_vm1, %v1027_v51  ;;  %7334 = vmatprep.subr.bf16.mxu1 %v10097_v6  ;;  %v1424_v51 = vpack.i.b16 %v8772_v57, %v8791_v43  ;;  %v1018_v62 = vpack.i.b16 %v1017_v39, %v1016_v47  ;;  %v1028_v39 = vshrl.u32 %v8694_v41, 16  ;;  %v952_v47 = vcombine.high %v851_v63, %v10114_v2 }
 0x22d   : > { %7365 = vmatpush3.bf16.xpose.msra.mxu0 %v2406_v61  ;;  %7366 = vmatprep.mubr.msk.bf16.mxu0 %vm8217_vm0, %v10097_v6  ;;  %v789_v61 = vrot.slane %v781_v42, %v8517_v30  ;;  %v1420_v42 = vshrl.u32 %v8720_v3, 16  ;;  %v8884_v63 = vcombine.high %v8847_v31, %v10114_v2  ;;  %v1035_v3 = vshrl.u32 %v8731_v10, 16 }
 0x22e   : > { %7376 = vmatprep.subr.bf16.mxu0 %v10097_v6  ;;  %v2590_v4 = vsel %vm1849_vm1, %v1424_v51, 0  ;;  %v1030_v40 = vpack.i.b16 %v1029_v59, %v1028_v39  ;;  %v1223_v51 = vcombine.high %v8702_v21, %v8690_v27  ;;  %v1161_v27 = vcombine.high %v8708_v52, %v8699_v46 }
 0x22f   : > { %v8833_v7 = vrot.slane %v789_v61, %v8517_v30  ;;  %v8893_v21 = vrot.slane %v952_v47, %v8517_v30 }
 0x230   : > { %v1175_v58 = vrot.slane %v1161_v27, %v8517_v30 }
 0x231   : > { %v8867_v37 = vcombine.high %v8833_v7, %v10114_v2  ;;  %v8932_v57 = vcombine.high %v8893_v21, %v10114_v2  ;;  %v1046_v47 = vshrl.u32 %v8833_v7, 16 }
 0x232   : > { %7325 = vmatmul.mubr.msk.bf16.vlgmr.msra.gmra.mrb[20].mxu1 %vm1849_vm1, %v1012_v54  ;;  %v1045_v54 = vpack.i.b16 %v8821_v1, %v8833_v7 }
 0x233   : > { %7335 = vmatpush3.bf16.xpose.msra.mxu1 %v2176_v50  ;;  %7336 = vmatprep.mubr.msk.bf16.mxu1 %vm8217_vm0, %v10097_v6  ;;  %v2682_v50 = vsel %vm1849_vm1, %v1430_v8, 0 }
 0x234   : > { %7367 = vmatmul.mubr.msk.bf16.vlgmr.msra.gmra.mrb[20].mxu0 %vm1849_vm1, %v1033_v29  ;;  %7346 = vmatprep.subr.bf16.mxu1 %v10097_v6  ;;  %v1414_v29 = vshrl.u32 %v8667_v35, 16  ;;  %v8858_v35 = vcombine.high %v8821_v1, %v10114_v2 }
 0x235   : > { %7377 = vmatpush3.bf16.xpose.msra.mxu0 %v2498_v36  ;;  %7378 = vmatprep.mubr.msk.bf16.mxu0 %vm8217_vm0, %v10097_v6  ;;  %v8861_v36 = vrot.slane %v1322_v24, %v8517_v30  ;;  %v844_v24 = vcombine.high %v8764_v34, %v8756_v26  ;;  %v782_v26 = vcombine.high %v8775_v32, %v8767_v45 }
 0x236   : > { %7388 = vmatprep.subr.bf16.mxu0 %v10097_v6  ;;  %v1415_v38 = vpack.i.b16 %v1414_v29, %v1413_v22  ;;  %v1051_v44 = vpack.i.b16 %v8858_v35, %v8867_v37  ;;  %v1432_v22 = vshrl.u32 %v8814_v19, 16  ;;  %v1053_v27 = vshrl.u32 %v8858_v35, 16 }
 0x237   : > { %v1436_v25 = vpack.i.b16 %v8847_v31, %v8861_v36  ;;  %v8900_v60 = vcombine.high %v8861_v36, %v10114_v2  ;;  %v796_v45 = vrot.slane %v782_v26, %v8517_v30 }
 0x238   : > { %v2452_v41 = vsel %vm1849_vm1, %v1415_v38, 0  ;;  %v1047_v38 = vshrl.u32 %v8821_v1, 16 }
 0x239   : > { %v1442_v52 = vpack.i.b16 %v8884_v63, %v8900_v60  ;;  %v8977_v1 = vrot.slane %v796_v45, %v8517_v30 }
 0x23a   : > { %7337 = vmatmul.mubr.msk.bf16.vlgmr.msra.gmra.mrb[24].mxu1 %vm1849_vm1, %v1018_v62  ;;  %v943_v62 = vcombine.high %v789_v61, %v10114_v2  ;;  %v1034_v61 = vshrl.u32 %v8748_v18, 16 }
 0x23b   : > { %7347 = vmatpush3.bf16.xpose.msra.mxu1 %v2268_v49  ;;  %7348 = vmatprep.mubr.msk.bf16.mxu1 %vm8217_vm0, %v10097_v6  ;;  %v1419_v49 = vshrl.u32 %v8738_v11, 16  ;;  %v1237_v11 = vrot.slane %v1223_v51, %v8517_v30  ;;  %v2866_v13 = vsel %vm1849_vm1, %v1442_v52, 0  ;;  %v1356_v51 = vcombine.high %v1175_v58, %v10114_v2 }
 0x23c   : > { %7379 = vmatmul.mubr.msk.bf16.vlgmr.msra.gmra.mrb[24].mxu0 %vm1849_vm1, %v1039_v0  ;;  %7358 = vmatprep.subr.bf16.mxu1 %v10097_v6  ;;  %v2774_v0 = vsel %vm1849_vm1, %v1436_v25, 0  ;;  %v8906_v46 = vrot.slane %v943_v62, %v8517_v30  ;;  %v1431_v25 = vshrl.u32 %v8828_v23, 16  ;;  %v9011_v35 = vcombine.high %v8977_v1, %v10114_v2 }
 0x23d   : > { %7389 = vmatpush3.bf16.xpose.msra.mxu0 %v2590_v4  ;;  %7390 = vmatprep.mubr.msk.bf16.mxu0 %vm8217_vm0, %v10097_v6  ;;  %v1421_v10 = vpack.i.b16 %v1420_v42, %v1419_v49  ;;  %v1036_v4 = vpack.i.b16 %v1035_v3, %v1034_v61  ;;  %v8919_v8 = vrot.slane %v1237_v11, %v8517_v30  ;;  %v1437_v61 = vshrl.u32 %v8861_v36, 16 }
 0x23e   : > { %7400 = vmatprep.subr.bf16.mxu0 %v10097_v6  ;;  %v1057_v9 = vpack.i.b16 %v8893_v21, %v8906_v46  ;;  %v8943_v34 = vcombine.high %v8906_v46, %v10114_v2  ;;  %v1048_v42 = vpack.i.b16 %v1047_v38, %v1046_v47 }
 0x23f   : > { %v2544_v18 = vsel %vm1849_vm1, %v1421_v10, 0  ;;  %v8958_v39 = vcombine.high %v8919_v8, %v10114_v2  ;;  %v9005_v10 = vrot.slane %v1356_v51, %v8517_v30 }
 0x240   : > { %v1063_v59 = vpack.i.b16 %v8932_v57, %v8943_v34 }
 0x242   : > { %7349 = vmatmul.mubr.msk.bf16.vlgmr.msra.gmra.mrb[28].mxu1 %vm1849_vm1, %v1024_v20  ;;  %v1425_v20 = vshrl.u32 %v8791_v43, 16 }
 0x243   : > { %7359 = vmatpush3.bf16.xpose.msra.mxu1 %v2360_v12  ;;  %7360 = vmatprep.mubr.msk.bf16.mxu1 %vm8217_vm0, %v10097_v6  ;;  %v1040_v12 = vshrl.u32 %v8799_v48, 16 }
 0x244   : > { %7391 = vmatmul.mubr.msk.bf16.vlgmr.msra.gmra.mrb[28].mxu0 %vm1849_vm1, %v1045_v54  ;;  %7370 = vmatprep.subr.bf16.mxu1 %v10097_v6  ;;  %v8935_v54 = vrot.slane %v1175_v58, %v8517_v30  ;;  %v1427_v56 = vpack.i.b16 %v1426_v28, %v1425_v20  ;;  %v977_v28 = vcombine.high %v796_v45, %v10114_v2  ;;  %v1059_v20 = vshrl.u32 %v8893_v21, 16 }
 0x245   : > { %7401 = vmatpush3.bf16.xpose.msra.mxu0 %v2682_v50  ;;  %7402 = vmatprep.mubr.msk.bf16.mxu0 %vm8217_vm0, %v10097_v6  ;;  %v1042_v29 = vpack.i.b16 %v1041_v16, %v1040_v12  ;;  %v858_v50 = vrot.slane %v844_v24, %v8517_v30  ;;  %v1443_v24 = vshrl.u32 %v8900_v60, 16  ;;  %v1364_v12 = vcombine.high %v9005_v10, %v10114_v2 }
 0x246   : > { %7412 = vmatprep.subr.bf16.mxu0 %v10097_v6  ;;  %v1448_v43 = vpack.i.b16 %v8919_v8, %v8935_v54  ;;  %v2636_v48 = vsel %vm1849_vm1, %v1427_v56, 0  ;;  %v1058_v56 = vshrl.u32 %v8906_v46, 16  ;;  %v984_v21 = vrot.slane %v977_v28, %v8517_v30 }
 0x247   : > { %v8965_v19 = vrot.slane %v858_v50, %v8517_v30  ;;  %v986_v58 = vcombine.high %v858_v50, %v10114_v2  ;;  %v1064_v45 = vshrl.u32 %v8943_v34, 16 }
 0x248   : > { %v2958_v32 = vsel %vm1849_vm1, %v1448_v43, 0  ;;  %v1060_v43 = vpack.i.b16 %v1059_v20, %v1058_v56  ;;  %v985_v38 = vcombine.high %v984_v21, %v10114_v2 }
 0x249   : > { %v1069_v62 = vpack.i.b16 %v8965_v19, %v8977_v1  ;;  %v1071_v34 = vshrl.u32 %v8965_v19, 16 }
 0x24a   : > { %7361 = vmatmul.mubr.msk.bf16.vlgmr.msra.gmra.mrb[32].mxu1 %vm1849_vm1, %v1030_v40  ;;  %v8972_v40 = vcombine.high %v8935_v54, %v10114_v2 }
 0x24b   : > { %7371 = vmatpush3.bf16.xpose.msra.mxu1 %v2452_v41  ;;  %7372 = vmatprep.mubr.msk.bf16.mxu1 %vm8217_vm0, %v10097_v6  ;;  %v1365_v41 = vcombine.high %v1237_v11, %v10114_v2  ;;  %v1052_v11 = vshrl.u32 %v8867_v37, 16 }
 0x24c   : > { %7403 = vmatmul.mubr.msk.bf16.vlgmr.msra.gmra.mrb[32].mxu0 %vm1849_vm1, %v1051_v44  ;;  %7382 = vmatprep.subr.bf16.mxu1 %v10097_v6  ;;  %v1433_v44 = vpack.i.b16 %v1432_v22, %v1431_v25  ;;  %v1454_v23 = vpack.i.b16 %v8958_v39, %v8972_v40  ;;  %v1449_v22 = vshrl.u32 %v8935_v54, 16  ;;  %v1456_v54 = vshrl.u32 %v8958_v39, 16 }
 0x24d   : > { %7413 = vmatpush3.bf16.xpose.msra.mxu0 %v2774_v0  ;;  %7414 = vmatprep.mubr.msk.bf16.mxu0 %vm8217_vm0, %v10097_v6  ;;  %v1438_v0 = vshrl.u32 %v8847_v31, 16  ;;  %v8991_v49 = vrot.slane %v1365_v41, %v8517_v30  ;;  %v9002_v31 = vcombine.high %v8965_v19, %v10114_v2 }
 0x24e   : > { %7424 = vmatprep.subr.bf16.mxu0 %v10097_v6  ;;  %v2728_v7 = vsel %vm1849_vm1, %v1433_v44, 0  ;;  %v3050_v3 = vsel %vm1849_vm1, %v1454_v23, 0  ;;  %v1455_v44 = vshrl.u32 %v8972_v40, 16  ;;  %v1070_v23 = vshrl.u32 %v8977_v1, 16 }
 0x24f   : > { %v1439_v52 = vpack.i.b16 %v1438_v0, %v1437_v61  ;;  %v1460_v36 = vpack.i.b16 %v8991_v49, %v9005_v10  ;;  %v9026_v16 = vcombine.high %v8991_v49, %v10114_v2  ;;  %v1462_v51 = vshrl.u32 %v8991_v49, 16 }
 0x250   : > { %v1457_v41 = vpack.i.b16 %v1456_v54, %v1455_v44  ;;  %v1077_v19 = vshrl.u32 %v9002_v31, 16  ;;  %v1461_v40 = vshrl.u32 %v9005_v10, 16  ;;  %v1076_v1 = vshrl.u32 %v9011_v35, 16 }
 0x251   : > { %v2820_v37 = vsel %vm1849_vm1, %v1439_v52, 0  ;;  %v1466_v60 = vpack.i.b16 %v9026_v16, %v1364_v12  ;;  %v1082_v61 = vshrl.u32 %v984_v21, 16 }
 0x252   : > { %7373 = vmatmul.mubr.msk.bf16.vlgmr.msra.gmra.mrb[36].mxu1 %vm1849_vm1, %v1036_v4  ;;  %v1054_v4 = vpack.i.b16 %v1053_v27, %v1052_v11  ;;  %v3096_v39 = vsel %vm1849_vm1, %v1457_v41, 0  ;;  %v1467_v27 = vshrl.u32 %v1364_v12, 16 }
 0x253   : > { %7383 = vmatpush3.bf16.xpose.msra.mxu1 %v2544_v18  ;;  %7384 = vmatprep.mubr.msk.bf16.mxu1 %vm8217_vm0, %v10097_v6  ;;  %v1444_v18 = vshrl.u32 %v8884_v63, 16  ;;  %v9033_v63 = vrot.slane %v986_v58, %v8517_v30  ;;  %v3234_v46 = vsel %vm1849_vm1, %v1466_v60, 0 }
 0x254   : > { %7415 = vmatmul.mubr.msk.bf16.vlgmr.msra.gmra.mrb[36].mxu0 %vm1849_vm1, %v1057_v9  ;;  %7394 = vmatprep.subr.bf16.mxu1 %v10097_v6  ;;  %v1075_v9 = vpack.i.b16 %v9002_v31, %v9011_v35  ;;  %v1088_v35 = vshrl.u32 %v985_v38, 16 }
 0x255   : > { %7425 = vmatpush3.bf16.xpose.msra.mxu0 %v2866_v13  ;;  %7426 = vmatprep.mubr.msk.bf16.mxu0 %vm8217_vm0, %v10097_v6  ;;  %v3142_v13 = vsel %vm1849_vm1, %v1460_v36, 0  ;;  %v1445_v26 = vpack.i.b16 %v1444_v18, %v1443_v24  ;;  %v1083_v49 = vshrl.u32 %v9033_v63, 16 }
 0x256   : > { %7436 = vmatprep.subr.bf16.mxu0 %v10097_v6 }
 0x257   : > { %v2912_v50 = vsel %vm1849_vm1, %v1445_v26, 0  ;;  %v1084_v10 = vpack.i.b16 %v1083_v49, %v1082_v61 }
 0x25a   : > { %7385 = vmatmul.mubr.msk.bf16.vlgmr.msra.gmra.mrb[40].mxu1 %vm1849_vm1, %v1042_v29  ;;  %v1081_v29 = vpack.i.b16 %v9033_v63, %v984_v21 }
 0x25b   : > { %7395 = vmatpush3.bf16.xpose.msra.mxu1 %v2636_v48  ;;  %7396 = vmatprep.mubr.msk.bf16.mxu1 %vm8217_vm0, %v10097_v6  ;;  %v1065_v48 = vshrl.u32 %v8932_v57, 16 }
 0x25c   : > { %7427 = vmatmul.mubr.msk.bf16.vlgmr.msra.gmra.mrb[40].mxu0 %vm1849_vm1, %v1063_v59  ;;  %7406 = vmatprep.subr.bf16.mxu1 %v10097_v6  ;;  %v1450_v59 = vshrl.u32 %v8919_v8, 16  ;;  %v994_v8 = vcombine.high %v9033_v63, %v10114_v2 }
 0x25d   : > { %7437 = vmatpush3.bf16.xpose.msra.mxu0 %v2958_v32  ;;  %7438 = vmatprep.mubr.msk.bf16.mxu0 %vm8217_vm0, %v10097_v6  ;;  %v1066_v25 = vpack.i.b16 %v1065_v48, %v1064_v45 }
 0x25e   : > { %7448 = vmatprep.subr.bf16.mxu0 %v10097_v6  ;;  %v1451_v32 = vpack.i.b16 %v1450_v59, %v1449_v22  ;;  %v1087_v47 = vpack.i.b16 %v994_v8, %v985_v38  ;;  %v1089_v52 = vshrl.u32 %v994_v8, 16 }
 0x260   : > { %v3004_v57 = vsel %vm1849_vm1, %v1451_v32, 0  ;;  %v1090_v36 = vpack.i.b16 %v1089_v52, %v1088_v35 }
 0x262   : > { %7397 = vmatmul.mubr.msk.bf16.vlgmr.msra.gmra.mrb[44].mxu1 %vm1849_vm1, %v1048_v42  ;;  %v1072_v42 = vpack.i.b16 %v1071_v34, %v1070_v23 }
 0x263   : > { %7407 = vmatpush3.bf16.xpose.msra.mxu1 %v2728_v7  ;;  %7408 = vmatprep.mubr.msk.bf16.mxu1 %vm8217_vm0, %v10097_v6  ;;  %v1078_v7 = vpack.i.b16 %v1077_v19, %v1076_v1 }
 0x264   : > { %7439 = vmatmul.mubr.msk.bf16.vlgmr.msra.gmra.mrb[44].mxu0 %vm1849_vm1, %v1069_v62  ;;  %7418 = vmatprep.subr.bf16.mxu1 %v10097_v6  ;;  %v1463_v62 = vpack.i.b16 %v1462_v51, %v1461_v40 }
 0x265   : > { %7449 = vmatpush3.bf16.xpose.msra.mxu0 %v3050_v3  ;;  %7450 = vmatprep.mubr.msk.bf16.mxu0 %vm8217_vm0, %v10097_v6  ;;  %v1468_v3 = vshrl.u32 %v9026_v16, 16 }
 0x266   : > { %7460 = vmatprep.subr.bf16.mxu0 %v10097_v6  ;;  %v3188_v0 = vsel %vm1849_vm1, %v1463_v62, 0 }
 0x267   : > { %v1469_v31 = vpack.i.b16 %v1468_v3, %v1467_v27 }
 0x269   : > { %v3280_v11 = vsel %vm1849_vm1, %v1469_v31, 0 }
 0x26a   : > { %7409 = vmatmul.mubr.msk.bf16.vlgmr.msra.gmra.mrb[48].mxu1 %vm1849_vm1, %v1054_v4 }
 0x26b   : > { %7419 = vmatpush3.bf16.xpose.msra.mxu1 %v2820_v37  ;;  %7420 = vmatprep.mubr.msk.bf16.mxu1 %vm8217_vm0, %v10097_v6 }
 0x26c   : > { %7451 = vmatmul.mubr.msk.bf16.vlgmr.msra.gmra.mrb[48].mxu0 %vm1849_vm1, %v1075_v9  ;;  %7430 = vmatprep.subr.bf16.mxu1 %v10097_v6 }
 0x26d   : > { %7461 = vmatpush3.bf16.xpose.msra.mxu0 %v3142_v13  ;;  %7462 = vmatprep.mubr.msk.bf16.mxu0 %vm8217_vm0, %v10097_v6 }
 0x26e   : > { %7472 = vmatprep.subr.bf16.mxu0 %v10097_v6 }
 0x272   : > { %7421 = vmatmul.mubr.msk.bf16.vlgmr.msra.gmra.mrb[52].mxu1 %vm1849_vm1, %v1060_v43 }
 0x273   : > { %7431 = vmatpush3.bf16.xpose.msra.mxu1 %v2912_v50  ;;  %7432 = vmatprep.mubr.msk.bf16.mxu1 %vm8217_vm0, %v10097_v6 }
 0x274   : > { %7463 = vmatmul.mubr.msk.bf16.vlgmr.msra.gmra.mrb[52].mxu0 %vm1849_vm1, %v1081_v29  ;;  %7442 = vmatprep.subr.bf16.mxu1 %v10097_v6 }
 0x275   : > { %7473 = vmatpush3.bf16.xpose.msra.mxu0 %v3234_v46  ;;  %7474 = vmatprep.mubr.msk.bf16.mxu0 %vm8217_vm0, %v10097_v6 }
 0x276   : > { %7484 = vmatprep.subr.bf16.mxu0 %v10097_v6 }
 0x27a   : > { %7433 = vmatmul.mubr.msk.bf16.vlgmr.msra.gmra.mrb[56].mxu1 %vm1849_vm1, %v1066_v25 }
 0x27b   : > { %7443 = vmatpush3.bf16.xpose.msra.mxu1 %v3004_v57  ;;  %7444 = vmatprep.mubr.msk.bf16.mxu1 %vm8217_vm0, %v10097_v6 }
 0x27c   : > { %7475 = vmatmul.mubr.msk.bf16.vlgmr.msra.gmra.mrb[56].mxu0 %vm1849_vm1, %v1087_v47  ;;  %7454 = vmatprep.subr.bf16.mxu1 %v10097_v6 }
 0x27d   : > { %7486 = vmatprep.mubr.msk.bf16.mxu0 %vm8217_vm0, %v10097_v6 }
 0x282   : > { %7445 = vmatmul.mubr.msk.bf16.vlgmr.msra.gmra.mrb[60].mxu1 %vm1849_vm1, %v1072_v42 }
 0x283   : > { %7455 = vmatpush3.bf16.xpose.msra.mxu1 %v3096_v39  ;;  %7456 = vmatprep.mubr.msk.bf16.mxu1 %vm8217_vm0, %v10097_v6 }
 0x284   : > { %7466 = vmatprep.subr.bf16.mxu1 %v10097_v6 }
 0x28a   : > { %7457 = vmatmul.mubr.msk.bf16.vlgmr.msra.gmra.mrb[64].mxu1 %vm1849_vm1, %v1078_v7 }
 0x28b   : > { %7467 = vmatpush3.bf16.xpose.msra.mxu1 %v3188_v0  ;;  %7468 = vmatprep.mubr.msk.bf16.mxu1 %vm8217_vm0, %v10097_v6 }
 0x28c   : > { %7478 = vmatprep.subr.bf16.mxu1 %v10097_v6 }
 0x292   : > { %7469 = vmatmul.mubr.msk.bf16.vlgmr.msra.gmra.mrb[68].mxu1 %vm1849_vm1, %v1084_v10 }
 0x293   : > { %7479 = vmatpush3.bf16.xpose.msra.mxu1 %v3280_v11  ;;  %7480 = vmatprep.mubr.msk.bf16.mxu1 %vm8217_vm0, %v10097_v6 }
 0x294   : > { %7490 = vmatprep.subr.bf16.mxu1 %v10097_v6 }
 0x29a   : > { %7481 = vmatmul.mubr.msk.bf16.vlgmr.msra.gmra.mrb[72].mxu1 %vm1849_vm1, %v1090_v36 }
 0x29b   : > { %7492 = vmatprep.mubr.msk.bf16.mxu1 %vm8217_vm0, %v10097_v6 }
 0x2e5   : > { %v9098_v4 = vpop.f32.mrb[4].mxu1 }
 0x2e6   : > { %v7296_v9 = vpop.f32.mrb[5].mxu1  ;;  %v3323_v37 = vsel %vm3322_vm2, %v9098_v4, -inf }
 0x2e7   : > { %v9100_v58 = vpop.f32.mrb[4].mxu0  ;;  %3324 = vmax.xlane.f32.xlu0 %v3323_v37  ;;  %v1893_v13 = vpop.f32.mrb[6].mxu1 }
 0x2e8   : > { %v7320_v18 = vpop.f32.mrb[5].mxu0  ;;  %v3335_v28 = vsel %vm3322_vm2, %v9100_v58, -inf  ;;  %v7297_v20 = vpop.f32.mrb[7].mxu1 }
 0x2e9   : > { %3336 = vmax.xlane.f32.xlu1 %v3335_v28  ;;  %v2077_v16 = vpop.f32.mrb[6].mxu0 }
 0x2ea   : > { %v7321_v24 = vpop.f32.mrb[7].mxu0 }
 0x2ed   : > { %v9106_v63 = vpop.f32.mrb[8].mxu1 }
 0x2ee   : > { %v7302_v12 = vpop.f32.mrb[9].mxu1  ;;  %v3326_v26 = vsel %vm3322_vm2, %v9106_v63, -inf }
 0x2ef   : > { %v9108_v56 = vpop.f32.mrb[8].mxu0  ;;  %3327 = vmax.xlane.f32.xlu1 %v3326_v26  ;;  %v1939_v21 = vpop.f32.mrb[10].mxu1 }
 0x2f0   : > { %v7332_v60 = vpop.f32.mrb[9].mxu0  ;;  %v7303_v43 = vpop.f32.mrb[11].mxu1  ;;  %v3341_v59 = vsel %vm3322_vm2, %v9108_v56, -inf }
 0x2f1   : > { %v2169_v29 = vpop.f32.mrb[10].mxu0 }
 0x2f2   : > { %v7333_v50 = vpop.f32.mrb[11].mxu0 }
 0x2f3   : > { %3342 = vmax.xlane.f32.xlu1 %v3341_v59 }
 0x2f5   : > { %v9114_v46 = vpop.f32.mrb[12].mxu1 }
 0x2f6   : > { %v7308_v48 = vpop.f32.mrb[13].mxu1  ;;  %v3329_v8 = vsel %vm3322_vm2, %v9114_v46, -inf }
 0x2f7   : > { %v9116_v22 = vpop.f32.mrb[12].mxu0  ;;  %3330 = vmax.xlane.f32.xlu0 %v3329_v8  ;;  %v1985_v45 = vpop.f32.mrb[14].mxu1 }
 0x2f8   : > { %v7344_v32 = vpop.f32.mrb[13].mxu0  ;;  %v3347_v38 = vsel %vm3322_vm2, %v9116_v22, -inf  ;;  %v7309_v25 = vpop.f32.mrb[15].mxu1 }
 0x2f9   : > { %v2261_v47 = vpop.f32.mrb[14].mxu0  ;;  %3348 = vmax.xlane.f32.xlu1 %v3347_v38 }
 0x2fa   : > { %v7345_v57 = vpop.f32.mrb[15].mxu0 }
 0x2fd   : > { %v9122_v54 = vpop.f32.mrb[16].mxu1 }
 0x2fe   : > { %v7314_v34 = vpop.f32.mrb[17].mxu1  ;;  %v3332_v23 = vsel %vm3322_vm2, %v9122_v54, -inf }
 0x2ff   : > { %v9124_v44 = vpop.f32.mrb[16].mxu0  ;;  %3333 = vmax.xlane.f32.xlu0 %v3332_v23  ;;  %v2031_v41 = vpop.f32.mrb[18].mxu1 }
 0x300   : > { %v7356_v42 = vpop.f32.mrb[17].mxu0  ;;  %v3353_v39 = vsel %vm3322_vm2, %v9124_v44, -inf  ;;  %v7315_v51 = vpop.f32.mrb[19].mxu1 }
 0x301   : > { %v2353_v19 = vpop.f32.mrb[18].mxu0  ;;  %3354 = vmax.xlane.f32.xlu1 %v3353_v39 }
 0x302   : > { %v7357_v40 = vpop.f32.mrb[19].mxu0 }
 0x305   : > { %v9130_v1 = vpop.f32.mrb[20].mxu1 }
 0x306   : > { %v7326_v62 = vpop.f32.mrb[21].mxu1  ;;  %v3338_v0 = vsel %vm3322_vm2, %v9130_v1, -inf }
 0x307   : > { %v9132_v7 = vpop.f32.mrb[20].mxu0  ;;  %3339 = vmax.xlane.f32.xlu0 %v3338_v0  ;;  %v2123_v3 = vpop.f32.mrb[22].mxu1 }
 0x308   : > { %v7368_v49 = vpop.f32.mrb[21].mxu0  ;;  %v3359_v27 = vsel %vm3322_vm2, %v9132_v7, -inf  ;;  %v7327_v61 = vpop.f32.mrb[23].mxu1 }
 0x309   : > { %v2445_v31 = vpop.f32.mrb[22].mxu0  ;;  %3360 = vmax.xlane.f32.xlu1 %v3359_v27 }
 0x30a   : > { %v7369_v10 = vpop.f32.mrb[23].mxu0 }
 0x30d   : > { %v9138_v11 = vpop.f32.mrb[24].mxu1 }
 0x30e   : > { %v7338_v52 = vpop.f32.mrb[25].mxu1  ;;  %v3344_v36 = vsel %vm3322_vm2, %v9138_v11, -inf }
 0x30f   : > { %v9140_v35 = vpop.f32.mrb[24].mxu0  ;;  %3345 = vmax.xlane.f32.xlu0 %v3344_v36  ;;  %v2215_v9 = vpop.f32.mrb[26].mxu1 }
 0x310   : > { %v7380_v37 = vpop.f32.mrb[25].mxu0  ;;  %v3365_v18 = vsel %vm3322_vm2, %v9140_v35, -inf  ;;  %v7339_v28 = vpop.f32.mrb[27].mxu1 }
 0x311   : > { %v2537_v13 = vpop.f32.mrb[26].mxu0  ;;  %3366 = vmax.xlane.f32.xlu1 %v3365_v18 }
 0x312   : > { %v7381_v16 = vpop.f32.mrb[27].mxu0 }
 0x315   : > { %v9146_v20 = vpop.f32.mrb[28].mxu1 }
 0x316   : > { %v7350_v24 = vpop.f32.mrb[29].mxu1  ;;  %v3350_v12 = vsel %vm3322_vm2, %v9146_v20, -inf }
 0x317   : > { %v9150_v26 = vpop.f32.mrb[28].mxu0  ;;  %3351 = vmax.xlane.f32.xlu0 %v3350_v12  ;;  %v2307_v21 = vpop.f32.mrb[30].mxu1 }
 0x318   : > { %v7392_v60 = vpop.f32.mrb[29].mxu0  ;;  %v3371_v43 = vsel %vm3322_vm2, %v9150_v26, -inf  ;;  %v7351_v29 = vpop.f32.mrb[31].mxu1 }
 0x319   : > { %3372 = vmax.xlane.f32.xlu1 %v3371_v43  ;;  %v2629_v50 = vpop.f32.mrb[30].mxu0 }
 0x31a   : > { %v7393_v59 = vpop.f32.mrb[31].mxu0 }
 0x31d   : > { %v9154_v48 = vpop.f32.mrb[32].mxu1 }
 0x31e   : > { %v7362_v8 = vpop.f32.mrb[33].mxu1  ;;  %v3356_v45 = vsel %vm3322_vm2, %v9154_v48, -inf }
 0x31f   : > { %v9158_v32 = vpop.f32.mrb[32].mxu0  ;;  %3357 = vmax.xlane.f32.xlu0 %v3356_v45  ;;  %v2399_v38 = vpop.f32.mrb[34].mxu1 }
 0x320   : > { %v7404_v25 = vpop.f32.mrb[33].mxu0  ;;  %v3377_v47 = vsel %vm3322_vm2, %v9158_v32, -inf  ;;  %v7363_v57 = vpop.f32.mrb[35].mxu1 }
 0x321   : > { %3378 = vmax.xlane.f32.xlu1 %v3377_v47  ;;  %v2721_v34 = vpop.f32.mrb[34].mxu0 }
 0x322   : > { %v7405_v23 = vpop.f32.mrb[35].mxu0 }
 0x325   : > { %v9162_v41 = vpop.f32.mrb[36].mxu1 }
 0x326   : > { %v7374_v42 = vpop.f32.mrb[37].mxu1  ;;  %v3362_v39 = vsel %vm3322_vm2, %v9162_v41, -inf }
 0x327   : > { %v9166_v51 = vpop.f32.mrb[36].mxu0  ;;  %3363 = vmax.xlane.f32.xlu0 %v3362_v39  ;;  %v2491_v19 = vpop.f32.mrb[38].mxu1 }
 0x328   : > { %v7416_v40 = vpop.f32.mrb[37].mxu0  ;;  %v3383_v62 = vsel %vm3322_vm2, %v9166_v51, -inf  ;;  %v7375_v0 = vpop.f32.mrb[39].mxu1 }
 0x329   : > { %3384 = vmax.xlane.f32.xlu1 %v3383_v62  ;;  %v2813_v3 = vpop.f32.mrb[38].mxu0 }
 0x32a   : > { %v7417_v49 = vpop.f32.mrb[39].mxu0 }
 0x32d   : > { %v9170_v27 = vpop.f32.mrb[40].mxu1 }
 0x32e   : > { %v7386_v61 = vpop.f32.mrb[41].mxu1  ;;  %v3368_v31 = vsel %vm3322_vm2, %v9170_v27, -inf }
 0x32f   : > { %v9174_v10 = vpop.f32.mrb[40].mxu0  ;;  %3369 = vmax.xlane.f32.xlu0 %v3368_v31  ;;  %v2583_v52 = vpop.f32.mrb[42].mxu1 }
 0x330   : > { %v7428_v36 = vpop.f32.mrb[41].mxu0  ;;  %v3389_v9 = vsel %vm3322_vm2, %v9174_v10, -inf  ;;  %v7387_v37 = vpop.f32.mrb[43].mxu1 }
 0x331   : > { %3390 = vmax.xlane.f32.xlu1 %v3389_v9  ;;  %v2905_v18 = vpop.f32.mrb[42].mxu0 }
 0x332   : > { %v7429_v28 = vpop.f32.mrb[43].mxu0 }
 0x335   : > { %v9178_v13 = vpop.f32.mrb[44].mxu1 }
 0x336   : > { %v7398_v16 = vpop.f32.mrb[45].mxu1  ;;  %v3374_v24 = vsel %vm3322_vm2, %v9178_v13, -inf }
 0x337   : > { %v9182_v12 = vpop.f32.mrb[44].mxu0  ;;  %3375 = vmax.xlane.f32.xlu0 %v3374_v24  ;;  %v2675_v21 = vpop.f32.mrb[46].mxu1 }
 0x338   : > { %v7440_v60 = vpop.f32.mrb[45].mxu0  ;;  %v3395_v43 = vsel %vm3322_vm2, %v9182_v12, -inf  ;;  %v7399_v29 = vpop.f32.mrb[47].mxu1 }
 0x339   : > { %3396 = vmax.xlane.f32.xlu1 %v3395_v43  ;;  %v2997_v50 = vpop.f32.mrb[46].mxu0 }
 0x33a   : > { %v7441_v59 = vpop.f32.mrb[47].mxu0 }
 0x33d   : > { %v9186_v8 = vpop.f32.mrb[48].mxu1 }
 0x33e   : > { %v7410_v45 = vpop.f32.mrb[49].mxu1  ;;  %v3380_v38 = vsel %vm3322_vm2, %v9186_v8, -inf }
 0x33f   : > { %v9190_v25 = vpop.f32.mrb[48].mxu0  ;;  %3381 = vmax.xlane.f32.xlu0 %v3380_v38  ;;  %v2767_v47 = vpop.f32.mrb[50].mxu1 }
 0x340   : > { %v7452_v57 = vpop.f32.mrb[49].mxu0  ;;  %v7411_v34 = vpop.f32.mrb[51].mxu1 }
 0x341   : > { %v3089_v23 = vpop.f32.mrb[50].mxu0 }
 0x342   : > { %v7453_v42 = vpop.f32.mrb[51].mxu0 }
 0x345   : > { %v9192_v39 = vpop.f32.mrb[52].mxu1 }
 0x346   : > { %v7422_v19 = vpop.f32.mrb[53].mxu1  ;;  %v3386_v40 = vsel %vm3322_vm2, %v9192_v39, -inf }
 0x347   : > { %v9196_v62 = vpop.f32.mrb[52].mxu0  ;;  %3387 = vmax.xlane.f32.xlu0 %v3386_v40  ;;  %v2859_v0 = vpop.f32.mrb[54].mxu1 }
 0x348   : > { %v7464_v3 = vpop.f32.mrb[53].mxu0  ;;  %v7423_v49 = vpop.f32.mrb[55].mxu1 }
 0x349   : > { %v3181_v61 = vpop.f32.mrb[54].mxu0  ;;  %v9214_v49 = vpop.permute.xlu1 %1471 }
 0x34a   : > { %v7465_v31 = vpop.f32.mrb[55].mxu0 }
 0x34d   : > { %v9198_v52 = vpop.f32.mrb[56].mxu1 }
 0x34e   : > { %v7434_v36 = vpop.f32.mrb[57].mxu1  ;;  %v3392_v9 = vsel %vm3322_vm2, %v9198_v52, -inf }
 0x34f   : > { %v9202_v37 = vpop.f32.mrb[56].mxu0  ;;  %3393 = vmax.xlane.f32.xlu0 %v3392_v9  ;;  %v2951_v18 = vpop.f32.mrb[58].mxu1 }
 0x350   : > { %v7476_v28 = vpop.f32.mrb[57].mxu0  ;;  %v7435_v16 = vpop.f32.mrb[59].mxu1 }
 0x351   : > { %v3273_v24 = vpop.f32.mrb[58].mxu0 }
 0x352   : > { %v7477_v21 = vpop.f32.mrb[59].mxu0 }
 0x355   : > { %v9204_v60 = vpop.f32.mrb[60].mxu1 }
 0x356   : > { %v7446_v43 = vpop.f32.mrb[61].mxu1  ;;  %v3398_v29 = vsel %vm3322_vm2, %v9204_v60, -inf }
 0x357   : > { %3399 = vmax.xlane.f32.xlu0 %v3398_v29  ;;  %v3043_v50 = vpop.f32.mrb[62].mxu1 }
 0x358   : > { %v7447_v59 = vpop.f32.mrb[63].mxu1 }
 0x35d   : > { %v9208_v45 = vpop.f32.mrb[64].mxu1 }
 0x35e   : > { %v7458_v38 = vpop.f32.mrb[65].mxu1 }
 0x35f   : > { %v3135_v47 = vpop.f32.mrb[66].mxu1 }
 0x360   : > { %v7459_v57 = vpop.f32.mrb[67].mxu1 }
 0x365   : > { %v9210_v34 = vpop.f32.mrb[68].mxu1 }
 0x366   : > { %v7470_v23 = vpop.f32.mrb[69].mxu1 }
 0x367   : > { %v3227_v42 = vpop.f32.mrb[70].mxu1 }
 0x368   : > { %v7471_v19 = vpop.f32.mrb[71].mxu1 }
 0x36d   : > { %v9212_v40 = vpop.f32.mrb[72].mxu1 }
 0x36e   : > { %v7482_v0 = vpop.f32.mrb[73].mxu1 }
 0x36f   : > { %v3319_v3 = vpop.f32.mrb[74].mxu1 }
 0x370   : > { %v7483_v61 = vpop.f32.mrb[75].mxu1 }
 0x374   : > { %v3325_v31 = vpop.xlane.xlu0 %3324 }
 0x375   : > { %v3419_v9 = vsub.f32 %v9098_v4, %v3325_v31 }
 0x376   : > { %v3337_v36 = vpop.xlane.xlu1 %3336 }
 0x377   : > { %v3423_v18 = vsub.f32 %v9100_v58, %v3337_v36  ;;  %v3451_v28 = vmul.f32 1.442695, %v3419_v9 }
 0x379   : > { %7881 = vpow2.f32 %v3451_v28  ;;  %v3459_v31 = vmul.f32 1.442695, %v3423_v18 }
 0x37c   : > { %v3328_v16 = vpop.xlane.xlu1 %3327 }
 0x37d   : > { %v3420_v24 = vsub.f32 %v9106_v63, %v3328_v16 }
 0x37f   : > { %v3453_v21 = vmul.f32 1.442695, %v3420_v24 }
 0x380   : > { %v3343_v36 = vpop.xlane.xlu1 %3342 }
 0x381   : > { %7883 = vpow2.f32 %v3453_v21 }
 0x383   : > { %v9219_v43 = vpop.eup %7881 }
 0x384   : > { %v3515_v29 = vsel %vm3322_vm2, %v9219_v43, 0.0  ;;  %v3331_v58 = vpop.xlane.xlu0 %3330 }
 0x385   : > { %3516 = vadd.xlane.f32.xlu1 %v3515_v29  ;;  %v3421_v63 = vsub.f32 %v9114_v46, %v3331_v58 }
 0x386   : > { %v3349_v29 = vpop.xlane.xlu1 %3348 }
 0x387   : > { %v3455_v38 = vmul.f32 1.442695, %v3421_v63 }
 0x389   : > { %7885 = vpow2.f32 %v3455_v38 }
 0x38b   : > { %v9223_v50 = vpop.eup %7883 }
 0x38c   : > { %v3518_v4 = vsel %vm3322_vm2, %v9223_v50, 0.0  ;;  %v3334_v59 = vpop.xlane.xlu0 %3333 }
 0x38d   : > { %3519 = vadd.xlane.f32.xlu0 %v3518_v4  ;;  %v3422_v57 = vsub.f32 %v9122_v54, %v3334_v59  ;;  %v3425_v54 = vsub.f32 %v9108_v56, %v3343_v36  ;;  %v3427_v59 = vsub.f32 %v9116_v22, %v3349_v29  ;;  %v3416_v29 = vsel %vm3322_vm2, %v9212_v40, -inf }
 0x38e   : > { %v3355_v38 = vpop.xlane.xlu1 %3354 }
 0x38f   : > { %v3457_v42 = vmul.f32 1.442695, %v3422_v57  ;;  %v3463_v21 = vmul.f32 1.442695, %v3425_v54  ;;  %v3429_v22 = vsub.f32 %v9124_v44, %v3355_v38 }
 0x391   : > { %7887 = vpow2.f32 %v3457_v42  ;;  %v3404_v42 = vsel %vm3322_vm2, %v9208_v45, -inf  ;;  %v3471_v54 = vmul.f32 1.442695, %v3429_v22 }
 0x393   : > { %v9235_v61 = vpop.eup %7885 }
 0x394   : > { %v3340_v47 = vpop.xlane.xlu0 %3339  ;;  %v3521_v28 = vsel %vm3322_vm2, %v9235_v61, 0.0 }
 0x395   : > { %v3424_v23 = vsub.f32 %v9130_v1, %v3340_v47 }
 0x396   : > { %1475 = vrot.lane.b32.xlu1 %v8504_v14, %s8219_s26 }
 0x397   : > { %v3461_v19 = vmul.f32 1.442695, %v3424_v23 }
 0x399   : > { %7889 = vpow2.f32 %v3461_v19  ;;  %v3410_v19 = vsel %vm3322_vm2, %v9210_v34, -inf }
 0x39a   : > { %7891 = vpow2.f32 %v3459_v31  ;;  %v3361_v31 = vpop.xlane.xlu1 %3360 }
 0x39b   : > { %v9241_v16 = vpop.eup %7887 }
 0x39c   : > { %v3346_v0 = vpop.xlane.xlu0 %3345  ;;  %v3524_v56 = vsel %vm3322_vm2, %v9241_v16, 0.0 }
 0x39d   : > { %v3426_v3 = vsub.f32 %v9138_v11, %v3346_v0  ;;  %v3401_v11 = vsel %vm3322_vm2, %v9190_v25, -inf }
 0x39f   : > { %v3465_v46 = vmul.f32 1.442695, %v3426_v3  ;;  %v3467_v3 = vmul.f32 1.442695, %v3427_v59 }
 0x3a1   : > { %7893 = vpow2.f32 %v3465_v46 }
 0x3a2   : > { %7895 = vpow2.f32 %v3463_v21 }
 0x3a3   : > { %1473 = vrot.lane.b32.xlu0 %v8504_v14, %s8221_s17  ;;  %v9245_v18 = vpop.eup %7889 }
 0x3a4   : > { %v3352_v9 = vpop.xlane.xlu0 %3351  ;;  %v9254_v23 = vpop.eup %7891 }
 0x3a5   : > { %v3428_v1 = vsub.f32 %v9146_v20, %v3352_v9  ;;  %v3530_v20 = vsel %vm3322_vm2, %v9245_v18, 0.0  ;;  %v3527_v9 = vsel %vm3322_vm2, %v9254_v23, 0.0 }
 0x3a7   : > { %v3469_v4 = vmul.f32 1.442695, %v3428_v1  ;;  %v3431_v1 = vsub.f32 %v9132_v7, %v3361_v31  ;;  %v3413_v31 = vsel %vm3322_vm2, %v9202_v37, -inf }
 0x3a9   : > { %7897 = vpow2.f32 %v3469_v4  ;;  %v3407_v4 = vsel %vm3322_vm2, %v9196_v62, -inf  ;;  %v3475_v7 = vmul.f32 1.442695, %v3431_v1 }
 0x3ab   : > { %v9260_v0 = vpop.eup %7893 }
 0x3ac   : > { %v3358_v24 = vpop.xlane.xlu0 %3357  ;;  %v9270_v21 = vpop.eup %7895 }
 0x3ad   : > { %v3430_v58 = vsub.f32 %v9154_v48, %v3358_v24  ;;  %v3367_v24 = vpop.xlane.xlu1 %3366  ;;  %v3533_v38 = vsel %vm3322_vm2, %v9270_v21, 0.0 }
 0x3af   : > { %v3473_v47 = vmul.f32 1.442695, %v3430_v58 }
 0x3b1   : > { %7899 = vpow2.f32 %v3473_v47 }
 0x3b2   : > { %7901 = vpow2.f32 %v3467_v3 }
 0x3b3   : > { %v9276_v58 = vpop.eup %7897 }
 0x3b4   : > { %v3364_v63 = vpop.xlane.xlu0 %3363  ;;  %v3542_v59 = vsel %vm3322_vm2, %v9276_v58, 0.0 }
 0x3b5   : > { %v3432_v57 = vsub.f32 %v9162_v41, %v3364_v63  ;;  %v3433_v63 = vsub.f32 %v9140_v35, %v3367_v24 }
 0x3b7   : > { %v3477_v36 = vmul.f32 1.442695, %v3432_v57  ;;  %v3479_v57 = vmul.f32 1.442695, %v3433_v63 }
 0x3b9   : > { %7903 = vpow2.f32 %v3477_v36 }
 0x3ba   : > { %3522 = vadd.xlane.f32.xlu1 %v3521_v28  ;;  %v3536_v28 = vsel %vm3322_vm2, %v9260_v0, 0.0  ;;  %7905 = vpow2.f32 %v3471_v54 }
 0x3bb   : > { %v9284_v47 = vpop.eup %7899 }
 0x3bc   : > { %v3370_v48 = vpop.xlane.xlu0 %3369  ;;  %v3548_v22 = vsel %vm3322_vm2, %v9284_v47, 0.0 }
 0x3bd   : > { %v3434_v41 = vsub.f32 %v9170_v27, %v3370_v48 }
 0x3be   : > { %3402 = vmax.xlane.f32.xlu1 %v3401_v11 }
 0x3bf   : > { %v3481_v44 = vmul.f32 1.442695, %v3434_v41 }
 0x3c1   : > { %7907 = vpow2.f32 %v3481_v44 }
 0x3c2   : > { %3525 = vadd.xlane.f32.xlu0 %v3524_v56  ;;  %3531 = vadd.xlane.f32.xlu1 %v3530_v20  ;;  %v3373_v56 = vpop.xlane.xlu1 %3372  ;;  %7909 = vpow2.f32 %v3475_v7 }
 0x3c3   : > { %v3435_v48 = vsub.f32 %v9150_v26, %v3373_v56 }
 0x3c4   : > { %v3376_v46 = vpop.xlane.xlu0 %3375 }
 0x3c5   : > { %v3436_v11 = vsub.f32 %v9178_v13, %v3376_v46  ;;  %v3483_v26 = vmul.f32 1.442695, %v3435_v48 }
 0x3c6   : > { %3405 = vmax.xlane.f32.xlu0 %v3404_v42  ;;  %3411 = vmax.xlane.f32.xlu1 %v3410_v19  ;;  %v9287_v19 = vpop.eup %7901 }
 0x3c7   : > { %v3485_v13 = vmul.f32 1.442695, %v3436_v11  ;;  %v9294_v36 = vpop.eup %7903  ;;  %v3539_v54 = vsel %vm3322_vm2, %v9287_v19, 0.0 }
 0x3c9   : > { %7911 = vpow2.f32 %v3485_v13 }
 0x3ca   : > { %3528 = vadd.xlane.f32.xlu0 %v3527_v9  ;;  %3537 = vadd.xlane.f32.xlu1 %v3536_v28  ;;  %7913 = vpow2.f32 %v3479_v57  ;;  %v9297_v9 = vpop.eup %7905 }
 0x3cb   : > { %v9303_v1 = vpop.eup %7907  ;;  %v3545_v7 = vsel %vm3322_vm2, %v9297_v9, 0.0 }
 0x3cc   : > { %v3382_v27 = vpop.xlane.xlu0 %3381  ;;  %v9306_v11 = vpop.eup %7909 }
 0x3cd   : > { %v3438_v20 = vsub.f32 %v9186_v8, %v3382_v27  ;;  %v3379_v8 = vpop.xlane.xlu1 %3378 }
 0x3ce   : > { %3417 = vmax.xlane.f32.xlu1 %v3416_v29  ;;  %3408 = vmax.xlane.f32.xlu0 %v3407_v4  ;;  %v3437_v41 = vsub.f32 %v9158_v32, %v3379_v8  ;;  %v3560_v4 = vsel %vm3322_vm2, %v9303_v1, 0.0 }
 0x3cf   : > { %v3489_v35 = vmul.f32 1.442695, %v3438_v20 }
 0x3d0   : > { %v3487_v24 = vmul.f32 1.442695, %v3437_v41 }
 0x3d1   : > { %7915 = vpow2.f32 %v3489_v35  ;;  %v3385_v28 = vpop.xlane.xlu1 %3384 }
 0x3d2   : > { %3543 = vadd.xlane.f32.xlu1 %v3542_v59  ;;  %3534 = vadd.xlane.f32.xlu0 %v3533_v38  ;;  %7917 = vpow2.f32 %v3483_v26  ;;  %v3439_v44 = vsub.f32 %v9166_v51, %v3385_v28  ;;  %v3551_v38 = vsel %vm3322_vm2, %v9306_v11, 0.0 }
 0x3d3   : > { %v9313_v63 = vpop.eup %7911 }
 0x3d4   : > { %v3388_v42 = vpop.xlane.xlu0 %3387  ;;  %v3491_v51 = vmul.f32 1.442695, %v3439_v44  ;;  %v9316_v20 = vpop.eup %7913 }
 0x3d5   : > { %v3440_v3 = vsub.f32 %v9192_v39, %v3388_v42  ;;  %v3554_v39 = vsel %vm3322_vm2, %v9294_v36, 0.0  ;;  %v3391_v27 = vpop.xlane.xlu1 %3390 }
 0x3d6   : > { %3549 = vadd.xlane.f32.xlu1 %v3548_v22  ;;  %3414 = vmax.xlane.f32.xlu0 %v3413_v31  ;;  %v3441_v13 = vsub.f32 %v9174_v10, %v3391_v27  ;;  %v3557_v22 = vsel %vm3322_vm2, %v9316_v20, 0.0 }
 0x3d7   : > { %v3493_v46 = vmul.f32 1.442695, %v3440_v3 }
 0x3d8   : > { %v3495_v48 = vmul.f32 1.442695, %v3441_v13  ;;  %v1481_v13 = vshrl.u32 %v8504_v14, 16 }
 0x3d9   : > { %7919 = vpow2.f32 %v3493_v46  ;;  %v3397_v59 = vpop.xlane.xlu1 %3396 }
 0x3da   : > { %3555 = vadd.xlane.f32.xlu1 %v3554_v39  ;;  %3540 = vadd.xlane.f32.xlu0 %v3539_v54  ;;  %7921 = vpow2.f32 %v3487_v24  ;;  %v3443_v35 = vsub.f32 %v9182_v12, %v3397_v59  ;;  %v1479_v59 = vpack.i.b16 %v9214_v49, %v8504_v14 }
 0x3db   : > { %v9322_v57 = vpop.eup %7915 }
 0x3dc   : > { %v3394_v32 = vpop.xlane.xlu0 %3393  ;;  %v9325_v10 = vpop.eup %7917  ;;  %v3572_v3 = vsel %vm3322_vm2, %v9322_v57, 0.0  ;;  %v3499_v41 = vmul.f32 1.442695, %v3443_v35 }
 0x3dd   : > { %v3442_v29 = vsub.f32 %v9198_v52, %v3394_v32  ;;  %v3566_v52 = vsel %vm3322_vm2, %v9313_v63, 0.0 }
 0x3de   : > { %3561 = vadd.xlane.f32.xlu1 %v3560_v4  ;;  %3546 = vadd.xlane.f32.xlu0 %v3545_v7 }
 0x3df   : > { %v3497_v56 = vmul.f32 1.442695, %v3442_v29 }
 0x3e1   : > { %7923 = vpow2.f32 %v3497_v56 }
 0x3e2   : > { %3567 = vadd.xlane.f32.xlu1 %v3566_v52  ;;  %3552 = vadd.xlane.f32.xlu0 %v3551_v38  ;;  %7925 = vpow2.f32 %v3491_v51  ;;  %v1482_v52 = vshrl.u32 %v9214_v49, 16 }
 0x3e3   : > { %v9332_v31 = vpop.eup %7919  ;;  %7927 = vpow2.f32 %v3495_v48 }
 0x3e4   : > { %v3400_v42 = vpop.xlane.xlu0 %3399  ;;  %10132 = vst [vmem:[#allocation24_spill] sm:$0xff] %v9332_v31  ;;  %v3578_v12 = vsel %vm3322_vm2, %v9332_v31, 0.0  ;;  %v9338_v46 = vpop.eup %7921  ;;  %v1483_v35 = vpack.i.b16 %v1482_v52, %v1481_v13 }
 0x3e5   : > { %v3444_v8 = vsub.f32 %v9204_v60, %v3400_v42  ;;  %v3563_v60 = vsel %vm3322_vm2, %v9325_v10, 0.0  ;;  %10133 = vst [vmem:[#allocation25_spill] sm:$0xff] %v9338_v46  ;;  %v3569_v54 = vsel %vm3322_vm2, %v9338_v46, 0.0  ;;  %v1493_v42 = vcombine.high %v1479_v59, %v8654_v17 }
 0x3e6   : > { %3573 = vadd.xlane.f32.xlu1 %v3572_v3  ;;  %3558 = vadd.xlane.f32.xlu0 %v3557_v22 }
 0x3e7   : > { %v3501_v26 = vmul.f32 1.442695, %v3444_v8  ;;  %v1507_v49 = vrot.slane %v1493_v42, %v8455_v33 }
 0x3e9   : > { %7929 = vpow2.f32 %v3501_v26 }
 0x3ea   : > { %3579 = vadd.xlane.f32.xlu1 %v3578_v12  ;;  %3564 = vadd.xlane.f32.xlu0 %v3563_v60  ;;  %7931 = vpow2.f32 %v3499_v41  ;;  %v1500_v41 = vrot.slane %v1479_v59, %v8455_v33 }
 0x3eb   : > { %v9340_v28 = vpop.eup %7923 }
 0x3ec   : > { %10134 = vst [vmem:[#allocation26_spill] sm:$0xff] %v9340_v28  ;;  %v3584_v39 = vsel %vm3322_vm2, %v9340_v28, 0.0  ;;  %v9346_v24 = vpop.eup %7925 }
 0x3ed   : > { %10135 = vst [vmem:[#allocation27_spill] sm:$0xff] %v9346_v24  ;;  %v3575_v44 = vsel %vm3322_vm2, %v9346_v24, 0.0  ;;  %v9350_v32 = vpop.eup %7927 }
 0x3ee   : > { %3585 = vadd.xlane.f32.xlu1 %v3584_v39  ;;  %3570 = vadd.xlane.f32.xlu0 %v3569_v54  ;;  %10136 = vst [vmem:[#allocation28_spill] sm:$0xff] %v9350_v32  ;;  %v3581_v4 = vsel %vm3322_vm2, %v9350_v32, 0.0  ;;  %v1555_v39 = vcombine.high %v1483_v35, %v8654_v17 }
 0x3f2   : > { %3576 = vadd.xlane.f32.xlu0 %v3575_v44 }
 0x3f3   : > { %v9352_v27 = vpop.eup %7929 }
 0x3f4   : > { %10137 = vst [vmem:[#allocation29_spill] sm:$0xff] %v9352_v27  ;;  %v3590_v29 = vsel %vm3322_vm2, %v9352_v27, 0.0  ;;  %v9358_v7 = vpop.eup %7931 }
 0x3f5   : > { %3591 = vadd.xlane.f32.xlu1 %v3590_v29  ;;  %10138 = vst [vmem:[#allocation30_spill] sm:$0xff] %v9358_v7  ;;  %v3587_v56 = vsel %vm3322_vm2, %v9358_v7, 0.0 }
 0x3f6   : > { %3582 = vadd.xlane.f32.xlu0 %v3581_v4 }
 0x3fa   : > { %3588 = vadd.xlane.f32.xlu0 %v3587_v56  ;;  %v1562_v56 = vrot.slane %v1483_v35, %v8455_v33 }
 0x412   : > { %v3517_v51 = vpop.xlane.xlu1 %3516 }
 0x413   : > { %7933 = vrcp.f32 %v3517_v51 }
 0x416   : > { %v1476_v48 = vpop.permute.xlu1 %1475 }
 0x417   : > { %v1490_v3 = vshrl.u32 %v1476_v48, 16 }
 0x41a   : > { %v3520_v38 = vpop.xlane.xlu0 %3519 }
 0x41b   : > { %7935 = vrcp.f32 %v3520_v38  ;;  %v9380_v38 = vrot.slane %v1555_v39, %v8455_v33 }
 0x41e   : > { %v1474_v8 = vpop.permute.xlu0 %1473 }
 0x41f   : > { %v1487_v22 = vpack.i.b16 %v1476_v48, %v1474_v8  ;;  %v1489_v26 = vshrl.u32 %v1474_v8, 16 }
 0x421   : > { %v1491_v12 = vpack.i.b16 %v1490_v3, %v1489_v26  ;;  %v1508_v60 = vcombine.high %v1487_v22, %v8654_v17  ;;  %v1515_v14 = vrot.slane %v1487_v22, %v8455_v33 }
 0x423   : > { %v1522_v54 = vrot.slane %v1508_v60, %v8455_v33  ;;  %v1523_v44 = vcombine.low %v1500_v41, %v1515_v14  ;;  %v1524_v29 = vcombine.high %v1500_v41, %v1515_v14  ;;  %v1570_v4 = vcombine.high %v1491_v12, %v8654_v17 }
 0x424   : > { %v1577_v51 = vrot.slane %v1491_v12, %v8455_v33  ;;  %v7934_v12 = vpop.eup %7933 }
 0x425   : > { %v9377_v13 = vrot.slane %v1523_v44, %v8517_v30  ;;  %v1539_v59 = vcombine.low %v1507_v49, %v1522_v54  ;;  %v1540_v52 = vcombine.high %v1507_v49, %v1522_v54  ;;  %v9383_v48 = vrot.slane %v1570_v4, %v8455_v33  ;;  %v7936_v60 = vpop.eup %7935 }
 0x426   : > { %v1585_v42 = vcombine.low %v1562_v56, %v1577_v51  ;;  %v1586_v8 = vcombine.high %v1562_v56, %v1577_v51  ;;  %v1538_v3 = vrot.slane %v1524_v29, %v8517_v30  ;;  %v3643_v39 = vmul.f32 %v7934_v12, %v9219_v43 }
 0x427   : > { %v1623_v17 = vrot.slane %v9377_v13, %v8517_v30  ;;  %v1601_v26 = vcombine.low %v9380_v38, %v9383_v48  ;;  %v1602_v41 = vcombine.high %v9380_v38, %v9383_v48  ;;  %v1547_v54 = vrot.slane %v1539_v59, %v8517_v30 }
 0x428   : > { %v9389_v35 = vrot.slane %v1585_v42, %v8517_v30  ;;  %v1600_v22 = vrot.slane %v1586_v8, %v8517_v30  ;;  %v1657_v44 = vrot.slane %v1538_v3, %v8517_v30  ;;  %v3644_v48 = vmul.f32 %v7936_v60, %v9223_v50 }
 0x429   : > { %v1624_v49 = vcombine.high %v1623_v17, %v10114_v2  ;;  %v1756_v56 = vshrl.u32 %v1623_v17, 16  ;;  %v9407_v59 = vrot.slane %v1540_v52, %v8517_v30  ;;  %v1667_v12 = vcombine.high %v1538_v3, %v10114_v2 }
 0x42a   : > { %v1631_v14 = vrot.slane %v9389_v35, %v8517_v30  ;;  %v1665_v29 = vrot.slane %v1600_v22, %v8517_v30  ;;  %v1701_v55 = vcombine.high %v1547_v54, %v10114_v2  ;;  %v1780_v60 = vshrl.u32 %v1657_v44, 16 }
 0x42b   : > { %v1762_v42 = vshrl.u32 %v1624_v49, 16  ;;  %v3676_v52 = vpack.c.bf16 %v3644_v48, %v3644_v48 }
 0x42c   : > { %v1755_v4 = vpack.i.b16 %v1631_v14, %v1623_v17  ;;  %v1757_v51 = vshrl.u32 %v1631_v14, 16  ;;  %v1632_v38 = vcombine.high %v1631_v14, %v10114_v2  ;;  %v3675_v17 = vpack.c.bf16 %v3643_v39, %v3643_v39 }
 0x42d   : > { %v1781_v53 = vshrl.u32 %v1665_v29, 16 }
 0x42e   : > { %v3713_v8 = vsel %vm3711_vm3, %v1755_v4, 0  ;;  %v1758_v5 = vpack.i.b16 %v1757_v51, %v1756_v56  ;;  %v1761_v6 = vpack.i.b16 %v1632_v38, %v1624_v49  ;;  %v1763_v43 = vshrl.u32 %v1632_v38, 16 }
 0x42f   : > { %7485 = vmatpush3.bf16.msra.mxu0 %v3713_v8  ;;  %v1609_v4 = vrot.slane %v1601_v26, %v8517_v30  ;;  %v1676_v49 = vcombine.high %v1600_v22, %v10114_v2  ;;  %v1779_v56 = vpack.i.b16 %v1665_v29, %v1657_v44  ;;  %v1782_v39 = vpack.i.b16 %v1781_v53, %v1780_v60 }
 0x430   : > { %v3759_v14 = vsel %vm3711_vm3, %v1758_v5, 0  ;;  %7496 = vmatprep.subr.bf16.mxu0 %v10139_v15  ;;  %v1764_v50 = vpack.i.b16 %v1763_v43, %v1762_v42  ;;  %v3805_v3 = vsel %vm3711_vm3, %v1761_v6, 0  ;;  %v1658_v5 = vcombine.high %v1657_v44, %v10114_v2 }
 0x431   : > { %7491 = vmatpush3.bf16.msra.mxu1 %v3759_v14  ;;  %v1666_v51 = vcombine.high %v1665_v29, %v10114_v2  ;;  %v1735_v38 = vcombine.high %v9407_v59, %v10114_v2  ;;  %v9426_v26 = vsel %vm3711_vm3, %v1779_v56, 0  ;;  %v1674_v6 = vrot.slane %v1667_v12, %v8517_v30 }
 0x432   : > { %7487 = vmatmul.mubr.msk.bf16.vlgmr.msra.gmra.mrb[60].mxu0 %vm3707_vm4, %v3675_v17  ;;  %7502 = vmatprep.subr.bf16.mxu1 %v10139_v15  ;;  %v3851_v22 = vsel %vm3711_vm3, %v1764_v50, 0  ;;  %v9432_v53 = vsel %vm3711_vm3, %v1782_v39, 0  ;;  %v1786_v44 = vshrl.u32 %v1658_v5, 16  ;;  %v1616_v42 = vrot.slane %v1602_v41, %v8517_v30 }
 0x433   : > { %7497 = vmatpush3.bf16.msra.mxu0 %v3805_v3  ;;  %7498 = vmatprep.mubr.msk.bf16.mxu0 %vm8217_vm0, %v10139_v15  ;;  %v1787_v29 = vshrl.u32 %v1666_v51, 16  ;;  %v1785_v48 = vpack.i.b16 %v1666_v51, %v1658_v5  ;;  %v1683_v8 = vrot.slane %v1676_v49, %v8517_v30  ;;  %v1792_v43 = vshrl.u32 %v1674_v6, 16 }
 0x434   : > { %7493 = vmatmul.mubr.msk.bf16.vlgmr.msra.gmra.mrb[76].mxu1 %vm3707_vm4, %v3676_v52  ;;  %7508 = vmatprep.subr.bf16.mxu0 %v10139_v15  ;;  %v1675_v12 = vcombine.high %v1674_v6, %v10114_v2  ;;  %v1691_v50 = vrot.slane %v1547_v54, %v8517_v30  ;;  %v1699_v60 = vrot.slane %v1609_v4, %v8517_v30 }
 0x435   : > { %7503 = vmatpush3.bf16.msra.mxu1 %v3851_v22  ;;  %7504 = vmatprep.mubr.msk.bf16.mxu1 %vm8217_vm0, %v10139_v15  ;;  %v1788_v17 = vpack.i.b16 %v1787_v29, %v1786_v44  ;;  %v9441_v14 = vsel %vm3711_vm3, %v1785_v48, 0  ;;  %v1791_v41 = vpack.i.b16 %v1683_v8, %v1674_v6  ;;  %v1793_v52 = vshrl.u32 %v1683_v8, 16 }
 0x436   : > { %7514 = vmatprep.subr.bf16.mxu1 %v10139_v15  ;;  %v1684_v56 = vcombine.high %v1683_v8, %v10114_v2  ;;  %v1798_v3 = vshrl.u32 %v1675_v12, 16  ;;  %v1803_v39 = vpack.i.b16 %v1699_v60, %v1691_v50  ;;  %v1804_v5 = vshrl.u32 %v1691_v50, 16 }
 0x437   : > { %v9447_v49 = vsel %vm3711_vm3, %v1788_v17, 0  ;;  %v1805_v51 = vshrl.u32 %v1699_v60, 16  ;;  %v9450_v22 = vsel %vm3711_vm3, %v1791_v41, 0  ;;  %v1794_v44 = vpack.i.b16 %v1793_v52, %v1792_v43 }
 0x438   : > { %v1797_v29 = vpack.i.b16 %v1684_v56, %v1675_v12  ;;  %v1799_v48 = vshrl.u32 %v1684_v56, 16  ;;  %v9453_v54 = vsel %vm3711_vm3, %v1803_v39, 0  ;;  %v1692_v33 = vcombine.high %v1691_v50, %v10114_v2 }
 0x439   : > { %v1806_v6 = vpack.i.b16 %v1805_v51, %v1804_v5  ;;  %v1700_v8 = vcombine.high %v1699_v60, %v10114_v2  ;;  %v9458_v17 = vsel %vm3711_vm3, %v1794_v44, 0  ;;  %v1708_v41 = vrot.slane %v1701_v55, %v8517_v30 }
 0x43a   : > { %v9461_v7 = vsel %vm3711_vm3, %v1797_v29, 0  ;;  %v1800_v27 = vpack.i.b16 %v1799_v48, %v1798_v3  ;;  %v1810_v52 = vshrl.u32 %v1692_v33, 16  ;;  %v1710_v50 = vcombine.high %v1609_v4, %v10114_v2 }
 0x43b   : > { %v9465_v43 = vsel %vm3711_vm3, %v1806_v6, 0  ;;  %v1809_v12 = vpack.i.b16 %v1700_v8, %v1692_v33  ;;  %v1811_v56 = vshrl.u32 %v1700_v8, 16  ;;  %v1816_v60 = vshrl.u32 %v1708_v41, 16 }
 0x43c   : > { %v9468_v39 = vsel %vm3711_vm3, %v1800_v27, 0  ;;  %v1709_v5 = vcombine.high %v1708_v41, %v10114_v2  ;;  %v1725_v55 = vrot.slane %v9407_v59, %v8517_v30  ;;  %v1733_v44 = vrot.slane %v1616_v42, %v8517_v30 }
 0x43d   : > { %v9473_v51 = vsel %vm3711_vm3, %v1809_v12, 0  ;;  %v1812_v3 = vpack.i.b16 %v1811_v56, %v1810_v52  ;;  %v1717_v33 = vrot.slane %v1710_v50, %v8517_v30  ;;  %v1742_v27 = vrot.slane %v1735_v38, %v8517_v30 }
 0x43e   : > { %10140 = vst [vmem:[#allocation31_spill] sm:$0xff] %v9473_v51  ;;  %v1822_v29 = vshrl.u32 %v1709_v5, 16  ;;  %v1744_v48 = vcombine.high %v1616_v42, %v10114_v2  ;;  %v1827_v6 = vpack.i.b16 %v1733_v44, %v1725_v55  ;;  %v1828_v8 = vshrl.u32 %v1725_v55, 16 }
 0x43f   : > { %v9482_v4 = vsel %vm3711_vm3, %v1812_v3, 0  ;;  %v1829_v12 = vshrl.u32 %v1733_v44, 16  ;;  %v1815_v32 = vpack.i.b16 %v1717_v33, %v1708_v41  ;;  %v1817_v52 = vshrl.u32 %v1717_v33, 16 }
 0x440   : > { %v1718_v56 = vcombine.high %v1717_v33, %v10114_v2  ;;  %v1726_v59 = vcombine.high %v1725_v55, %v10114_v2  ;;  %v9487_v28 = vsel %vm3711_vm3, %v1827_v6, 0  ;;  %v1734_v38 = vcombine.high %v1733_v44, %v10114_v2 }
 0x441   : > { %v1830_v50 = vpack.i.b16 %v1829_v12, %v1828_v8  ;;  %v1751_v42 = vrot.slane %v1744_v48, %v8517_v30  ;;  %v9492_v3 = vsel %vm3711_vm3, %v1815_v32, 0  ;;  %v1818_v24 = vpack.i.b16 %v1817_v52, %v1816_v60 }
 0x442   : > { %v1821_v31 = vpack.i.b16 %v1718_v56, %v1709_v5  ;;  %v1823_v46 = vshrl.u32 %v1718_v56, 16  ;;  %v1833_v33 = vpack.i.b16 %v1734_v38, %v1726_v59  ;;  %v1834_v51 = vshrl.u32 %v1726_v59, 16 }
 0x443   : > { %v9495_v41 = vsel %vm3711_vm3, %v1830_v50, 0  ;;  %v1835_v55 = vshrl.u32 %v1734_v38, 16  ;;  %v9498_v6 = vsel %vm3711_vm3, %v1818_v24, 0  ;;  %v1839_v48 = vpack.i.b16 %v1751_v42, %v1742_v27 }
 0x444   : > { %v9501_v8 = vsel %vm3711_vm3, %v1821_v31, 0  ;;  %v1824_v44 = vpack.i.b16 %v1823_v46, %v1822_v29  ;;  %v9504_v32 = vsel %vm3711_vm3, %v1833_v33, 0  ;;  %v1840_v5 = vshrl.u32 %v1742_v27, 16 }
 0x445   : > { %v1836_v60 = vpack.i.b16 %v1835_v55, %v1834_v51  ;;  %v1841_v52 = vshrl.u32 %v1751_v42, 16  ;;  %v9510_v59 = vsel %vm3711_vm3, %v1839_v48, 0  ;;  %v1743_v24 = vcombine.high %v1742_v27, %v10114_v2 }
 0x446   : > { %v9507_v56 = vsel %vm3711_vm3, %v1824_v44, 0  ;;  %v1752_v29 = vcombine.high %v1751_v42, %v10114_v2  ;;  %v1642_v51 = vcombine.high %v9389_v35, %v10114_v2  ;;  %v1633_v27 = vcombine.high %v9377_v13, %v10114_v2 }
 0x447   : > { %v3523_v12 = vpop.xlane.xlu1 %3522  ;;  %v9514_v31 = vsel %vm3711_vm3, %v1836_v60, 0  ;;  %v1842_v46 = vpack.i.b16 %v1841_v52, %v1840_v5  ;;  %v1846_v55 = vshrl.u32 %v1743_v24, 16 }
 0x448   : > { %7937 = vrcp.f32 %v3523_v12  ;;  %v1845_v33 = vpack.i.b16 %v1752_v29, %v1743_v24  ;;  %v1847_v44 = vshrl.u32 %v1752_v29, 16  ;;  %v1649_v35 = vrot.slane %v1642_v51, %v8517_v30 }
 0x449   : > { %v9520_v38 = vsel %vm3711_vm3, %v1842_v46, 0  ;;  %v1640_v24 = vrot.slane %v1633_v27, %v8517_v30 }
 0x44a   : > { %v9526_v12 = vsel %vm3711_vm3, %v1845_v33, 0  ;;  %v1848_v60 = vpack.i.b16 %v1847_v44, %v1846_v55 }
 0x44b   : > { %v3403_v50 = vpop.xlane.xlu1 %3402  ;;  %10141 = vst [vmem:[#allocation32_spill] sm:$0xff] %v9526_v12  ;;  %v1767_v33 = vpack.i.b16 %v1649_v35, %v1640_v24 }
 0x44c   : > { %v3445_v48 = vsub.f32 %v9190_v25, %v3403_v50  ;;  %v9530_v46 = vsel %vm3711_vm3, %v1848_v60, 0 }
 0x44e   : > { %v3503_v42 = vmul.f32 1.442695, %v3445_v48 }
 0x44f   : > { %v3526_v5 = vpop.xlane.xlu0 %3525  ;;  %v3532_v52 = vpop.xlane.xlu1 %3531 }
 0x450   : > { %7939 = vpow2.f32 %v3503_v42  ;;  %v3897_v42 = vsel %vm3711_vm3, %v1767_v33, 0 }
 0x451   : > { %7941 = vrcp.f32 %v3526_v5  ;;  %v1769_v5 = vshrl.u32 %v1649_v35, 16 }
 0x452   : > { %v7938_v25 = vpop.eup %7937  ;;  %7943 = vrcp.f32 %v3532_v52 }
 0x453   : > { %v3645_v29 = vmul.f32 %v7938_v25, %v9235_v61  ;;  %v3406_v13 = vpop.xlane.xlu0 %3405  ;;  %v3412_v50 = vpop.xlane.xlu1 %3411 }
 0x454   : > { %v3446_v55 = vsub.f32 %v9208_v45, %v3406_v13  ;;  %v3448_v44 = vsub.f32 %v9210_v34, %v3412_v50  ;;  %v1768_v45 = vshrl.u32 %v1640_v24, 16 }
 0x455   : > { %v3677_v48 = vpack.c.bf16 %v3645_v29, %v3645_v29 }
 0x456   : > { %v3505_v51 = vmul.f32 1.442695, %v3446_v55  ;;  %v3509_v2 = vmul.f32 1.442695, %v3448_v44  ;;  %v1770_v13 = vpack.i.b16 %v1769_v5, %v1768_v45 }
 0x457   : > { %v3529_v60 = vpop.xlane.xlu0 %3528  ;;  %7499 = vmatmul.mubr.msk.bf16.vlgmr.msra.gmra.mrb[64].mxu0 %vm3707_vm4, %v3677_v48  ;;  %v3538_v27 = vpop.xlane.xlu1 %3537 }
 0x458   : > { %7945 = vpow2.f32 %v3505_v51  ;;  %7509 = vmatpush3.bf16.msra.mxu0 %v3897_v42  ;;  %7510 = vmatprep.mubr.msk.bf16.mxu0 %vm8217_vm0, %v10139_v15 }
 0x459   : > { %7947 = vpow2.f32 %v3509_v2  ;;  %7520 = vmatprep.subr.bf16.mxu0 %v10139_v15  ;;  %v10142_v2 = vmov 0  }
 0x45a   : > { %v9541_v34 = vpop.eup %7939  ;;  %7949 = vrcp.f32 %v3529_v60  ;;  %v1650_v44 = vcombine.high %v1649_v35, %v10142_v2  ;;  %v1641_v42 = vcombine.high %v1640_v24, %v10142_v2 }
 0x45b   : > { %v7942_v61 = vpop.eup %7941  ;;  %v3418_v52 = vpop.xlane.xlu1 %3417  ;;  %v3593_v29 = vsel %vm3322_vm2, %v9541_v34, 0.0  ;;  %7951 = vrcp.f32 %v3538_v27 }
 0x45c   : > { %v3409_v25 = vpop.xlane.xlu0 %3408  ;;  %v3646_v50 = vmul.f32 %v7942_v61, %v9241_v16  ;;  %v3450_v33 = vsub.f32 %v9212_v40, %v3418_v52  ;;  %3594 = vadd.xlane.f32.xlu0 %v3593_v29  ;;  %v7944_v30 = vpop.eup %7943  ;;  %v3943_v16 = vsel %vm3711_vm3, %v1770_v13, 0  ;;  %v1775_v5 = vshrl.u32 %v1650_v44, 16 }
 0x45d   : > { %v3447_v55 = vsub.f32 %v9196_v62, %v3409_v25  ;;  %v3648_v40 = vmul.f32 %v7944_v30, %v9245_v18  ;;  %v1774_v24 = vshrl.u32 %v1641_v42, 16  ;;  %v1773_v30 = vpack.i.b16 %v1650_v44, %v1641_v42 }
 0x45e   : > { %v3513_v48 = vmul.f32 1.442695, %v3450_v33  ;;  %v3678_v60 = vpack.c.bf16 %v3646_v50, %v3646_v50 }
 0x45f   : > { %v3507_v51 = vmul.f32 1.442695, %v3447_v55  ;;  %v3544_v35 = vpop.xlane.xlu1 %3543  ;;  %v1776_v29 = vpack.i.b16 %v1775_v5, %v1774_v24  ;;  %v3680_v50 = vpack.c.bf16 %v3648_v40, %v3648_v40 }
 0x460   : > { %v3535_v12 = vpop.xlane.xlu0 %3534  ;;  %7953 = vpow2.f32 %v3513_v48  ;;  %7505 = vmatmul.mubr.msk.bf16.vlgmr.msra.gmra.mrb[80].mxu1 %vm3707_vm4, %v3678_v60 }
 0x461   : > { %7955 = vpow2.f32 %v3507_v51  ;;  %7515 = vmatpush3.bf16.msra.mxu1 %v3943_v16  ;;  %7516 = vmatprep.mubr.msk.bf16.mxu1 %vm8217_vm0, %v10139_v15  ;;  %v4035_v51 = vsel %vm3711_vm3, %v1776_v29, 0 }
 0x462   : > { %v9554_v62 = vpop.eup %7945  ;;  %7526 = vmatprep.subr.bf16.mxu1 %v10139_v15  ;;  %7957 = vrcp.f32 %v3535_v12 }
 0x463   : > { %v9558_v27 = vpop.eup %7947  ;;  %v3596_v61 = vsel %vm3322_vm2, %v9554_v62, 0.0  ;;  %7959 = vrcp.f32 %v3544_v35  ;;  %v3550_v60 = vpop.xlane.xlu1 %3549 }
 0x464   : > { %v3415_v45 = vpop.xlane.xlu0 %3414  ;;  %v7950_v52 = vpop.eup %7949  ;;  %3597 = vadd.xlane.f32.xlu1 %v3596_v61  ;;  %v3602_v12 = vsel %vm3322_vm2, %v9558_v27, 0.0 }
 0x465   : > { %v3449_v25 = vsub.f32 %v9202_v37, %v3415_v45  ;;  %v3647_v13 = vmul.f32 %v7950_v52, %v9254_v23  ;;  %v7952_v33 = vpop.eup %7951  ;;  %v3989_v37 = vsel %vm3711_vm3, %v1773_v30, 0 }
 0x466   : > { %v3650_v44 = vmul.f32 %v7952_v33, %v9260_v0 }
 0x467   : > { %v3511_v18 = vmul.f32 1.442695, %v3449_v25  ;;  %v3679_v55 = vpack.c.bf16 %v3647_v13, %v3647_v13  ;;  %v3556_v29 = vpop.xlane.xlu1 %3555 }
 0x468   : > { %v3541_v48 = vpop.xlane.xlu0 %3540  ;;  %7517 = vmatmul.mubr.msk.bf16.vlgmr.msra.gmra.mrb[84].mxu1 %vm3707_vm4, %v3680_v50  ;;  %3603 = vadd.xlane.f32.xlu1 %v3602_v12  ;;  %v3682_v24 = vpack.c.bf16 %v3650_v44, %v3650_v44 }
 0x469   : > { %7961 = vpow2.f32 %v3511_v18  ;;  %7511 = vmatmul.mubr.msk.bf16.vlgmr.msra.gmra.mrb[68].mxu0 %vm3707_vm4, %v3679_v55  ;;  %7527 = vmatpush3.bf16.msra.mxu1 %v4035_v51 }
 0x46a   : > { %v9570_v23 = vpop.eup %7953  ;;  %7521 = vmatpush3.bf16.msra.mxu0 %v3989_v37  ;;  %7963 = vrcp.f32 %v3541_v48  ;;  %7522 = vmatprep.mubr.msk.bf16.mxu0 %vm8217_vm0, %v10139_v15 }
 0x46b   : > { %v9575_v42 = vpop.eup %7955  ;;  %v3608_v16 = vsel %vm3322_vm2, %v9570_v23, 0.0  ;;  %7528 = vmatprep.mubr.msk.bf16.mxu1 %vm8217_vm0, %v10139_v15  ;;  %7532 = vmatprep.subr.bf16.mxu0 %v10139_v15  ;;  %7965 = vrcp.f32 %v3550_v60  ;;  %v3562_v55 = vpop.xlane.xlu1 %3561 }
 0x46c   : > { %v3547_v5 = vpop.xlane.xlu0 %3546  ;;  %3609 = vadd.xlane.f32.xlu1 %v3608_v16  ;;  %v3599_v0 = vsel %vm3322_vm2, %v9575_v42, 0.0  ;;  %7538 = vmatprep.subr.bf16.mxu1 %v10139_v15  ;;  %v7958_v40 = vpop.eup %7957 }
 0x46d   : > { %3600 = vadd.xlane.f32.xlu0 %v3599_v0  ;;  %v3649_v35 = vmul.f32 %v7958_v40, %v9270_v21  ;;  %v7960_v45 = vpop.eup %7959  ;;  %7967 = vrcp.f32 %v3547_v5 }
 0x46e   : > { %v3652_v25 = vmul.f32 %v7960_v45, %v9276_v58  ;;  %7969 = vrcp.f32 %v3556_v29 }
 0x46f   : > { %v3681_v61 = vpack.c.bf16 %v3649_v35, %v3649_v35  ;;  %v3568_v37 = vpop.xlane.xlu1 %3567 }
 0x470   : > { %7529 = vmatmul.mubr.msk.bf16.vlgmr.msra.gmra.mrb[88].mxu1 %vm3707_vm4, %v3682_v24  ;;  %v3553_v13 = vpop.xlane.xlu0 %3552  ;;  %v3684_v30 = vpack.c.bf16 %v3652_v25, %v3652_v25 }
 0x471   : > { %7539 = vmatpush3.bf16.msra.mxu1 %v9432_v53  ;;  %7540 = vmatprep.mubr.msk.bf16.mxu1 %vm8217_vm0, %v10139_v15  ;;  %7971 = vrcp.f32 %v3553_v13 }
 0x472   : > { %7523 = vmatmul.mubr.msk.bf16.vlgmr.msra.gmra.mrb[72].mxu0 %vm3707_vm4, %v3681_v61  ;;  %7550 = vmatprep.subr.bf16.mxu1 %v10139_v15  ;;  %7973 = vrcp.f32 %v3562_v55 }
 0x473   : > { %v9590_v52 = vpop.eup %7961  ;;  %7533 = vmatpush3.bf16.msra.mxu0 %v9426_v26  ;;  %7534 = vmatprep.mubr.msk.bf16.mxu0 %vm8217_vm0, %v10139_v15  ;;  %v3574_v5 = vpop.xlane.xlu1 %3573 }
 0x474   : > { %v3605_v21 = vsel %vm3322_vm2, %v9590_v52, 0.0  ;;  %v7964_v53 = vpop.eup %7963  ;;  %7544 = vmatprep.subr.bf16.mxu0 %v10139_v15  ;;  %v3559_v48 = vpop.xlane.xlu0 %3558 }
 0x475   : > { %3606 = vadd.xlane.f32.xlu0 %v3605_v21  ;;  %v3651_v58 = vmul.f32 %v7964_v53, %v9287_v19  ;;  %v7966_v18 = vpop.eup %7965  ;;  %7975 = vrcp.f32 %v3559_v48  ;;  %v10144_v21 = vld [vmem:[#allocation25_spill] sm:$0xff] }
 0x476   : > { %v3654_v33 = vmul.f32 %v7966_v18, %v9284_v47  ;;  %7977 = vrcp.f32 %v3568_v37  ;;  %v10145_v18 = vld [vmem:[#allocation24_spill] sm:$0xff] }
 0x477   : > { %v3683_v50 = vpack.c.bf16 %v3651_v58, %v3651_v58  ;;  %v7968_v26 = vpop.eup %7967  ;;  %v3580_v24 = vpop.xlane.xlu1 %3579 }
 0x478   : > { %7541 = vmatmul.mubr.msk.bf16.vlgmr.msra.gmra.mrb[92].mxu1 %vm3707_vm4, %v3684_v30  ;;  %v3653_v19 = vmul.f32 %v7968_v26, %v9297_v9  ;;  %v7970_v12 = vpop.eup %7969  ;;  %v3565_v44 = vpop.xlane.xlu0 %3564 }
 0x479   : > { %7551 = vmatpush3.bf16.msra.mxu1 %v9447_v49  ;;  %7552 = vmatprep.mubr.msk.bf16.mxu1 %vm8217_vm0, %v10139_v15  ;;  %v3686_v49 = vpack.c.bf16 %v3654_v33, %v3654_v33  ;;  %7979 = vrcp.f32 %v3565_v44  ;;  %v10146_v33 = vld [vmem:[#allocation27_spill] sm:$0xff] }
 0x47a   : > { %7535 = vmatmul.mubr.msk.bf16.vlgmr.msra.gmra.mrb[76].mxu0 %vm3707_vm4, %v3683_v50  ;;  %7562 = vmatprep.subr.bf16.mxu1 %v10139_v15  ;;  %v3685_v47 = vpack.c.bf16 %v3653_v19, %v3653_v19  ;;  %7981 = vrcp.f32 %v3574_v5 }
 0x47b   : > { %7545 = vmatpush3.bf16.msra.mxu0 %v9441_v14  ;;  %7546 = vmatprep.mubr.msk.bf16.mxu0 %vm8217_vm0, %v10139_v15  ;;  %v7972_v51 = vpop.eup %7971  ;;  %v3656_v14 = vmul.f32 %v7970_v12, %v9294_v36  ;;  %v3586_v29 = vpop.xlane.xlu1 %3585 }
 0x47c   : > { %7556 = vmatprep.subr.bf16.mxu0 %v10139_v15  ;;  %v3655_v9 = vmul.f32 %v7972_v51, %v9306_v11  ;;  %v7974_v60 = vpop.eup %7973  ;;  %v3571_v0 = vpop.xlane.xlu0 %3570  ;;  %v10148_v51 = vld [vmem:[#allocation28_spill] sm:$0xff] }
 0x47d   : > { %7983 = vrcp.f32 %v3571_v0 }
 0x47e   : > { %v3687_v36 = vpack.c.bf16 %v3655_v9, %v3655_v9  ;;  %7985 = vrcp.f32 %v3580_v24 }
 0x47f   : > { %v7976_v16 = vpop.eup %7975 }
 0x480   : > { %7553 = vmatmul.mubr.msk.bf16.vlgmr.msra.gmra.mrb[96].mxu1 %vm3707_vm4, %v3686_v49  ;;  %v3657_v11 = vmul.f32 %v7976_v16, %v9316_v20  ;;  %v7978_v40 = vpop.eup %7977  ;;  %v3577_v45 = vpop.xlane.xlu0 %3576 }
 0x481   : > { %7563 = vmatpush3.bf16.msra.mxu1 %v9458_v17  ;;  %7564 = vmatprep.mubr.msk.bf16.mxu1 %vm8217_vm0, %v10139_v15  ;;  %v3688_v17 = vpack.c.bf16 %v3656_v14, %v3656_v14  ;;  %7987 = vrcp.f32 %v3577_v45 }
 0x482   : > { %7547 = vmatmul.mubr.msk.bf16.vlgmr.msra.gmra.mrb[80].mxu0 %vm3707_vm4, %v3685_v47  ;;  %7574 = vmatprep.subr.bf16.mxu1 %v10139_v15  ;;  %7989 = vrcp.f32 %v3586_v29  ;;  %v3592_v26 = vpop.xlane.xlu1 %3591 }
 0x483   : > { %7557 = vmatpush3.bf16.msra.mxu0 %v9450_v22  ;;  %7558 = vmatprep.mubr.msk.bf16.mxu0 %vm8217_vm0, %v10139_v15  ;;  %v3658_v22 = vmul.f32 %v7974_v60, %v9303_v1  ;;  %v3689_v1 = vpack.c.bf16 %v3657_v11, %v3657_v11  ;;  %v7980_v35 = vpop.eup %7979  ;;  %v10150_v60 = vld [vmem:[#allocation30_spill] sm:$0xff] }
 0x484   : > { %7568 = vmatprep.subr.bf16.mxu0 %v10139_v15  ;;  %v3659_v20 = vmul.f32 %v7980_v35, %v9325_v10  ;;  %v7982_v61 = vpop.eup %7981  ;;  %v10143_v10 = vld [vmem:[#allocation31_spill] sm:$0xff]  ;;  %v3583_v13 = vpop.xlane.xlu0 %3582 }
 0x485   : > { %7991 = vrcp.f32 %v3583_v13 }
 0x486   : > { %7993 = vrcp.f32 %v3592_v26 }
 0x487   : > { %v7984_v25 = vpop.eup %7983 }
 0x488   : > { %7565 = vmatmul.mubr.msk.bf16.vlgmr.msra.gmra.mrb[100].mxu1 %vm3707_vm4, %v3688_v17  ;;  %v3661_v53 = vmul.f32 %v7984_v25, %v10144_v21  ;;  %v7986_v58 = vpop.eup %7985  ;;  %v3589_v19 = vpop.xlane.xlu0 %3588  ;;  %v10149_v17 = vld [vmem:[#allocation29_spill] sm:$0xff] }
 0x489   : > { %7575 = vmatpush3.bf16.msra.mxu1 %v9468_v39  ;;  %7576 = vmatprep.mubr.msk.bf16.mxu1 %vm8217_vm0, %v10139_v15  ;;  %v3690_v39 = vpack.c.bf16 %v3658_v22, %v3658_v22  ;;  %v3664_v50 = vmul.f32 %v7986_v58, %v10145_v18  ;;  %7995 = vrcp.f32 %v3589_v19 }
 0x48a   : > { %7559 = vmatmul.mubr.msk.bf16.vlgmr.msra.gmra.mrb[84].mxu0 %vm3707_vm4, %v3687_v36  ;;  %7586 = vmatprep.subr.bf16.mxu1 %v10139_v15 }
 0x48b   : > { %7569 = vmatpush3.bf16.msra.mxu0 %v9461_v7  ;;  %7570 = vmatprep.mubr.msk.bf16.mxu0 %vm8217_vm0, %v10139_v15  ;;  %v3660_v7 = vmul.f32 %v7978_v40, %v9313_v63  ;;  %v3691_v63 = vpack.c.bf16 %v3659_v20, %v3659_v20  ;;  %v7988_v30 = vpop.eup %7987 }
 0x48c   : > { %7580 = vmatprep.subr.bf16.mxu0 %v10139_v15  ;;  %v3663_v55 = vmul.f32 %v7988_v30, %v10146_v33  ;;  %v7990_v48 = vpop.eup %7989 }
 0x48e   : > { %v3695_v49 = vpack.c.bf16 %v3663_v55, %v3663_v55  ;;  %v10152_v55 = vld [vmem:[#allocation20_spill] sm:$0xff] }
 0x48f   : > { %v7992_v12 = vpop.eup %7991 }
 0x490   : > { %7577 = vmatmul.mubr.msk.bf16.vlgmr.msra.gmra.mrb[104].mxu1 %vm3707_vm4, %v3690_v39  ;;  %v3665_v14 = vmul.f32 %v7992_v12, %v10148_v51 }
 0x491   : > { %7587 = vmatpush3.bf16.msra.mxu1 %v9465_v43  ;;  %7588 = vmatprep.mubr.msk.bf16.mxu1 %vm8217_vm0, %v10139_v15  ;;  %v3692_v43 = vpack.c.bf16 %v3660_v7, %v3660_v7 }
 0x492   : > { %7571 = vmatmul.mubr.msk.bf16.vlgmr.msra.gmra.mrb[88].mxu0 %vm3707_vm4, %v3689_v1  ;;  %7598 = vmatprep.subr.bf16.mxu1 %v10139_v15  ;;  %v3697_v9 = vpack.c.bf16 %v3665_v14, %v3665_v14 }
 0x493   : > { %7581 = vmatpush3.bf16.msra.mxu0 %v9453_v54  ;;  %7582 = vmatprep.mubr.msk.bf16.mxu0 %vm8217_vm0, %v10139_v15  ;;  %v3662_v54 = vmul.f32 %v7982_v61, %v9322_v57  ;;  %v3693_v57 = vpack.c.bf16 %v3661_v53, %v3661_v53 }
 0x494   : > { %7592 = vmatprep.subr.bf16.mxu0 %v10139_v15 }
 0x498   : > { %7589 = vmatmul.mubr.msk.bf16.vlgmr.msra.gmra.mrb[108].mxu1 %vm3707_vm4, %v3692_v43 }
 0x499   : > { %7599 = vmatpush3.bf16.msra.mxu1 %v9482_v4  ;;  %7600 = vmatprep.mubr.msk.bf16.mxu1 %vm8217_vm0, %v10139_v15  ;;  %v3694_v4 = vpack.c.bf16 %v3662_v54, %v3662_v54 }
 0x49a   : > { %7583 = vmatmul.mubr.msk.bf16.vlgmr.msra.gmra.mrb[92].mxu0 %vm3707_vm4, %v3691_v63  ;;  %7610 = vmatprep.subr.bf16.mxu1 %v10139_v15 }
 0x49b   : > { %7593 = vmatpush3.bf16.msra.mxu0 %v10143_v10  ;;  %7594 = vmatprep.mubr.msk.bf16.mxu0 %vm8217_vm0, %v10139_v15 }
 0x49c   : > { %7604 = vmatprep.subr.bf16.mxu0 %v10139_v15 }
 0x4a0   : > { %7601 = vmatmul.mubr.msk.bf16.vlgmr.msra.gmra.mrb[112].mxu1 %vm3707_vm4, %v3694_v4 }
 0x4a1   : > { %7611 = vmatpush3.bf16.msra.mxu1 %v9498_v6  ;;  %7612 = vmatprep.mubr.msk.bf16.mxu1 %vm8217_vm0, %v10139_v15  ;;  %v3696_v6 = vpack.c.bf16 %v3664_v50, %v3664_v50 }
 0x4a2   : > { %7595 = vmatmul.mubr.msk.bf16.vlgmr.msra.gmra.mrb[96].mxu0 %vm3707_vm4, %v3693_v57  ;;  %7622 = vmatprep.subr.bf16.mxu1 %v10139_v15 }
 0x4a3   : > { %7605 = vmatpush3.bf16.msra.mxu0 %v9492_v3  ;;  %7606 = vmatprep.mubr.msk.bf16.mxu0 %vm8217_vm0, %v10139_v15  ;;  %v10147_v3 = vld [vmem:[#allocation26_spill] sm:$0xff] }
 0x4a4   : > { %7616 = vmatprep.subr.bf16.mxu0 %v10139_v15  ;;  %v3666_v47 = vmul.f32 %v7990_v48, %v10147_v3 }
 0x4a6   : > { %v3698_v37 = vpack.c.bf16 %v3666_v47, %v3666_v47 }
 0x4a8   : > { %7613 = vmatmul.mubr.msk.bf16.vlgmr.msra.gmra.mrb[116].mxu1 %vm3707_vm4, %v3696_v6 }
 0x4a9   : > { %7623 = vmatpush3.bf16.msra.mxu1 %v9507_v56  ;;  %7624 = vmatprep.mubr.msk.bf16.mxu1 %vm8217_vm0, %v10139_v15  ;;  %v7994_v56 = vpop.eup %7993 }
 0x4aa   : > { %7607 = vmatmul.mubr.msk.bf16.vlgmr.msra.gmra.mrb[100].mxu0 %vm3707_vm4, %v3695_v49  ;;  %7634 = vmatprep.subr.bf16.mxu1 %v10139_v15  ;;  %v7996_v44 = vpop.eup %7995 }
 0x4ab   : > { %7617 = vmatpush3.bf16.msra.mxu0 %v9501_v8  ;;  %7618 = vmatprep.mubr.msk.bf16.mxu0 %vm8217_vm0, %v10139_v15  ;;  %v3668_v8 = vmul.f32 %v7994_v56, %v10149_v17  ;;  %v3667_v36 = vmul.f32 %v7996_v44, %v10150_v60 }
 0x4ac   : > { %7628 = vmatprep.subr.bf16.mxu0 %v10139_v15 }
 0x4ad   : > { %v3700_v16 = vpack.c.bf16 %v3668_v8, %v3668_v8 }
 0x4b0   : > { %7625 = vmatmul.mubr.msk.bf16.vlgmr.msra.gmra.mrb[120].mxu1 %vm3707_vm4, %v3698_v37 }
 0x4b1   : > { %7635 = vmatpush3.bf16.msra.mxu1 %v9495_v41  ;;  %7636 = vmatprep.mubr.msk.bf16.mxu1 %vm8217_vm0, %v10139_v15  ;;  %v3699_v41 = vpack.c.bf16 %v3667_v36, %v3667_v36 }
 0x4b2   : > { %7619 = vmatmul.mubr.msk.bf16.vlgmr.msra.gmra.mrb[104].mxu0 %vm3707_vm4, %v3697_v9  ;;  %7646 = vmatprep.subr.bf16.mxu1 %v10139_v15 }
 0x4b3   : > { %7629 = vmatpush3.bf16.msra.mxu0 %v9487_v28  ;;  %7630 = vmatprep.mubr.msk.bf16.mxu0 %vm8217_vm0, %v10139_v15 }
 0x4b4   : > { %7640 = vmatprep.subr.bf16.mxu0 %v10139_v15 }
 0x4b8   : > { %7637 = vmatmul.mubr.msk.bf16.vlgmr.msra.gmra.mrb[124].mxu1 %vm3707_vm4, %v3700_v16 }
 0x4b9   : > { %7647 = vmatpush3.bf16.msra.mxu1 %v9514_v31  ;;  %7648 = vmatprep.mubr.msk.bf16.mxu1 %vm8217_vm0, %v10139_v15 }
 0x4ba   : > { %7631 = vmatmul.mubr.msk.bf16.vlgmr.msra.gmra.mrb[108].mxu0 %vm3707_vm4, %v3699_v41  ;;  %7658 = vmatprep.subr.bf16.mxu1 %v10139_v15 }
 0x4bb   : > { %7641 = vmatpush3.bf16.msra.mxu0 %v9504_v32  ;;  %7642 = vmatprep.mubr.msk.bf16.mxu0 %vm8217_vm0, %v10139_v15 }
 0x4bc   : > { %7652 = vmatprep.subr.bf16.mxu0 %v10139_v15 }
 0x4e9   : > { %v3595_v28 = vpop.xlane.xlu0 %3594 }
 0x4ea   : > { %7997 = vrcp.f32 %v3595_v28 }
 0x4f1   : > { %v3598_v22 = vpop.xlane.xlu1 %3597 }
 0x4f2   : > { %7999 = vrcp.f32 %v3598_v22 }
 0x4f4   : > { %v7998_v5 = vpop.eup %7997 }
 0x4f5   : > { %v3669_v31 = vmul.f32 %v7998_v5, %v9541_v34  ;;  %v3604_v11 = vpop.xlane.xlu1 %3603 }
 0x4f6   : > { %8001 = vrcp.f32 %v3604_v11 }
 0x4f7   : > { %v3701_v0 = vpack.c.bf16 %v3669_v31, %v3669_v31 }
 0x4f9   : > { %7643 = vmatmul.mubr.msk.bf16.vlgmr.msra.gmra.mrb[112].mxu0 %vm3707_vm4, %v3701_v0  ;;  %v3610_v39 = vpop.xlane.xlu1 %3609 }
 0x4fa   : > { %7653 = vmatpush3.bf16.msra.mxu0 %v9510_v59  ;;  %v3601_v32 = vpop.xlane.xlu0 %3600  ;;  %7654 = vmatprep.mubr.msk.bf16.mxu0 %vm8217_vm0, %v10139_v15 }
 0x4fb   : > { %8003 = vrcp.f32 %v3601_v32  ;;  %7664 = vmatprep.subr.bf16.mxu0 %v10139_v15  ;;  %v10153_v32 = vld [vmem:[#allocation23_spill] sm:$0xff] }
 0x4fc   : > { %v8000_v40 = vpop.eup %7999  ;;  %8005 = vrcp.f32 %v3610_v39 }
 0x4fd   : > { %v3670_v1 = vmul.f32 %v8000_v40, %v9554_v62 }
 0x4ff   : > { %v3702_v34 = vpack.c.bf16 %v3670_v1, %v3670_v1 }
 0x500   : > { %v8002_v35 = vpop.eup %8001 }
 0x501   : > { %7649 = vmatmul.mubr.msk.bf16.vlgmr.msra.gmra.mrb[128].mxu1 %vm3707_vm4, %v3702_v34  ;;  %v3672_v59 = vmul.f32 %v8002_v35, %v9558_v27 }
 0x502   : > { %v3607_v7 = vpop.xlane.xlu0 %3606  ;;  %7659 = vmatpush3.bf16.msra.mxu1 %v9520_v38  ;;  %7660 = vmatprep.mubr.msk.bf16.mxu1 %vm8217_vm0, %v10139_v15 }
 0x503   : > { %8007 = vrcp.f32 %v3607_v7  ;;  %7670 = vmatprep.subr.bf16.mxu1 %v10139_v15  ;;  %v3704_v43 = vpack.c.bf16 %v3672_v59, %v3672_v59 }
 0x505   : > { %v8004_v24 = vpop.eup %8003  ;;  %v3749_v62 = vpop.f32.mrb[60].mxu0 }
 0x506   : > { %v3671_v20 = vmul.f32 %v8004_v24, %v9575_v42  ;;  %v7488_v45 = vpop.f32.mrb[61].mxu0  ;;  %v8006_v61 = vpop.eup %8005  ;;  %v10151_v42 = vld [vmem:[#allocation32_spill] sm:$0xff] }
 0x507   : > { %v3752_v63 = vpop.f32.mrb[62].mxu0  ;;  %v3795_v25 = vpop.f32.mrb[76].mxu1  ;;  %v3674_v27 = vmul.f32 %v8006_v61, %v9570_v23 }
 0x508   : > { %v3703_v54 = vpack.c.bf16 %v3671_v20, %v3671_v20  ;;  %v7489_v29 = vpop.f32.mrb[63].mxu0  ;;  %v7494_v38 = vpop.f32.mrb[77].mxu1 }
 0x509   : > { %7661 = vmatmul.mubr.msk.bf16.vlgmr.msra.gmra.mrb[132].mxu1 %vm3707_vm4, %v3704_v43  ;;  %v3798_v10 = vpop.f32.mrb[78].mxu1  ;;  %v3706_v58 = vpack.c.bf16 %v3674_v27, %v3674_v27 }
 0x50a   : > { %7655 = vmatmul.mubr.msk.bf16.vlgmr.msra.gmra.mrb[116].mxu0 %vm3707_vm4, %v3703_v54  ;;  %7671 = vmatpush3.bf16.msra.mxu1 %v9530_v46  ;;  %v7495_v21 = vpop.f32.mrb[79].mxu1 }
 0x50b   : > { %7665 = vmatpush3.bf16.msra.mxu0 %v10151_v42  ;;  %7666 = vmatprep.mubr.msk.bf16.mxu0 %vm8217_vm0, %v10139_v15 }
 0x50c   : > { %7672 = vmatprep.mubr.msk.bf16.mxu1 %vm8217_vm0, %v10139_v15  ;;  %7676 = vmatprep.subr.bf16.mxu0 %v10139_v15 }
 0x50d   : > { %v8008_v53 = vpop.eup %8007 }
 0x50e   : > { %v3673_v13 = vmul.f32 %v8008_v53, %v9590_v52 }
 0x510   : > { %v3705_v4 = vpack.c.bf16 %v3673_v13, %v3673_v13 }
 0x511   : > { %7673 = vmatmul.mubr.msk.bf16.vlgmr.msra.gmra.mrb[136].mxu1 %vm3707_vm4, %v3706_v58 }
 0x512   : > { %7667 = vmatmul.mubr.msk.bf16.vlgmr.msra.gmra.mrb[120].mxu0 %vm3707_vm4, %v3705_v4  ;;  %6230 = vmatprep.mubr.bf16.mxu1 %v10142_v2 }
 0x513   : > { %7692 = vmatprep.mubr.msk.bf16.mxu0 %vm8217_vm0, %v10139_v15 }
 0x52a   : > { %v3841_v46 = vpop.f32.mrb[64].mxu0 }
 0x52b   : > { %v5181_v23 = vcombine.low %v3749_v62, %v3841_v46  ;;  %v7500_v57 = vpop.f32.mrb[65].mxu0 }
 0x52c   : > { %v3844_v30 = vpop.f32.mrb[66].mxu0 }
 0x52d   : > { %v7501_v18 = vpop.f32.mrb[67].mxu0  ;;  %v5188_v19 = vrot.slane %v5181_v23, %v10152_v55 }
 0x533   : > { %v3887_v50 = vpop.f32.mrb[80].mxu1 }
 0x534   : > { %v5189_v26 = vcombine.low %v3795_v25, %v3887_v50  ;;  %v7506_v33 = vpop.f32.mrb[81].mxu1 }
 0x535   : > { %v3890_v52 = vpop.f32.mrb[82].mxu1 }
 0x536   : > { %v5196_v6 = vrot.slane %v5189_v26, %v10152_v55  ;;  %v7507_v48 = vpop.f32.mrb[83].mxu1 }
 0x538   : > { %v5197_v49 = vcombine.low %v5188_v19, %v5196_v6 }
 0x53a   : > { %v5204_v39 = vrot.slane %v5197_v49, %v10153_v32 }
 0x53b   : > { %v3979_v12 = vpop.f32.mrb[84].mxu1 }
 0x53c   : > { %v3933_v2 = vpop.f32.mrb[68].mxu0  ;;  %v7518_v3 = vpop.f32.mrb[85].mxu1 }
 0x53d   : > { %v7512_v47 = vpop.f32.mrb[69].mxu0  ;;  %v3982_v51 = vpop.f32.mrb[86].mxu1 }
 0x53e   : > { %v3936_v14 = vpop.f32.mrb[70].mxu0  ;;  %v7519_v37 = vpop.f32.mrb[87].mxu1 }
 0x53f   : > { %v7513_v56 = vpop.f32.mrb[71].mxu0 }
 0x543   : > { %v4071_v9 = vpop.f32.mrb[88].mxu1 }
 0x544   : > { %v5214_v44 = vcombine.low %v3979_v12, %v4071_v9  ;;  %v7530_v17 = vpop.f32.mrb[89].mxu1 }
 0x545   : > { %v4025_v8 = vpop.f32.mrb[72].mxu0  ;;  %v4074_v60 = vpop.f32.mrb[90].mxu1 }
 0x546   : > { %v5206_v36 = vcombine.low %v3933_v2, %v4025_v8  ;;  %v5221_v16 = vrot.slane %v5214_v44, %v10152_v55  ;;  %v7524_v41 = vpop.f32.mrb[73].mxu0  ;;  %v7531_v28 = vpop.f32.mrb[91].mxu1 }
 0x547   : > { %v4028_v22 = vpop.f32.mrb[74].mxu0 }
 0x548   : > { %v5213_v5 = vrot.slane %v5206_v36, %v10152_v55  ;;  %v7525_v31 = vpop.f32.mrb[75].mxu0 }
 0x54a   : > { %v5222_v11 = vcombine.low %v5213_v5, %v5221_v16 }
 0x54b   : > { %v4163_v0 = vpop.f32.mrb[92].mxu1 }
 0x54c   : > { %v5229_v40 = vrot.slane %v5222_v11, %v10153_v32  ;;  %v7542_v1 = vpop.f32.mrb[93].mxu1 }
 0x54d   : > { %v4117_v34 = vpop.f32.mrb[76].mxu0  ;;  %v4166_v35 = vpop.f32.mrb[94].mxu1 }
 0x54e   : > { %v5381_v7 = vcombine.low %v5204_v39, %v5229_v40  ;;  %v7046_v59 = vcombine.high %v5204_v39, %v5229_v40  ;;  %v7536_v24 = vpop.f32.mrb[77].mxu0  ;;  %v7543_v20 = vpop.f32.mrb[95].mxu1 }
 0x54f   : > { %v4120_v62 = vpop.f32.mrb[78].mxu0 }
 0x550   : > { %v5388_v45 = vrot.slane %v5381_v7, %v10152_v55  ;;  %v5396_v43 = vrot.slane %v7046_v59, %v10152_v55  ;;  %v7537_v61 = vpop.f32.mrb[79].mxu0 }
 0x552   : > { %v5414_v63 = vcombine.high %v5388_v45, %v5396_v43  ;;  %v5413_v25 = vcombine.low %v5388_v45, %v5396_v43 }
 0x553   : > { %v4255_v54 = vpop.f32.mrb[96].mxu1 }
 0x554   : > { %v5239_v29 = vcombine.low %v4163_v0, %v4255_v54  ;;  %v7554_v38 = vpop.f32.mrb[97].mxu1  ;;  %v9755_v7 = vrot.slane %v5414_v63, %v10153_v32  ;;  %v9761_v62 = vrot.slane %v5413_v25, %v10153_v32 }
 0x555   : > { %v4209_v10 = vpop.f32.mrb[80].mxu0  ;;  %v4258_v27 = vpop.f32.mrb[98].mxu1 }
 0x556   : > { %v5231_v21 = vcombine.low %v4117_v34, %v4209_v10  ;;  %v5246_v42 = vrot.slane %v5239_v29, %v10152_v55  ;;  %v7548_v53 = vpop.f32.mrb[81].mxu0  ;;  %v7555_v13 = vpop.f32.mrb[99].mxu1 }
 0x557   : > { %v4212_v4 = vpop.f32.mrb[82].mxu0 }
 0x558   : > { %v5238_v58 = vrot.slane %v5231_v21, %v10152_v55  ;;  %v7549_v46 = vpop.f32.mrb[83].mxu0 }
 0x55a   : > { %v5247_v23 = vcombine.low %v5238_v58, %v5246_v42 }
 0x55b   : > { %v4347_v57 = vpop.f32.mrb[100].mxu1 }
 0x55c   : > { %v7566_v30 = vpop.f32.mrb[101].mxu1  ;;  %v5254_v8 = vrot.slane %v5247_v23, %v10153_v32 }
 0x55d   : > { %v4301_v18 = vpop.f32.mrb[84].mxu0  ;;  %v4350_v50 = vpop.f32.mrb[102].mxu1 }
 0x55e   : > { %v7560_v26 = vpop.f32.mrb[85].mxu0  ;;  %v7567_v33 = vpop.f32.mrb[103].mxu1 }
 0x55f   : > { %v4304_v52 = vpop.f32.mrb[86].mxu0  ;;  %v7833_v33 = vld [vmem:[%s9777_s15] sm:$0xff]  }
 0x560   : > { %v7561_v19 = vpop.f32.mrb[87].mxu0  ;;  %7677 = vmatpush3.bf16.msra.mxu0 %v7833_v33  ;;  %v7834_v52 = vld [vmem:[%s9777_s15 + $0x8] sm:$0xff]  }
 0x561   : > { %7678 = vmatprep.subr.bf16.mxu0 %v10139_v15 }
 0x563   : > { %v4439_v6 = vpop.f32.mrb[104].mxu1 }
 0x564   : > { %v5264_v48 = vcombine.low %v4347_v57, %v4439_v6  ;;  %v7578_v49 = vpop.f32.mrb[105].mxu1  ;;  %7679 = vmatpush3.bf16.msra.mxu0 %v7834_v52 }
 0x565   : > { %v4393_v12 = vpop.f32.mrb[88].mxu0  ;;  %v4442_v2 = vpop.f32.mrb[106].mxu1  ;;  %7680 = vmatprep.subr.bf16.mxu0 %v10139_v15 }
 0x566   : > { %v5256_v3 = vcombine.low %v4301_v18, %v4393_v12  ;;  %v5271_v47 = vrot.slane %v5264_v48, %v10152_v55  ;;  %v7572_v51 = vpop.f32.mrb[89].mxu0  ;;  %v7579_v14 = vpop.f32.mrb[107].mxu1 }
 0x567   : > { %v4396_v37 = vpop.f32.mrb[90].mxu0  ;;  %v7835_v14 = vld [vmem:[%s9777_s15 + $0x10] sm:$0xff]  }
 0x568   : > { %v5263_v56 = vrot.slane %v5256_v3, %v10152_v55  ;;  %v7573_v9 = vpop.f32.mrb[91].mxu0  ;;  %7681 = vmatpush3.bf16.msra.mxu0 %v7835_v14 }
 0x569   : > { %7682 = vmatprep.subr.bf16.mxu0 %v10139_v15 }
 0x56a   : > { %v5272_v44 = vcombine.low %v5263_v56, %v5271_v47 }
 0x56b   : > { %v4531_v17 = vpop.f32.mrb[108].mxu1 }
 0x56c   : > { %v5279_v60 = vrot.slane %v5272_v44, %v10153_v32  ;;  %v7590_v36 = vpop.f32.mrb[109].mxu1 }
 0x56d   : > { %v4485_v16 = vpop.f32.mrb[92].mxu0  ;;  %v4534_v41 = vpop.f32.mrb[110].mxu1 }
 0x56e   : > { %v5397_v28 = vcombine.low %v5254_v8, %v5279_v60  ;;  %v7047_v22 = vcombine.high %v5254_v8, %v5279_v60  ;;  %v7584_v5 = vpop.f32.mrb[93].mxu0  ;;  %v7591_v31 = vpop.f32.mrb[111].mxu1 }
 0x56f   : > { %v4488_v11 = vpop.f32.mrb[94].mxu0 }
 0x570   : > { %v5404_v0 = vrot.slane %v5397_v28, %v10152_v55  ;;  %v5412_v39 = vrot.slane %v7047_v22, %v10152_v55  ;;  %v7585_v40 = vpop.f32.mrb[95].mxu0 }
 0x572   : > { %v5430_v1 = vcombine.high %v5404_v0, %v5412_v39  ;;  %v5429_v34 = vcombine.low %v5404_v0, %v5412_v39  ;;  %v7837_v0 = vld [vmem:[%s9777_s15 + $0x20] sm:$0xff]  }
 0x573   : > { %v4623_v35 = vpop.f32.mrb[112].mxu1 }
 0x574   : > { %v5289_v59 = vcombine.low %v4531_v17, %v4623_v35  ;;  %v7602_v24 = vpop.f32.mrb[113].mxu1  ;;  %v9758_v20 = vrot.slane %v5430_v1, %v10153_v32  ;;  %v9764_v45 = vrot.slane %v5429_v34, %v10153_v32  ;;  %v7836_v17 = vld [vmem:[%s9777_s15 + $0x18] sm:$0xff]  }
 0x575   : > { %v4577_v43 = vpop.f32.mrb[96].mxu0  ;;  %v4626_v61 = vpop.f32.mrb[114].mxu1  ;;  %7683 = vmatpush3.bf16.msra.mxu0 %v7836_v17  ;;  %v7838_v24 = vld [vmem:[%s9777_s15 + $0x28] sm:$0xff]  }
 0x576   : > { %v5281_v54 = vcombine.low %v4485_v16, %v4577_v43  ;;  %v5296_v29 = vrot.slane %v5289_v59, %v10152_v55  ;;  %v7596_v38 = vpop.f32.mrb[97].mxu0  ;;  %v7603_v63 = vpop.f32.mrb[115].mxu1  ;;  %v5447_v10 = vcombine.low %v9755_v7, %v9758_v20  ;;  %v5445_v27 = vcombine.low %v9761_v62, %v9764_v45  ;;  %7684 = vmatprep.subr.bf16.mxu0 %v10139_v15 }
 0x577   : > { %v4580_v21 = vpop.f32.mrb[98].mxu0  ;;  %v5446_v25 = vcombine.high %v9761_v62, %v9764_v45  ;;  %v5448_v42 = vcombine.high %v9755_v7, %v9758_v20  ;;  %v9833_v62 = vld [vmem:[%s435_s12] sm:$0x3f] }
 0x578   : > { %v5288_v53 = vrot.slane %v5281_v54, %v10152_v55  ;;  %v7597_v13 = vpop.f32.mrb[99].mxu0  ;;  %v10154_v45 = vld [vmem:[#allocation21_spill] sm:$0xff] }
 0x579   : > { %7685 = vmatpush3.bf16.msra.mxu0 %v7837_v0 }
 0x57a   : > { %v5297_v4 = vcombine.low %v5288_v53, %v5296_v29  ;;  %7686 = vmatprep.subr.bf16.mxu0 %v10139_v15 }
 0x57b   : > { %v4715_v58 = vpop.f32.mrb[116].mxu1 }
 0x57c   : > { %v7614_v46 = vpop.f32.mrb[117].mxu1  ;;  %v5304_v60 = vrot.slane %v5297_v4, %v10153_v32 }
 0x57d   : > { %v4669_v23 = vpop.f32.mrb[100].mxu0  ;;  %v4718_v57 = vpop.f32.mrb[118].mxu1  ;;  %7687 = vmatpush3.bf16.msra.mxu0 %v7838_v24 }
 0x57e   : > { %v7608_v30 = vpop.f32.mrb[101].mxu0  ;;  %v7615_v18 = vpop.f32.mrb[119].mxu1  ;;  %7688 = vmatprep.subr.bf16.mxu0 %v10139_v15 }
 0x57f   : > { %v4672_v50 = vpop.f32.mrb[102].mxu0 }
 0x580   : > { %v7609_v26 = vpop.f32.mrb[103].mxu0 }
 0x583   : > { %v4807_v19 = vpop.f32.mrb[120].mxu1 }
 0x584   : > { %v5314_v6 = vcombine.low %v4715_v58, %v4807_v19  ;;  %v7626_v48 = vpop.f32.mrb[121].mxu1 }
 0x585   : > { %v4761_v49 = vpop.f32.mrb[104].mxu0  ;;  %v4810_v12 = vpop.f32.mrb[122].mxu1 }
 0x586   : > { %v5306_v2 = vcombine.low %v4669_v23, %v4761_v49  ;;  %v5321_v3 = vrot.slane %v5314_v6, %v10152_v55  ;;  %v7620_v47 = vpop.f32.mrb[105].mxu0  ;;  %v7627_v51 = vpop.f32.mrb[123].mxu1 }
 0x587   : > { %v4764_v37 = vpop.f32.mrb[106].mxu0 }
 0x588   : > { %v5313_v56 = vrot.slane %v5306_v2, %v10152_v55  ;;  %v7621_v9 = vpop.f32.mrb[107].mxu0 }
 0x58a   : > { %v5322_v44 = vcombine.low %v5313_v56, %v5321_v3 }
 0x58b   : > { %v4899_v8 = vpop.f32.mrb[124].mxu1 }
 0x58c   : > { %v5329_v36 = vrot.slane %v5322_v44, %v10153_v32  ;;  %v7638_v16 = vpop.f32.mrb[125].mxu1 }
 0x58d   : > { %v4853_v41 = vpop.f32.mrb[108].mxu0  ;;  %v4902_v28 = vpop.f32.mrb[126].mxu1  ;;  %v7839_v16 = vld [vmem:[%s9777_s15 + $0x30] sm:$0xff]  }
 0x58e   : > { %v5449_v22 = vcombine.low %v5304_v60, %v5329_v36  ;;  %v7048_v5 = vcombine.high %v5304_v60, %v5329_v36  ;;  %v7632_v31 = vpop.f32.mrb[109].mxu0  ;;  %v7639_v11 = vpop.f32.mrb[127].mxu1  ;;  %7689 = vmatpush3.bf16.msra.mxu0 %v7839_v16  ;;  %v8022_v16 = vld [vmem:[#allocation2 + $0xa] sm:$0x3] }
 0x58f   : > { %v4856_v39 = vpop.f32.mrb[110].mxu0  ;;  %7690 = vmatprep.subr.bf16.mxu0 %v10139_v15 }
 0x590   : > { %v5456_v40 = vrot.slane %v5449_v22, %v10152_v55  ;;  %v5464_v1 = vrot.slane %v7048_v5, %v10152_v55  ;;  %v7633_v34 = vpop.f32.mrb[111].mxu0 }
 0x592   : > { %v5482_v35 = vcombine.high %v5456_v40, %v5464_v1  ;;  %v5481_v59 = vcombine.low %v5456_v40, %v5464_v1  ;;  %v7840_v40 = vld [vmem:[%s9777_s15 + $0x38] sm:$0xff]  }
 0x593   : > { %7691 = vmatpush3.bf16.msra.mxu0 %v7840_v40 }
 0x594   : > { %v5496_v31 = vrot.slane %v5482_v35, %v10153_v32  ;;  %v5489_v0 = vrot.slane %v5481_v59, %v10153_v32 }
 0x5cc   : > { %v4945_v43 = vpop.f32.mrb[112].mxu0 }
 0x5cd   : > { %v5331_v61 = vcombine.low %v4853_v41, %v4945_v43  ;;  %v7644_v54 = vpop.f32.mrb[113].mxu0 }
 0x5ce   : > { %v4948_v29 = vpop.f32.mrb[114].mxu0 }
 0x5cf   : > { %v7645_v38 = vpop.f32.mrb[115].mxu0  ;;  %v5338_v4 = vrot.slane %v5331_v61, %v10152_v55 }
 0x5d4   : > { %v4991_v63 = vpop.f32.mrb[128].mxu1 }
 0x5d5   : > { %v5339_v21 = vcombine.low %v4899_v8, %v4991_v63  ;;  %v7650_v53 = vpop.f32.mrb[129].mxu1 }
 0x5d6   : > { %v4994_v13 = vpop.f32.mrb[130].mxu1 }
 0x5d7   : > { %v5346_v58 = vrot.slane %v5339_v21, %v10152_v55  ;;  %v7651_v46 = vpop.f32.mrb[131].mxu1 }
 0x5d9   : > { %v5347_v23 = vcombine.low %v5338_v4, %v5346_v58 }
 0x5db   : > { %v5354_v17 = vrot.slane %v5347_v23, %v10153_v32 }
 0x5dc   : > { %v5083_v57 = vpop.f32.mrb[132].mxu1 }
 0x5dd   : > { %v5037_v30 = vpop.f32.mrb[116].mxu0  ;;  %v7662_v18 = vpop.f32.mrb[133].mxu1 }
 0x5de   : > { %v7656_v50 = vpop.f32.mrb[117].mxu0  ;;  %v5086_v26 = vpop.f32.mrb[134].mxu1 }
 0x5df   : > { %v5040_v33 = vpop.f32.mrb[118].mxu0  ;;  %v7663_v52 = vpop.f32.mrb[135].mxu1 }
 0x5e0   : > { %v7657_v19 = vpop.f32.mrb[119].mxu0 }
 0x5e4   : > { %v5175_v6 = vpop.f32.mrb[136].mxu1 }
 0x5e5   : > { %v5129_v48 = vpop.f32.mrb[120].mxu0  ;;  %v5364_v49 = vcombine.low %v5083_v57, %v5175_v6  ;;  %v7674_v12 = vpop.f32.mrb[137].mxu1 }
 0x5e6   : > { %v5356_v2 = vcombine.low %v5037_v30, %v5129_v48  ;;  %v7668_v3 = vpop.f32.mrb[121].mxu0  ;;  %v5178_v47 = vpop.f32.mrb[138].mxu1  ;;  %v8017_v12 = vld [vmem:[#allocation2] sm:$0x3] }
 0x5e7   : > { %v5371_v51 = vrot.slane %v5364_v49, %v10152_v55  ;;  %v5132_v14 = vpop.f32.mrb[122].mxu0  ;;  %v7675_v37 = vpop.f32.mrb[139].mxu1  ;;  %v8018_v3 = vld [vmem:[#allocation2 + $0x2] sm:$0x3] }
 0x5e8   : > { %v5363_v56 = vrot.slane %v5356_v2, %v10152_v55  ;;  %v7669_v9 = vpop.f32.mrb[123].mxu0  ;;  %v8019_v37 = vld [vmem:[#allocation2 + $0x4] sm:$0x3] }
 0x5ea   : > { %v5372_v44 = vcombine.low %v5363_v56, %v5371_v51 }
 0x5ec   : > { %v5379_v8 = vrot.slane %v5372_v44, %v10153_v32  ;;  %v8020_v44 = vld [vmem:[#allocation2 + $0x6] sm:$0x3] }
 0x5ee   : > { %v5465_v60 = vcombine.low %v5354_v17, %v5379_v8  ;;  %v7049_v36 = vcombine.high %v5354_v17, %v5379_v8 }
 0x5f0   : > { %v5472_v41 = vrot.slane %v5465_v60, %v10152_v55  ;;  %v5480_v28 = vrot.slane %v7049_v36, %v10152_v55  ;;  %v8021_v60 = vld [vmem:[#allocation2 + $0x8] sm:$0x3] }
 0x5f2   : > { %v5498_v22 = vcombine.high %v5472_v41, %v5480_v28  ;;  %v5497_v5 = vcombine.low %v5472_v41, %v5480_v28  ;;  %v8023_v28 = vld [vmem:[#allocation2 + $0xc] sm:$0x3] }
 0x5f4   : > { %v5512_v11 = vrot.slane %v5498_v22, %v10153_v32  ;;  %v5505_v39 = vrot.slane %v5497_v5, %v10153_v32 }
 0x5f6   : > { %v5515_v1 = vcombine.low %v5496_v31, %v5512_v11  ;;  %v5514_v34 = vcombine.high %v5489_v0, %v5505_v39  ;;  %v5513_v24 = vcombine.low %v5489_v0, %v5505_v39  ;;  %v5516_v43 = vcombine.high %v5496_v31, %v5512_v11  ;;  %v8024_v31 = vld [vmem:[#allocation2 + $0xe] sm:$0x3] }
 0x5f8   : > { %v7791_v61 = vpack.i.bf16 %v5515_v1, %v5447_v10  ;;  %v7786_v15 = vpack.i.bf16 %v5514_v34, %v5446_v25  ;;  %v7796_v35 = vpack.i.bf16 %v5516_v43, %v5448_v42 }
 0x5fa   : > { %7792 = vrot.lane.b32.xlu1 %v7791_v61, %s8221_s17  ;;  %7787 = vrot.lane.b32.xlu0 %v7786_v15, %s8219_s26  ;;  %v8223_v15 = vmov 269488144  }
 0x5fe   : > { %7797 = vrot.lane.b32.xlu1 %v7796_v35, %s8220_s9  ;;  %v5768_v35 = vunpack.c.l.s4 %v8223_v15  ;;  %v7852_v15 = vld [vmem:[%s9902_s23 + $0x34] ss:$8 sps:$4 sm:$0xff]  }
 0x66c   : > { %v7793_v32 = vpop.permute.xlu1 %7792  ;;  %v7788_v59 = vpop.permute.xlu0 %7787 }
 0x66d   : > { %v7790_v54 = vunpack.i.h.bf16 %v7788_v59  ;;  %v7789_v29 = vunpack.i.l.bf16 %v7788_v59  ;;  %v7795_v10 = vunpack.i.h.bf16 %v7793_v32  ;;  %v7794_v38 = vunpack.i.l.bf16 %v7793_v32 }
 0x66e   : > { %v8224_v32 = vmov 842150450  }
 0x66f   : > { %v5541_v25 = vsel %vm1849_vm1, %v5445_v27, %v7789_v29  ;;  %v5542_v7 = vsel %vm1849_vm1, %v5513_v24, %v7790_v54  ;;  %v5572_v27 = vrot.slane %v9833_v62, %v10154_v45  ;;  %v5775_v59 = vunpack.c.l.s4 %v8224_v32  ;;  %v7855_v32 = vld [vmem:[%s9902_s23 + $0x44] ss:$8 sps:$4 sm:$0xff]  }
 0x670   : > { %v7798_v20 = vpop.permute.xlu1 %7797  ;;  %v5544_v21 = vsel %vm5543_vm5, %v5541_v25, %v7794_v38  ;;  %v5545_v53 = vsel %vm5543_vm5, %v5542_v7, %v7795_v10  ;;  %v8225_v54 = vmov 1414812756   ;;  %v8226_v10 = vmov 1987475062  }
 0x671   : > { %v7800_v42 = vunpack.i.h.bf16 %v7798_v20  ;;  %v7799_v63 = vunpack.i.l.bf16 %v7798_v20  ;;  %v5782_v29 = vunpack.c.l.s4 %v8225_v54  ;;  %v5789_v38 = vunpack.c.l.s4 %v8226_v10  ;;  %v7858_v54 = vld [vmem:[%s9902_s23 + $0x54] ss:$8 sps:$4 sm:$0xff]   ;;  %v7861_v10 = vld [vmem:[%s9902_s23 + $0x64] ss:$8 sps:$4 sm:$0xff]  }
 0x672   : > { %v5769_v25 = vunpack.c.0.s8 %v5768_v35  ;;  %v5776_v7 = vunpack.c.0.s8 %v5775_v59  ;;  %v7850_v35 = vld [vmem:[%s9902_s23 + $0x30] ss:$8 sps:$4 sm:$0xff]   ;;  %v7853_v59 = vld [vmem:[%s9902_s23 + $0x40] ss:$8 sps:$4 sm:$0xff]  }
 0x673   : > { %v5547_v13 = vsel %vm5546_vm6, %v5544_v21, %v7799_v63  ;;  %v5548_v4 = vsel %vm5546_vm6, %v5545_v53, %v7800_v42  ;;  %v5783_v20 = vunpack.c.0.s8 %v5782_v29  ;;  %v5790_v42 = vunpack.c.0.s8 %v5789_v38  ;;  %v10155_v63 = vld [vmem:[#allocation19_spill] sm:$0xff]  ;;  %v7859_v38 = vld [vmem:[%s9902_s23 + $0x60] ss:$8 sps:$4 sm:$0xff]  }
 0x674   : > { %v5549_v58 = vpack.c.bf16 %v5548_v4, %v5547_v13  ;;  %v9846_v21 = vsub.s32 %v5769_v25, %v10155_v63  ;;  %v9849_v53 = vsub.s32 %v5776_v7, %v10155_v63  ;;  %v7856_v29 = vld [vmem:[%s9902_s23 + $0x50] ss:$8 sps:$4 sm:$0xff]   ;;  %v7864_v25 = vld [vmem:[%s9902_s23 + $0x74] ss:$8 sps:$4 sm:$0xff]  }
 0x675   : > { %v9852_v13 = vsub.s32 %v5783_v20, %v10155_v63  ;;  %v9855_v4 = vsub.s32 %v5790_v42, %v10155_v63  ;;  %v7862_v7 = vld [vmem:[%s9902_s23 + $0x70] ss:$8 sps:$4 sm:$0xff]   ;;  %v7865_v20 = vld [vmem:[%s9912_s10 + $0x40] sm:$0xff]  }
 0x676   : > { %7693 = vmatmul.mubr.bf16.vlgmr.msra.gmra.mrb[124].mxu0 %v5549_v58  ;;  %v7866_v42 = vld [vmem:[%s9912_s10] sm:$0xff]   ;;  %7250 = vmatprep.subr.bf16.mxu0 %v7865_v20 }
 0x677   : > { %7251 = vmatpush3.bf16.msra.mxu0 %v7866_v42 }
 0x749   : > { %v5655_v46 = vpop.f32.mrb[124].mxu0 }
 0x74a   : > { %v5656_v23 = vadd.f32 %v5655_v46, %v5572_v27  ;;  %v7694_v57 = vpop.f32.mrb[125].mxu0 }
 0x74b   : > { %v5658_v30 = vpop.f32.mrb[126].mxu0 }
 0x74c   : > { %v5664_v18 = vcombine.high %v5656_v23, %v5656_v23  ;;  %v5671_v50 = vrot.slane %v5656_v23, %v10152_v55  ;;  %v5659_v26 = vadd.f32 %v5658_v30, %v5572_v27  ;;  %v7695_v33 = vpop.f32.mrb[127].mxu0 }
 0x74e   : > { %v5678_v52 = vrot.slane %v5664_v18, %v10152_v55  ;;  %v5679_v19 = vcombine.high %v5671_v50, %v5671_v50  ;;  %v5681_v6 = vcombine.high %v5659_v26, %v5659_v26  ;;  %v5688_v48 = vrot.slane %v5659_v26, %v10152_v55 }
 0x74f   : > { %v5706_v2 = vadd.f32 %v8017_v12, %v5671_v50 }
 0x750   : > { %v5680_v49 = vcombine.high %v5678_v52, %v5678_v52  ;;  %v5707_v47 = vadd.f32 %v8018_v3, %v5679_v19  ;;  %v5695_v51 = vrot.slane %v5681_v6, %v10152_v55  ;;  %v5696_v14 = vcombine.high %v5688_v48, %v5688_v48 }
 0x751   : > { %v5708_v56 = vadd.f32 %v8019_v37, %v5678_v52  ;;  %v5710_v36 = vadd.f32 %v8021_v60, %v5688_v48 }
 0x752   : > { %v5697_v9 = vcombine.high %v5695_v51, %v5695_v51  ;;  %v5709_v17 = vadd.f32 %v8020_v44, %v5680_v49  ;;  %v5722_v8 = vcombine.low %v5706_v2, %v5707_v47  ;;  %v5711_v41 = vadd.f32 %v8022_v16, %v5696_v14 }
 0x753   : > { %v5712_v22 = vadd.f32 %v8023_v28, %v5695_v51 }
 0x754   : > { %v5723_v5 = vcombine.low %v5708_v56, %v5709_v17  ;;  %v5713_v11 = vadd.f32 %v8024_v31, %v5697_v9  ;;  %v5739_v0 = vcombine.low %v5710_v36, %v5711_v41  ;;  %v5730_v39 = vrot.slane %v5722_v8, %v10152_v55 }
 0x756   : > { %v5737_v40 = vrot.slane %v5723_v5, %v10152_v55  ;;  %v5740_v1 = vcombine.low %v5712_v22, %v5713_v11  ;;  %v5747_v24 = vrot.slane %v5739_v0, %v10152_v55 }
 0x758   : > { %v5738_v34 = vcombine.low %v5730_v39, %v5737_v40  ;;  %v5754_v43 = vrot.slane %v5740_v1, %v10152_v55  ;;  %v7841_v40 = vld [vmem:[%s9902_s23] ss:$8 sps:$4 sm:$0xff]   ;;  %v7843_v1 = vld [vmem:[%s9902_s23 + $0x4] ss:$8 sps:$4 sm:$0xff]  }
 0x759   : > { %6198 = vmatprep.subr.bf16.mxu1 %v7843_v1 }
 0x75a   : > { %5758 = vadd.xlane.f32.xlu0 %v5738_v34  ;;  %v5755_v61 = vcombine.low %v5747_v24, %v5754_v43  ;;  %v7846_v34 = vld [vmem:[%s9902_s23 + $0x14] ss:$8 sps:$4 sm:$0xff]   ;;  %6199 = vmatpush1.bf16.msra.mxu1 %v7841_v40  ;;  %v7844_v24 = vld [vmem:[%s9902_s23 + $0x10] ss:$8 sps:$4 sm:$0xff]   ;;  %v7849_v43 = vld [vmem:[%s9902_s23 + $0x24] ss:$8 sps:$4 sm:$0xff]  }
 0x75b   : > { %6200 = vmatprep.subr.bf16.mxu1 %v7846_v34 }
 0x75c   : > { %5760 = vadd.xlane.f32.xlu1 %v5755_v61  ;;  %v7847_v61 = vld [vmem:[%s9902_s23 + $0x20] ss:$8 sps:$4 sm:$0xff]  }
 0x75e   : > { %6201 = vmatpush1.bf16.msra.mxu1 %v7844_v24 }
 0x75f   : > { %6202 = vmatprep.subr.bf16.mxu1 %v7849_v43 }
 0x762   : > { %6203 = vmatpush1.bf16.msra.mxu1 %v7847_v61 }
 0x763   : > { %6204 = vmatprep.subr.bf16.mxu1 %v7852_v15 }
 0x766   : > { %6205 = vmatpush1.bf16.msra.mxu1 %v7850_v35 }
 0x767   : > { %6206 = vmatprep.subr.bf16.mxu1 %v7855_v32 }
 0x76a   : > { %6207 = vmatpush1.bf16.msra.mxu1 %v7853_v59 }
 0x76b   : > { %6208 = vmatprep.subr.bf16.mxu1 %v7858_v54 }
 0x76e   : > { %6209 = vmatpush1.bf16.msra.mxu1 %v7856_v29 }
 0x76f   : > { %6210 = vmatprep.subr.bf16.mxu1 %v7861_v10 }
 0x772   : > { %6211 = vmatpush1.bf16.msra.mxu1 %v7859_v38 }
 0x773   : > { %6212 = vmatprep.subr.bf16.mxu1 %v7864_v25 }
 0x776   : > { %6213 = vmatpush1.bf16.msra.mxu1 %v7862_v7 }
 0x7e7   : > { %v5759_v58 = vpop.xlane.xlu0 %5758 }
 0x7e8   : > { %v5763_v27 = vmul.f32 0.0078125, %v5759_v58  ;;  %v7867_v58 = vld [vmem:[%s9912_s10 + $0x48] sm:$0xff]  }
 0x7e9   : > { %v5761_v46 = vpop.xlane.xlu1 %5760  ;;  %7252 = vmatprep.subr.bf16.mxu0 %v7867_v58 }
 0x7ea   : > { %v5773_v23 = vrot.slane %v5763_v27, %v9846_v21  ;;  %v5780_v57 = vrot.slane %v5763_v27, %v9849_v53  ;;  %v5787_v30 = vrot.slane %v5763_v27, %v9852_v13  ;;  %v5794_v18 = vrot.slane %v5763_v27, %v9855_v4  ;;  %v7868_v27 = vld [vmem:[%s9912_s10 + $0x8] sm:$0xff]  }
 0x7eb   : > { %v5764_v50 = vmul.f32 0.0078125, %v5761_v46  ;;  %v7869_v46 = vld [vmem:[%s9912_s10 + $0x50] sm:$0xff]   ;;  %7253 = vmatpush3.bf16.msra.mxu0 %v7868_v27 }
 0x7ec   : > { %v9861_v26 = vsub.f32 %v5706_v2, %v5773_v23  ;;  %v9863_v33 = vsub.f32 %v5707_v47, %v5780_v57  ;;  %v9865_v52 = vsub.f32 %v5708_v56, %v5787_v30  ;;  %v9867_v19 = vsub.f32 %v5709_v17, %v5794_v18  ;;  %v7870_v23 = vld [vmem:[%s9912_s10 + $0x10] sm:$0xff]   ;;  %7254 = vmatprep.subr.bf16.mxu0 %v7869_v46  ;;  %v7871_v57 = vld [vmem:[%s9912_s10 + $0x58] sm:$0xff]   ;;  %v7873_v18 = vld [vmem:[%s9912_s10 + $0x60] sm:$0xff]  }
 0x7ed   : > { %v5801_v6 = vrot.slane %v5764_v50, %v9846_v21  ;;  %v5808_v48 = vrot.slane %v5764_v50, %v9849_v53  ;;  %v5815_v49 = vrot.slane %v5764_v50, %v9852_v13  ;;  %v5822_v12 = vrot.slane %v5764_v50, %v9855_v4  ;;  %v7872_v30 = vld [vmem:[%s9912_s10 + $0x18] sm:$0xff]   ;;  %v7874_v50 = vld [vmem:[%s9912_s10 + $0x20] sm:$0xff]  }
 0x7ee   : > { %v5839_v3 = vmul.f32 %v9861_v26, %v9861_v26  ;;  %v5840_v2 = vmul.f32 %v9863_v33, %v9863_v33  ;;  %v5841_v47 = vmul.f32 %v9865_v52, %v9865_v52  ;;  %v5842_v51 = vmul.f32 %v9867_v19, %v9867_v19 }
 0x7ef   : > { %v9881_v14 = vsub.f32 %v5710_v36, %v5801_v6  ;;  %v9883_v37 = vsub.f32 %v5711_v41, %v5808_v48  ;;  %v9885_v56 = vsub.f32 %v5712_v22, %v5815_v49  ;;  %v9887_v9 = vsub.f32 %v5713_v11, %v5822_v12  ;;  %7255 = vmatpush3.bf16.msra.mxu0 %v7870_v23  ;;  %v7875_v6 = vld [vmem:[%s9912_s10 + $0x68] sm:$0xff]  }
 0x7f0   : > { %v5855_v44 = vcombine.low %v5839_v3, %v5840_v2  ;;  %v5856_v17 = vcombine.low %v5841_v47, %v5842_v51  ;;  %7256 = vmatprep.subr.bf16.mxu0 %v7871_v57  ;;  %v10156_v2 = vld [vmem:[#allocation22_spill] sm:$0xff] }
 0x7f1   : > { %v5843_v8 = vmul.f32 %v9881_v14, %v9881_v14  ;;  %v5844_v60 = vmul.f32 %v9883_v37, %v9883_v37  ;;  %v5845_v16 = vmul.f32 %v9885_v56, %v9885_v56  ;;  %v5846_v36 = vmul.f32 %v9887_v9, %v9887_v9 }
 0x7f2   : > { %v5863_v41 = vrot.slane %v5855_v44, %v10152_v55  ;;  %v5870_v28 = vrot.slane %v5856_v17, %v10152_v55  ;;  %v5978_v47 = vrot.slane %v9833_v62, %v10156_v2  ;;  %v10157_v44 = vsub.s32 2, %v10155_v63 }
 0x7f3   : > { %v5872_v22 = vcombine.low %v5843_v8, %v5844_v60  ;;  %v5873_v5 = vcombine.low %v5845_v16, %v5846_v36  ;;  %7257 = vmatpush3.bf16.msra.mxu0 %v7872_v30 }
 0x7f4   : > { %v5871_v31 = vcombine.low %v5863_v41, %v5870_v28  ;;  %7258 = vmatprep.subr.bf16.mxu0 %v7873_v18  ;;  %v6012_v17 = vrot.slane %v9833_v62, %v10157_v44  ;;  %v5980_v60 = vcombine.high %v5978_v47, %v5978_v47  ;;  %v5987_v36 = vrot.slane %v5978_v47, %v10152_v55 }
 0x7f5   : > { %v5880_v11 = vrot.slane %v5872_v22, %v10152_v55  ;;  %v5887_v0 = vrot.slane %v5873_v5, %v10152_v55 }
 0x7f6   : > { %5891 = vadd.xlane.f32.xlu0 %v5871_v31  ;;  %v6014_v16 = vcombine.high %v6012_v17, %v6012_v17  ;;  %v5994_v41 = vrot.slane %v5980_v60, %v10152_v55  ;;  %v6021_v22 = vrot.slane %v6012_v17, %v10152_v55  ;;  %v5995_v40 = vcombine.high %v5987_v36, %v5987_v36  ;;  %v7876_v60 = vld [vmem:[%s9912_s10 + $0x28] sm:$0xff]  }
 0x7f7   : > { %v5888_v39 = vcombine.low %v5880_v11, %v5887_v0  ;;  %7259 = vmatpush3.bf16.msra.mxu0 %v7874_v50 }
 0x7f8   : > { %7260 = vmatprep.subr.bf16.mxu0 %v7875_v6  ;;  %v6028_v5 = vrot.slane %v6014_v16, %v10152_v55  ;;  %v5996_v1 = vcombine.high %v5994_v41, %v5994_v41  ;;  %v6029_v35 = vcombine.high %v6021_v22, %v6021_v22  ;;  %v7877_v16 = vld [vmem:[%s9912_s10 + $0x70] sm:$0xff]  }
 0x7fa   : > { %5893 = vadd.xlane.f32.xlu0 %v5888_v39  ;;  %v6030_v32 = vcombine.high %v6028_v5, %v6028_v5 }
 0x7fb   : > { %7261 = vmatpush3.bf16.msra.mxu0 %v7876_v60 }
 0x7fc   : > { %7262 = vmatprep.subr.bf16.mxu0 %v7877_v16 }
 0x883   : > { %v5892_v48 = vpop.xlane.xlu0 %5891 }
 0x884   : > { %v5895_v49 = vmul.f32 0.0078125, %v5892_v48 }
 0x886   : > { %v5897_v12 = vadd.f32 1e-06, %v5895_v49 }
 0x887   : > { %v5894_v3 = vpop.xlane.xlu0 %5893 }
 0x888   : > { %8009 = vrsqrt.f32 %v5897_v12  ;;  %v5896_v51 = vmul.f32 0.0078125, %v5894_v3 }
 0x88a   : > { %v5898_v8 = vadd.f32 1e-06, %v5896_v51 }
 0x88c   : > { %8011 = vrsqrt.f32 %v5898_v8 }
 0x892   : > { %v8010_v28 = vpop.eup %8009 }
 0x893   : > { %v5909_v31 = vrot.slane %v8010_v28, %v9846_v21  ;;  %v5916_v11 = vrot.slane %v8010_v28, %v9849_v53  ;;  %v5923_v0 = vrot.slane %v8010_v28, %v9852_v13  ;;  %v5930_v39 = vrot.slane %v8010_v28, %v9855_v4  ;;  %v7880_v28 = vld [vmem:[%s9912_s10 + $0x38] sm:$0xff]  }
 0x895   : > { %v5967_v34 = vmul.f32 %v5909_v31, %v9861_v26  ;;  %v5968_v24 = vmul.f32 %v5916_v11, %v9863_v33  ;;  %v5969_v43 = vmul.f32 %v5923_v0, %v9865_v52  ;;  %v5970_v61 = vmul.f32 %v5930_v39, %v9867_v19 }
 0x896   : > { %v8012_v15 = vpop.eup %8011 }
 0x897   : > { %v5937_v59 = vrot.slane %v8012_v15, %v9846_v21  ;;  %v5944_v54 = vrot.slane %v8012_v15, %v9849_v53  ;;  %v5951_v29 = vrot.slane %v8012_v15, %v9852_v13  ;;  %v5958_v10 = vrot.slane %v8012_v15, %v9855_v4 }
 0x898   : > { %v6001_v38 = vmul.f32 %v5987_v36, %v5967_v34  ;;  %v6002_v25 = vmul.f32 %v5995_v40, %v5968_v24  ;;  %v6003_v26 = vmul.f32 %v5994_v41, %v5969_v43  ;;  %v6004_v7 = vmul.f32 %v5996_v1, %v5970_v61 }
 0x899   : > { %v5971_v33 = vmul.f32 %v5937_v59, %v9881_v14  ;;  %v5972_v52 = vmul.f32 %v5944_v54, %v9883_v37  ;;  %v5973_v19 = vmul.f32 %v5951_v29, %v9885_v56  ;;  %v5974_v20 = vmul.f32 %v5958_v10, %v9887_v9 }
 0x89a   : > { %v9958_v42 = vadd.f32 %v6021_v22, %v6001_v38  ;;  %v9960_v58 = vadd.f32 %v6029_v35, %v6002_v25  ;;  %v9962_v27 = vadd.f32 %v6028_v5, %v6003_v26  ;;  %v9964_v46 = vadd.f32 %v6030_v32, %v6004_v7 }
 0x89b   : > { %v6005_v23 = vmul.f32 %v5987_v36, %v5971_v33  ;;  %v6006_v57 = vmul.f32 %v5995_v40, %v5972_v52  ;;  %v6007_v30 = vmul.f32 %v5994_v41, %v5973_v19  ;;  %v6008_v18 = vmul.f32 %v5996_v1, %v5974_v20  ;;  %v7878_v36 = vld [vmem:[%s9912_s10 + $0x30] sm:$0xff]   ;;  %v7879_v41 = vld [vmem:[%s9912_s10 + $0x78] sm:$0xff]  }
 0x89c   : > { %v6051_v14 = vcombine.low %v9958_v42, %v9960_v58  ;;  %v6052_v37 = vcombine.low %v9962_v27, %v9964_v46  ;;  %7263 = vmatpush3.bf16.msra.mxu0 %v7878_v36 }
 0x89d   : > { %v9970_v56 = vadd.f32 %v6021_v22, %v6005_v23  ;;  %v9972_v9 = vadd.f32 %v6029_v35, %v6006_v57  ;;  %v9974_v50 = vadd.f32 %v6028_v5, %v6007_v30  ;;  %v9976_v6 = vadd.f32 %v6030_v32, %v6008_v18  ;;  %7264 = vmatprep.subr.bf16.mxu0 %v7879_v41  ;;  %v439_v22 = vld [vmem:[%s438_s22] sm:$0x3] }
 0x89e   : > { %v6059_v48 = vrot.slane %v6051_v14, %v10152_v55  ;;  %v6066_v49 = vrot.slane %v6052_v37, %v10152_v55  ;;  %v6111_v5 = vrot.slane %v439_v22, %v10154_v45  ;;  %v6115_v31 = vrot.slane %v439_v22, %v10156_v2 }
 0x89f   : > { %v6068_v12 = vcombine.low %v9970_v56, %v9972_v9  ;;  %v6069_v3 = vcombine.low %v9974_v50, %v9976_v6  ;;  %v6283_v45 = vsub.s32 3, %v10155_v63 }
 0x8a0   : > { %v6067_v44 = vcombine.low %v6059_v48, %v6066_v49  ;;  %7265 = vmatpush3.bf16.msra.mxu0 %v7880_v28 }
 0x8a1   : > { %v6076_v47 = vrot.slane %v6068_v12, %v10152_v55  ;;  %v6083_v51 = vrot.slane %v6069_v3, %v10152_v55  ;;  %v6284_v2 = vrot.slane %v9833_v62, %v6283_v45 }
 0x8a3   : > { %v6084_v17 = vcombine.low %v6076_v47, %v6083_v51 }
 0x8a5   : > { %v6087_v8 = vpack.c.bf16 %v6084_v17, %v6067_v44 }
 0x8a7   : > { %6231 = vmatmul.mubr.bf16.vlgmr.msra.gmra.mrb[140].mxu1 %v6087_v8 }
 0x97a   : > { %v6232_v11 = vpop.f32.mrb[140].mxu1 }
 0x97b   : > { %v6233_v0 = vadd.f32 %v6232_v11, %v6111_v5  ;;  %v6234_v39 = vpop.f32.mrb[141].mxu1 }
 0x97c   : > { %v6235_v40 = vadd.f32 %v6234_v39, %v6115_v31  ;;  %v6236_v1 = vpop.f32.mrb[142].mxu1 }
 0x97d   : > { %v6237_v34 = vadd.f32 %v6236_v1, %v6111_v5  ;;  %v6238_v24 = vpop.f32.mrb[143].mxu1  ;;  %v6241_v61 = vmax.f32 %v6233_v0, 0.0 }
 0x97e   : > { %v6239_v43 = vadd.f32 %v6238_v24, %v6115_v31  ;;  %v6242_v35 = vmax.f32 %v6235_v40, 0.0 }
 0x97f   : > { %v6243_v15 = vmax.f32 %v6237_v34, 0.0 }
 0x980   : > { %v6244_v32 = vmax.f32 %v6239_v43, 0.0 }
 0x981   : > { %v6245_v59 = vpack.c.bf16 %v6243_v15, %v6241_v61 }
 0x982   : > { %v6246_v54 = vpack.c.bf16 %v6244_v32, %v6242_v35 }
 0x984   : > { %6413 = vmatprep.mubr.bf16.mxu0 %v6246_v54 }
 0x985   : > { %6414 = vmatmul.mubr.bf16.vlgmr.msra.gmra.mrb[128].mxu0 %v6245_v59 }
 0xa58   : > { %v7266_v29 = vpop.f32.mrb[128].mxu0 }
 0xa59   : > { %v7267_v10 = vpop.f32.mrb[129].mxu0 }
 0xa5a   : > { %v7268_v38 = vadd.f32 %v7267_v10, %v7266_v29  ;;  %v7269_v25 = vpop.f32.mrb[130].mxu0 }
 0xa5b   : > { %v7270_v26 = vpop.f32.mrb[131].mxu0 }
 0xa5c   : > { %v6416_v7 = vadd.f32 %v7268_v38, %v6284_v2  ;;  %v7271_v33 = vadd.f32 %v7270_v26, %v7269_v25 }
 0xa5e   : > { %v6424_v52 = vcombine.high %v6416_v7, %v6416_v7  ;;  %v6431_v19 = vrot.slane %v6416_v7, %v10152_v55  ;;  %v6419_v20 = vadd.f32 %v7271_v33, %v6284_v2 }
 0xa60   : > { %v6438_v23 = vrot.slane %v6424_v52, %v10152_v55  ;;  %v6439_v57 = vcombine.high %v6431_v19, %v6431_v19  ;;  %v6441_v30 = vcombine.high %v6419_v20, %v6419_v20  ;;  %v6448_v18 = vrot.slane %v6419_v20, %v10152_v55 }
 0xa61   : > { %v6466_v37 = vadd.f32 %v6431_v19, %v9958_v42 }
 0xa62   : > { %v6440_v14 = vcombine.high %v6438_v23, %v6438_v23  ;;  %v6455_v48 = vrot.slane %v6441_v30, %v10152_v55  ;;  %v6467_v49 = vadd.f32 %v6439_v57, %v9960_v58  ;;  %v6456_v12 = vcombine.high %v6448_v18, %v6448_v18 }
 0xa63   : > { %v6468_v47 = vadd.f32 %v6438_v23, %v9962_v27  ;;  %v6470_v17 = vadd.f32 %v6448_v18, %v9970_v56 }
 0xa64   : > { %v6457_v3 = vcombine.high %v6455_v48, %v6455_v48  ;;  %v6469_v51 = vadd.f32 %v6440_v14, %v9964_v46  ;;  %v6482_v44 = vcombine.low %v6466_v37, %v6467_v49  ;;  %v6471_v8 = vadd.f32 %v6456_v12, %v9972_v9 }
 0xa65   : > { %v6472_v16 = vadd.f32 %v6455_v48, %v9974_v50 }
 0xa66   : > { %v6483_v60 = vcombine.low %v6468_v47, %v6469_v51  ;;  %v6473_v42 = vadd.f32 %v6457_v3, %v9976_v6  ;;  %v6499_v36 = vcombine.low %v6470_v17, %v6471_v8  ;;  %v6490_v41 = vrot.slane %v6482_v44, %v10152_v55 }
 0xa67   : > { %v6770_v3 = vsub.s32 5, %v10155_v63 }
 0xa68   : > { %v6497_v58 = vrot.slane %v6483_v60, %v10152_v55  ;;  %v6500_v28 = vcombine.low %v6472_v16, %v6473_v42  ;;  %v6507_v27 = vrot.slane %v6499_v36, %v10152_v55 }
 0xa69   : > { %v6771_v60 = vrot.slane %v9833_v62, %v6770_v3 }
 0xa6a   : > { %v6498_v22 = vcombine.low %v6490_v41, %v6497_v58  ;;  %v6514_v46 = vrot.slane %v6500_v28, %v10152_v55 }
 0xa6b   : > { %v6773_v36 = vcombine.high %v6771_v60, %v6771_v60  ;;  %v6780_v28 = vrot.slane %v6771_v60, %v10152_v55 }
 0xa6c   : > { %6518 = vadd.xlane.f32.xlu1 %v6498_v22  ;;  %v6515_v56 = vcombine.low %v6507_v27, %v6514_v46 }
 0xa6e   : > { %6520 = vadd.xlane.f32.xlu0 %v6515_v56 }
 0xaf9   : > { %v6519_v9 = vpop.xlane.xlu1 %6518 }
 0xafa   : > { %v6522_v5 = vmul.f32 0.0078125, %v6519_v9 }
 0xafb   : > { %v6521_v31 = vpop.xlane.xlu0 %6520 }
 0xafc   : > { %v6532_v50 = vrot.slane %v6522_v5, %v9846_v21  ;;  %v6539_v6 = vrot.slane %v6522_v5, %v9849_v53  ;;  %v6546_v11 = vrot.slane %v6522_v5, %v9852_v13  ;;  %v6553_v0 = vrot.slane %v6522_v5, %v9855_v4 }
 0xafd   : > { %v6523_v39 = vmul.f32 0.0078125, %v6521_v31  ;;  %v6788_v31 = vcombine.high %v6780_v28, %v6780_v28 }
 0xafe   : > { %v6590_v40 = vsub.f32 %v6466_v37, %v6532_v50  ;;  %v6591_v1 = vsub.f32 %v6467_v49, %v6539_v6  ;;  %v6592_v34 = vsub.f32 %v6468_v47, %v6546_v11  ;;  %v6593_v24 = vsub.f32 %v6469_v51, %v6553_v0 }
 0xaff   : > { %v6560_v43 = vrot.slane %v6523_v39, %v9846_v21  ;;  %v6567_v61 = vrot.slane %v6523_v39, %v9849_v53  ;;  %v6574_v15 = vrot.slane %v6523_v39, %v9852_v13  ;;  %v6581_v35 = vrot.slane %v6523_v39, %v9855_v4 }
 0xb00   : > { %v6598_v32 = vmul.f32 %v6590_v40, %v6590_v40  ;;  %v6599_v59 = vmul.f32 %v6591_v1, %v6591_v1  ;;  %v6600_v54 = vmul.f32 %v6592_v34, %v6592_v34  ;;  %v6601_v45 = vmul.f32 %v6593_v24, %v6593_v24 }
 0xb01   : > { %v6594_v29 = vsub.f32 %v6470_v17, %v6560_v43  ;;  %v6595_v2 = vsub.f32 %v6471_v8, %v6567_v61  ;;  %v6596_v10 = vsub.f32 %v6472_v16, %v6574_v15  ;;  %v6597_v38 = vsub.f32 %v6473_v42, %v6581_v35 }
 0xb02   : > { %v6614_v25 = vcombine.low %v6598_v32, %v6599_v59  ;;  %v6615_v26 = vcombine.low %v6600_v54, %v6601_v45  ;;  %v6736_v49 = vsub.s32 4, %v10155_v63  ;;  %v6787_v63 = vrot.slane %v6773_v36, %v10152_v55 }
 0xb03   : > { %v6602_v7 = vmul.f32 %v6594_v29, %v6594_v29  ;;  %v6603_v33 = vmul.f32 %v6595_v2, %v6595_v2  ;;  %v6604_v52 = vmul.f32 %v6596_v10, %v6596_v10  ;;  %v6605_v19 = vmul.f32 %v6597_v38, %v6597_v38 }
 0xb04   : > { %v6622_v20 = vrot.slane %v6614_v25, %v10152_v55  ;;  %v6629_v23 = vrot.slane %v6615_v26, %v10152_v55  ;;  %v6737_v51 = vrot.slane %v9833_v62, %v6736_v49  ;;  %v6789_v50 = vcombine.high %v6787_v63, %v6787_v63 }
 0xb05   : > { %v6631_v57 = vcombine.low %v6602_v7, %v6603_v33  ;;  %v6632_v30 = vcombine.low %v6604_v52, %v6605_v19 }
 0xb06   : > { %v6630_v18 = vcombine.low %v6622_v20, %v6629_v23  ;;  %v6739_v42 = vcombine.high %v6737_v51, %v6737_v51  ;;  %v6746_v41 = vrot.slane %v6737_v51, %v10152_v55 }
 0xb07   : > { %v6639_v14 = vrot.slane %v6631_v57, %v10152_v55  ;;  %v6646_v37 = vrot.slane %v6632_v30, %v10152_v55 }
 0xb08   : > { %6650 = vadd.xlane.f32.xlu1 %v6630_v18  ;;  %v6753_v58 = vrot.slane %v6739_v42, %v10152_v55  ;;  %v6754_v27 = vcombine.high %v6746_v41, %v6746_v41 }
 0xb09   : > { %v6647_v48 = vcombine.low %v6639_v14, %v6646_v37 }
 0xb0a   : > { %v6755_v46 = vcombine.high %v6753_v58, %v6753_v58 }
 0xb0b   : > { %6652 = vadd.xlane.f32.xlu0 %v6647_v48 }
 0xb95   : > { %v6651_v12 = vpop.xlane.xlu1 %6650 }
 0xb96   : > { %v6654_v47 = vmul.f32 0.0078125, %v6651_v12 }
 0xb98   : > { %v6656_v44 = vadd.f32 1e-06, %v6654_v47  ;;  %v6653_v17 = vpop.xlane.xlu0 %6652 }
 0xb99   : > { %v6655_v8 = vmul.f32 0.0078125, %v6653_v17 }
 0xb9a   : > { %8013 = vrsqrt.f32 %v6656_v44 }
 0xb9b   : > { %v6657_v16 = vadd.f32 1e-06, %v6655_v8 }
 0xb9d   : > { %8015 = vrsqrt.f32 %v6657_v16 }
 0xba4   : > { %v8014_v22 = vpop.eup %8013 }
 0xba5   : > { %v6668_v56 = vrot.slane %v8014_v22, %v9846_v21  ;;  %v6675_v62 = vrot.slane %v8014_v22, %v9849_v53  ;;  %v6682_v9 = vrot.slane %v8014_v22, %v9852_v13  ;;  %v6689_v5 = vrot.slane %v8014_v22, %v9855_v4 }
 0xba7   : > { %v8016_v6 = vpop.eup %8015  ;;  %v6726_v11 = vmul.f32 %v6668_v56, %v6590_v40  ;;  %v6727_v0 = vmul.f32 %v6675_v62, %v6591_v1  ;;  %v6728_v39 = vmul.f32 %v6682_v9, %v6592_v34  ;;  %v6729_v43 = vmul.f32 %v6689_v5, %v6593_v24 }
 0xba8   : > { %v6696_v55 = vrot.slane %v8016_v6, %v9846_v21  ;;  %v6703_v61 = vrot.slane %v8016_v6, %v9849_v53  ;;  %v6710_v15 = vrot.slane %v8016_v6, %v9852_v13  ;;  %v6717_v35 = vrot.slane %v8016_v6, %v9855_v4 }
 0xba9   : > { %v6760_v32 = vmul.f32 %v6746_v41, %v6726_v11  ;;  %v6761_v59 = vmul.f32 %v6754_v27, %v6727_v0  ;;  %v6762_v54 = vmul.f32 %v6753_v58, %v6728_v39  ;;  %v6763_v45 = vmul.f32 %v6755_v46, %v6729_v43 }
 0xbaa   : > { %v6730_v25 = vmul.f32 %v6696_v55, %v6594_v29  ;;  %v6731_v26 = vmul.f32 %v6703_v61, %v6595_v2  ;;  %v6732_v7 = vmul.f32 %v6710_v15, %v6596_v10  ;;  %v6733_v33 = vmul.f32 %v6717_v35, %v6597_v38 }
 0xbab   : > { %v6794_v40 = vadd.f32 %v6780_v28, %v6760_v32  ;;  %v6795_v1 = vadd.f32 %v6788_v31, %v6761_v59  ;;  %v6796_v34 = vadd.f32 %v6787_v63, %v6762_v54  ;;  %v6797_v24 = vadd.f32 %v6789_v50, %v6763_v45  ;;  %6813 = sbr.rel (%p7095_p2) target bundleno = 3006 (0xbbe), region = 107 }
 0xbac   : > { %v6764_v52 = vmul.f32 %v6746_v41, %v6730_v25  ;;  %v6765_v21 = vmul.f32 %v6754_v27, %v6731_v26  ;;  %v6766_v19 = vmul.f32 %v6753_v58, %v6732_v7  ;;  %v6767_v53 = vmul.f32 %v6755_v46, %v6733_v33 }
 0xbad   : > { %6802 = vst [vmem:[#allocation2] sm:$0x3] %v6794_v40  ;;  %6803 = vst [vmem:[#allocation2 + $0x2] sm:$0x3] %v6795_v1  ;;  %v6815_v29 = vsel (!%p7095_p2), %vm6814_vm7, %v6794_v40, 0.0  ;;  %v6816_v2 = vsel (!%p7095_p2), %vm6814_vm7, %v6795_v1, 0.0 }
 0xbae   : > { %6804 = vst [vmem:[#allocation2 + $0x4] sm:$0x3] %v6796_v34  ;;  %6805 = vst [vmem:[#allocation2 + $0x6] sm:$0x3] %v6797_v24  ;;  %v6798_v13 = vadd.f32 %v6780_v28, %v6764_v52  ;;  %v6799_v4 = vadd.f32 %v6788_v31, %v6765_v21  ;;  %v6800_v20 = vadd.f32 %v6787_v63, %v6766_v19  ;;  %v6818_v10 = vsel (!%p7095_p2), %vm6814_vm7, %v6796_v34, 0.0 }
 0xbaf   : > { %v6801_v23 = vadd.f32 %v6789_v50, %v6767_v53  ;;  %v6817_v38 = vadd.f32 (!%p7095_p2), %v6816_v2, %v6815_v29  ;;  %v6820_v57 = vsel (!%p7095_p2), %vm6814_vm7, %v6797_v24, 0.0 }
 0xbb0   : > { %6806 = vst [vmem:[#allocation2 + $0x8] sm:$0x3] %v6798_v13  ;;  %6807 = vst [vmem:[#allocation2 + $0xa] sm:$0x3] %v6799_v4  ;;  %v6822_v18 = vsel (!%p7095_p2), %vm6814_vm7, %v6798_v13, 0.0  ;;  %v6824_v37 = vsel (!%p7095_p2), %vm6814_vm7, %v6799_v4, 0.0 }
 0xbb1   : > { %6808 = vst [vmem:[#allocation2 + $0xc] sm:$0x3] %v6800_v20  ;;  %6809 = vst [vmem:[#allocation2 + $0xe] sm:$0x3] %v6801_v23  ;;  %v6819_v30 = vadd.f32 (!%p7095_p2), %v6818_v10, %v6817_v38  ;;  %v6826_v49 = vsel (!%p7095_p2), %vm6814_vm7, %v6800_v20, 0.0  ;;  %v6828_v3 = vsel (!%p7095_p2), %vm6814_vm7, %v6801_v23, 0.0 }
 0xbb3   : > { %v6821_v14 = vadd.f32 %v6820_v57, %v6819_v30 }
 0xbb5   : > { %v6823_v48 = vadd.f32 %v6822_v18, %v6821_v14 }
 0xbb7   : > { %v6825_v12 = vadd.f32 %v6824_v37, %v6823_v48 }
 0xbb9   : > { %v6827_v47 = vadd.f32 %v6826_v49, %v6825_v12 }
 0xbbb   : > { %v6829_v51 = vadd.f32 %v6828_v3, %v6827_v47 }
 0xbbd   : > { %6830 = vst [vmem:[#allocation11] sm:$0x3] %v6829_v51 }
 0xbbe PF: > { %s10158_s27 = sadd.s32 4294967295, %s8203_s29   ;;  %s8227_s25 = smov [#allocation11]  }
 0xbbf   : > { %p10046_p10 = scmp.eq.s32.totalorder %s10158_s27, 1  ;;  %s6840_s26 = sshll.u32 %s8227_s25, 4  ;;  %s6841_s26 = int_to_ptr.vmem [resolvable:$true] %s6840_s26 }
 0xbc0   : > { %s8137_s9 = scalar_lea.vmem %s6841_s26, 32  ;;  %p8144_p6 = scmp.lt.s32.totalorder %s6841_s26, %s6841_s26 }
 0xbc1   : > { %p8138_p11 = scmp.ne.s32.totalorder %s6841_s26, %s8137_s9  ;;  %p8145_p0 = scmp.lt.s32.totalorder %s8137_s9, %s8137_s9 }
 0xbc3   : > { %p8139_p12 = pnand %p8138_p11, %p10046_p10  ;;  %p8146_p1 = por %p8145_p0, %p8144_p6 }
 0xbc5   : > { %p8140_p13 = pneg %p8139_p12 }
 0xbc7   : > { %p8147_p4 = pnand %p8146_p1, %p8140_p13 }
 0xbc9   : > { %8150 = shalt.err (!%p8147_p4)
}
 0xbca   : > { %s8151_s15 = scalar_lea.hbm %s10089_s8, 32 }
 0xbcb   : > { %p8152_p7 = scmp.ne.s32.totalorder %s10089_s8, %s8151_s15  ;;  %p8157_p8 = scmp.lt.u32.totalorder %s8151_s15, %s10089_s8 }
 0xbcd   : > { %p8153_p9 = pnand %p8152_p7, %p10046_p10 }
 0xbcf   : > { %p8154_p3 = pneg %p8153_p9 }
 0xbd1   : > { %p8159_p5 = pnand %p8157_p8, %p8154_p3 }
 0xbd3   : > { %8162 = shalt.err (!%p8159_p5)
}
 0xbd4   : > { %7713 = dma.vmem_to_hbm [thread:$0]  (%p10046_p10), %s6841_s26, 32, %s10089_s8, [#allocation5]  }
 0xbd5   : > { %8190 = dma.done.wait (%p10046_p10), [#allocation5], 32  }
 0xbd6   : > { %8192 = vsyncadd (%p10046_p10), [#allocation5], 4294967264 }
 0xbd7 PF: > { %s22_s29 = sadd.s32 1, %s8203_s29   ;;  %s10160_s27 = smov %s8199_s28 }
 0xbd8   : > { %p19_p2 = scmp.ge.s32.totalorder %s22_s29, 4   ;;  %s10161_s28 = smov %s10163_s14 }
 0xbda   :  { %21 = sbr.rel (!%p19_p2) target bundleno = 5 (0x5), region = 149 }
 0xbe1   :  { %6853 = vsyncpa [#allocation4], 1 }
 0xbe2   :  { %6855 = vsyncpa [#allocation4 + $0x1], 1 }
 0xbe3   :  { %6856 = vsyncpa [#allocation7], 1 }
 0xbe4   :  { %6857 = vsyncpa [#allocation10], 1 }
 0xbe5   :  { %6858 = vsyncpa [#allocation5], 1 }
 0xbe6   :  { %6860 = vsyncpa [#allocation5 + $0x1], 1 }

</bundles_post_ra>
